<compile_context>
chip_gen: v7x
topology: tpu7x:2x2x1
jax: 0.10.0
libtpu: 0.0.40
codegen_flags: <defaults>
</compile_context>

<pallas_src>
import functools
import math

import jax
import jax.numpy as jnp
from jax.experimental import pallas as pl
from jax.experimental.pallas import tpu as pltpu

VMEM_SPEC = pl.BlockSpec(memory_space=pltpu.MemorySpace.VMEM)


def _round_up(x, m):
    return (x + m - 1) // m * m


def _tile(dim, tmax, unit):
    """Return (tile, padded_dim): tile multiple of `unit`, at most tmax."""
    d = _round_up(dim, unit)
    if d <= tmax:
        return d, d
    return tmax, _round_up(d, tmax)


# ----------------------------------------------------------------------------
# Dense-layer parameter container: pre-padded bf16 weight + f32 scale/shift,
# with static tile metadata kept out of the traced pytree leaves.
# ----------------------------------------------------------------------------
@jax.tree_util.register_pytree_node_class
class DenseParams:
    def __init__(self, w, scale, shift, n_out, k_pad, n_pad, tk, tn):
        self.w, self.scale, self.shift = w, scale, shift
        self.n_out, self.k_pad, self.n_pad = n_out, k_pad, n_pad
        self.tk, self.tn = tk, tn

    def tree_flatten(self):
        return ((self.w, self.scale, self.shift),
                (self.n_out, self.k_pad, self.n_pad, self.tk, self.tn))

    @classmethod
    def tree_unflatten(cls, aux, children):
        return cls(*children, *aux)


def make_dense_params(w, scale=None, shift=None, *, tk_cap=1024, tn_cap=256):
    """Pre-pad / pre-cast a (K, N) weight (+ per-output scale/shift) once at init."""
    w = jnp.asarray(w, jnp.float32)
    K, N = w.shape
    tk, Kp = _tile(K, tk_cap, 128)
    tn, Np = _tile(N, tn_cap, 128)
    if Np // tn < 2 and Np >= 256:     # expose >=2 N-blocks for v7x's 2nd TensorCore
        tn = 128
    wp = jnp.pad(w, ((0, Kp - K), (0, Np - N))).astype(jnp.bfloat16)

    def _prep(v):
        if v is None:
            return None
        v = jnp.asarray(v, jnp.float32).reshape(1, -1)
        return jnp.pad(v, ((0, 0), (0, Np - N)))

    return DenseParams(wp, _prep(scale), _prep(shift), N, Kp, Np, tk, tn)


# ----------------------------------------------------------------------------
# Tiled matmul kernel with fused epilogue (BN scale/shift, bias, residual, act)
# ----------------------------------------------------------------------------
def _dense_kernel(*refs, act, has_scale, has_shift, has_res):
    x_ref, w_ref = refs[0], refs[1]
    idx = 2
    scale_ref = shift_ref = res_ref = None
    if has_scale:
        scale_ref = refs[idx]; idx += 1
    if has_shift:
        shift_ref = refs[idx]; idx += 1
    if has_res:
        res_ref = refs[idx]; idx += 1
    o_ref, acc_ref = refs[idx], refs[idx + 1]

    k = pl.program_id(2)

    @pl.when(k == 0)
    def _():
        acc_ref[...] = jnp.zeros_like(acc_ref)

    acc_ref[...] += jnp.dot(x_ref[...], w_ref[...],
                            preferred_element_type=jnp.float32)

    @pl.when(k == pl.num_programs(2) - 1)
    def _():
        y = acc_ref[...]
        if has_scale:
            y = y * scale_ref[...]
        if has_shift:
            y = y + shift_ref[...]
        if has_res:
            y = y + res_ref[...].astype(jnp.float32)
        if act == "relu":
            y = jnp.maximum(y, 0.0)
        elif act == "sigmoid":
            y = jax.nn.sigmoid(y)
        o_ref[...] = y.astype(o_ref.dtype)


def dense(x, dp, *, residual=None, act="none", out_dtype=jnp.bfloat16,
          slice_out=True):
    """y = act((x @ W) * scale + shift + residual).

    x: (M, Kx) with Kx <= dp.k_pad; columns beyond the logical K hit zero-padded
    weight rows, so lane-padded activations can be passed through unsliced.
    Tiled (M, N, K) grid, bf16 MXU inputs, f32 VMEM accumulator, bf16 output
    (by default) with lane-dense (x128) stores.
    """
    M, Kx = x.shape
    Kp, Np, tk, tn = dp.k_pad, dp.n_pad, dp.tk, dp.tn
    assert Kx <= Kp

    if M <= 512:
        tm, Mp = M, M                      # full-dim M block: no M padding
    else:
        tm, Mp = _tile(M, 512, 16)         # 16-row unit: full bf16 sublane packing
    # give v7x's second TensorCore at least 2 parallel blocks when possible
    if (Mp // tm) * (Np // tn) < 2 and tm >= 32 and tm % 16 == 0:
        tm //= 2

    xp = x
    if Kx < Kp or Mp > M:
        xp = jnp.pad(xp, ((0, Mp - M), (0, Kp - Kx)))
    xp = xp.astype(jnp.bfloat16)

    operands = [xp, dp.w]
    in_specs = [
        pl.BlockSpec((tm, tk), lambda i, j, k: (i, k)),
        pl.BlockSpec((tk, tn), lambda i, j, k: (k, j)),
    ]
    if dp.scale is not None:
        operands.append(dp.scale)
        in_specs.append(pl.BlockSpec((1, tn), lambda i, j, k: (0, j)))
    if dp.shift is not None:
        operands.append(dp.shift)
        in_specs.append(pl.BlockSpec((1, tn), lambda i, j, k: (0, j)))
    if residual is not None:
        res = residual
        Nr = res.shape[1]
        if Nr < Np or Mp > M:
            res = jnp.pad(res, ((0, Mp - M), (0, Np - Nr)))
        operands.append(res.astype(jnp.bfloat16))
        in_specs.append(pl.BlockSpec((tm, tn), lambda i, j, k: (i, j)))

    out_bytes = jnp.dtype(out_dtype).itemsize
    bytes_accessed = xp.size * 2 + dp.w.size * 2 + Mp * Np * out_bytes
    if residual is not None:
        bytes_accessed += Mp * Np * 2

    out = pl.pallas_call(
        functools.partial(_dense_kernel, act=act,
                          has_scale=dp.scale is not None,
                          has_shift=dp.shift is not None,
                          has_res=residual is not None),
        out_shape=jax.ShapeDtypeStruct((Mp, Np), out_dtype),
        grid=(Mp // tm, Np // tn, Kp // tk),
        in_specs=in_specs,
        out_specs=pl.BlockSpec((tm, tn), lambda i, j, k: (i, j)),
        scratch_shapes=[pltpu.VMEM((tm, tn), jnp.float32)],
        compiler_params=pltpu.CompilerParams(
            dimension_semantics=("parallel", "parallel", "arbitrary"),
            vmem_limit_bytes=32 * 1024 * 1024),
        cost_estimate=pl.CostEstimate(
            flops=2 * Mp * Np * Kp,
            transcendentals=Mp * Np if act == "sigmoid" else 0,
            bytes_accessed=bytes_accessed),
    )(*operands)

    if slice_out:
        if (Mp, Np) != (M, dp.n_out):
            out = out[:M, :dp.n_out]
    elif Mp != M:
        out = out[:M]
    return out


# ----------------------------------------------------------------------------
# Fused Squeeze-Excite gate kernel: sigmoid(relu(p@W1+b1)@W2+b2) in one launch
# ----------------------------------------------------------------------------
def _se_kernel(p_ref, w1_ref, b1_ref, w2_ref, b2_ref, o_ref):
    h = jnp.dot(p_ref[...], w1_ref[...], preferred_element_type=jnp.float32)
    h = jnp.maximum(h + b1_ref[...], 0.0).astype(jnp.bfloat16)
    g = jnp.dot(h, w2_ref[...], preferred_element_type=jnp.float32) + b2_ref[...]
    o_ref[...] = jax.nn.sigmoid(g)


def se_apply(x, sp):
    N, H, W, C = x.shape
    pooled = jnp.mean(x.astype(jnp.float32), axis=(1, 2))        # (N, C), tiny -> XLA
    Cp = sp["w2"].shape[1]
    pp = jnp.pad(pooled, ((0, 0), (0, Cp - C))).astype(jnp.bfloat16)
    gate = pl.pallas_call(
        _se_kernel,
        out_shape=jax.ShapeDtypeStruct((N, Cp), jnp.float32),
        in_specs=[VMEM_SPEC] * 5,
        out_specs=VMEM_SPEC,
    )(pp, sp["w1"], sp["b1"], sp["w2"], sp["b2"])
    return x * gate[:, None, None, :C].astype(x.dtype)           # channel gate (XLA)


# ----------------------------------------------------------------------------
# Multi-head attention core: one kernel invocation for all heads (bf16 MXU,
# softmax 1/sqrt(hd) pre-folded into the fused q projection weights).
# ----------------------------------------------------------------------------
def _attn_kernel(q_ref, k_ref, v_ref, o_ref):
    q, k, v = q_ref[...], k_ref[...], v_ref[...]                  # (H, L, hd) bf16
    s = jax.lax.dot_general(q, k, (((2,), (2,)), ((0,), (0,))),
                            preferred_element_type=jnp.float32)  # (H, L, L)
    s = s - jnp.max(s, axis=-1, keepdims=True)
    p = jnp.exp(s)
    denom = jnp.sum(p, axis=-1, keepdims=True)
    o = jax.lax.dot_general(p.astype(v.dtype), v, (((2,), (1,)), ((0,), (0,))),
                            preferred_element_type=jnp.float32)  # (H, L, hd)
    o_ref[...] = (o / denom).astype(o_ref.dtype)                 # exact division


def mha_core(qh, kh, vh):
    H, L, hd = qh.shape
    return pl.pallas_call(
        _attn_kernel,
        out_shape=jax.ShapeDtypeStruct((H, L, hd), jnp.bfloat16),
        in_specs=[VMEM_SPEC] * 3,
        out_specs=VMEM_SPEC,
    )(qh, kh, vh)


# ----------------------------------------------------------------------------
# Conv / block helpers (glue = patch extraction & reshape; math in the kernel)
# ----------------------------------------------------------------------------
def conv2d_bn(x_nhwc, dp, *, ksize=1, stride=1, pad=0, act="none",
              residual=None, flat_padded_out=False):
    """Conv2d + folded BatchNorm (+ optional fused residual add) + activation."""
    N, H, W, C = x_nhwc.shape
    if ksize == 1:
        xs = x_nhwc[:, ::stride, ::stride, :]
        Ho, Wo = xs.shape[1], xs.shape[2]
        patches = xs.reshape(N * Ho * Wo, C)
    else:
        # TODO(synk): at real resolutions, replace this patch materialization with a
        # tap-accumulating conv kernel (kh*kw shifted 1x1 matmuls into one f32 acc).
        patches = jax.lax.conv_general_dilated_patches(
            x_nhwc, (ksize, ksize), (stride, stride),
            padding=((pad, pad), (pad, pad)),
            dimension_numbers=("NHWC", "HWIO", "NHWC"))
        Ho, Wo = patches.shape[1], patches.shape[2]
        patches = patches.reshape(N * Ho * Wo, C * ksize * ksize)
    res = None if residual is None else residual.reshape(N * Ho * Wo, -1)
    y = dense(patches, dp, residual=res, act=act, slice_out=not flat_padded_out)
    if flat_padded_out:
        return y                                     # (N*Ho*Wo, Np) bf16, lane-padded
    return y.reshape(N, Ho, Wo, dp.n_out)


def y_block(x, bp, *, stride):
    out = conv2d_bn(x, bp["conv1"], ksize=1, act="relu")
    # TODO(synk): regnety_016 uses grouped 3x3 convs (group width 24); dense 3x3 stand-in.
    out = conv2d_bn(out, bp["conv2"], ksize=3, stride=stride, pad=1, act="relu")
    out = se_apply(out, bp["se"])
    # 1x1 shortcut kept flat & lane-padded: consumed directly as the fused residual.
    sc = conv2d_bn(x, bp["convs"], ksize=1, stride=stride, flat_padded_out=True)
    return conv2d_bn(out, bp["conv3"], ksize=1, act="relu", residual=sc)


# ----------------------------------------------------------------------------
# Parameters (deterministic synthetic init; everything pre-padded / pre-cast)
# ----------------------------------------------------------------------------
class _Rng:
    def __init__(self, key):
        self._key = key

    def next(self):
        self._key, sub = jax.random.split(self._key)
        return sub


def init_all_params(key, emb_dim=256, num_classes=6, num_heads=8):
    rng = _Rng(key)

    def normal(shape, s=1.0):
        return s * jax.random.normal(rng.next(), shape, jnp.float32)

    def lin_raw(cin, cout):
        return normal((cin, cout), 1.0 / math.sqrt(cin)), normal((cout,), 0.01)

    def bn_fold(c, eps=1e-5):
        gamma = 1.0 + normal((c,), 0.05)
        beta = normal((c,), 0.05)
        mean = normal((c,), 0.05)
        var = jax.random.uniform(rng.next(), (c,), jnp.float32, minval=0.5, maxval=1.5)
        scale = gamma / jnp.sqrt(var + eps)
        shift = beta - mean * scale
        return scale, shift

    def conv_bn(k, cin, cout):
        w = normal((k, k, cin, cout), 1.0 / math.sqrt(k * k * cin))
        scale, shift = bn_fold(cout)
        # patch feature order is (C, kh, kw) -> flatten weights to match
        wf = jnp.transpose(w, (2, 0, 1, 3)).reshape(cin * k * k, cout)
        return make_dense_params(wf, scale=scale, shift=shift)

    def se(c, rd):
        w1, b1 = lin_raw(c, rd)
        w2, b2 = lin_raw(rd, c)
        cp, rdp = _round_up(c, 128), _round_up(rd, 128)
        return {
            "w1": jnp.pad(w1, ((0, cp - c), (0, rdp - rd))).astype(jnp.bfloat16),
            "b1": jnp.pad(b1, (0, rdp - rd)).reshape(1, -1),
            "w2": jnp.pad(w2, ((0, rdp - rd), (0, cp - c))).astype(jnp.bfloat16),
            "b2": jnp.pad(b2, (0, cp - c)).reshape(1, -1),
        }

    def block(cin, cout, rd):
        return {"conv1": conv_bn(1, cin, cout),
                "conv2": conv_bn(3, cout, cout),
                "se": se(cout, rd),
                "conv3": conv_bn(1, cout, cout),
                "convs": conv_bn(1, cin, cout)}

    p = {}
    # ---- backbone stand-in ----
    # TODO(synk): pretrained timm `regnety_016` weights are not loadable offline;
    # compact RegNetY-style stand-in (stem + 2 SE bottleneck blocks + GAP + Linear->1000).
    p["stem"] = conv_bn(3, 3, 32)
    p["block1"] = block(32, 48, 8)
    p["block2"] = block(48, 64, 12)
    head_w, head_b = lin_raw(64, 1000)
    bn_s, bn_t = bn_fold(1000)                      # BatchNorm1d(1000), eval mode
    p["head"] = make_dense_params(head_w, scale=bn_s, shift=head_b * bn_s + bn_t)

    # ---- VanillaRegNetV2 head ----
    # query/key/value Linears composed exactly with the MHA in-projections
    # (linear∘linear), softmax 1/sqrt(hd) folded into the q path, fused along N.
    hd = emb_dim // num_heads
    sm = 1.0 / math.sqrt(hd)
    q_w, q_b = lin_raw(1000, emb_dim)
    k_w, k_b = lin_raw(1000, emb_dim)
    v_w, v_b = lin_raw(1000, emb_dim)
    iq_w, iq_b = lin_raw(emb_dim, emb_dim)
    ik_w, ik_b = lin_raw(emb_dim, emb_dim)
    iv_w, iv_b = lin_raw(emb_dim, emb_dim)
    wq, bq = (q_w @ iq_w) * sm, (q_b @ iq_w + iq_b) * sm
    wk, bk = k_w @ ik_w, k_b @ ik_w + ik_b
    wv, bv = v_w @ iv_w, v_b @ iv_w + iv_b
    p["qkv"] = make_dense_params(jnp.concatenate([wq, wk, wv], axis=1),
                                 shift=jnp.concatenate([bq, bk, bv], axis=0))
    out_w, out_b = lin_raw(emb_dim, emb_dim)
    p["attn_out"] = make_dense_params(out_w, shift=out_b)
    fc1_w, fc1_b = lin_raw(1000, emb_dim)
    p["fc1"] = make_dense_params(fc1_w, shift=fc1_b)
    fc2_w, fc2_b = lin_raw(emb_dim, num_classes)
    p["fc2"] = make_dense_params(fc2_w, shift=fc2_b)
    return p


# ----------------------------------------------------------------------------
# Full forward pass
# ----------------------------------------------------------------------------
def vanilla_regnet_v2_forward(params, x_nchw, num_heads=8, emb_dim=256):
    # PyTorch-style NCHW -> NHWC once; bf16 activations throughout (inference).
    x = jnp.transpose(x_nchw, (0, 2, 3, 1)).astype(jnp.bfloat16)

    # ---- backbone stand-in (RegNetY-style, produces (B, 1000)) ----
    x = conv2d_bn(x, params["stem"], ksize=3, stride=2, pad=1, act="relu")
    x = y_block(x, params["block1"], stride=2)
    x = y_block(x, params["block2"], stride=2)
    pooled = jnp.mean(x.astype(jnp.float32), axis=(1, 2))           # global avg pool
    # backbone classifier Linear with BatchNorm1d(1000) (eval) folded into its
    # epilogue; output kept lane-padded (zeros) so downstream denses skip re-padding.
    xb = dense(pooled.astype(jnp.bfloat16), params["head"], slice_out=False)  # (B, 1024)

    # ---- VanillaRegNetV2 head (exact module semantics) ----
    # nn.MultiheadAttention gets 2-D (un-batched) q/k/v: attention runs ACROSS
    # the batch axis (seq_len == batch).  q/k/v + in-projections are one fused matmul.
    L = xb.shape[0]
    hd = emb_dim // num_heads
    qkv = dense(xb, params["qkv"])                                  # (L, 3*emb)
    qkv = qkv.reshape(L, 3, num_heads, hd).transpose(1, 2, 0, 3)    # (3, H, L, hd)
    oh = mha_core(qkv[0], qkv[1], qkv[2])                           # (H, L, hd)
    attn = dense(oh.transpose(1, 0, 2).reshape(L, emb_dim), params["attn_out"])
    h = dense(xb, params["fc1"], residual=attn)                     # fc1(x) + attn fused
    return dense(h, params["fc2"], act="relu", out_dtype=jnp.float32)  # relu(fc2(.))


if __name__ == "__main__":
    key = jax.random.PRNGKey(0)
    pkey, xkey = jax.random.split(key)
    params = init_all_params(pkey)
    x = jax.random.normal(xkey, (2, 3, 16, 16), jnp.float32)   # NCHW like PyTorch
    fwd = jax.jit(vanilla_regnet_v2_forward)
    out = fwd(params, x)
    jax.block_until_ready(out)
    assert out.shape == (2, 6) and out.dtype == jnp.float32
    print("KERNEL_OK")
</pallas_src>

<mosaic_0001>
module attributes {stable_mosaic.version = 11 : i64} {
  func.func @_dense_kernel(%arg0: i32, %arg1: i32, %arg2: i32, %arg3: memref<64x128xbf16, #tpu.memory_space<vmem>>, %arg4: memref<128x128xbf16, #tpu.memory_space<vmem>>, %arg5: memref<1x128xf32, #tpu.memory_space<vmem>>, %arg6: memref<1x128xf32, #tpu.memory_space<vmem>>, %arg7: memref<64x128xbf16, #tpu.memory_space<vmem>>, %arg8: memref<64x128xf32, #tpu.memory_space<vmem>>) attributes {dimension_semantics = [#tpu.dimension_semantics<parallel>, #tpu.dimension_semantics<parallel>, #tpu.dimension_semantics<arbitrary>], iteration_bounds = array<i64: 2, 1, 1>, scalar_prefetch = 0 : i64, scratch_operands = 1 : i64, tpu.core_type = #tpu.core_type<tc>, window_params = [{transform_indices = @transform_0, window_bounds = array<i64: 64, 128>}, {transform_indices = @transform_1, window_bounds = array<i64: 128, 128>}, {transform_indices = @transform_2, window_bounds = array<i64: 1, 128>}, {transform_indices = @transform_3, window_bounds = array<i64: 1, 128>}, {transform_indices = @transform_4, window_bounds = array<i64: 64, 128>}]} {
    %c0_i32 = arith.constant 0 : i32
    %0 = arith.cmpi eq, %arg2, %c0_i32 : i32
    %1 = arith.extui %0 : i1 to i32
    %c0_i32_0 = arith.constant 0 : i32
    %2 = arith.cmpi ne, %1, %c0_i32_0 : i32
    scf.if %2 {
      %cst_10 = arith.constant 0.000000e+00 : f32
      %12 = vector.broadcast %cst_10 : f32 to vector<64x128xf32>
      %c0_11 = arith.constant 0 : index
      %c0_12 = arith.constant 0 : index
      %13 = vector.load %arg8[%c0_11, %c0_12] : memref<64x128xf32, #tpu.memory_space<vmem>>, vector<64x128xf32>
      tpu.vector_store %arg8[%c0_11, %c0_12], %12 {strides = array<i32>} : memref<64x128xf32, #tpu.memory_space<vmem>>, vector<64x128xf32>,
    } else {
    }
    %c0 = arith.constant 0 : index
    %c0_1 = arith.constant 0 : index
    %3 = vector.load %arg8[%c0, %c0_1] : memref<64x128xf32, #tpu.memory_space<vmem>>, vector<64x128xf32>
    %c0_2 = arith.constant 0 : index
    %c0_3 = arith.constant 0 : index
    %4 = vector.load %arg3[%c0_2, %c0_3] : memref<64x128xbf16, #tpu.memory_space<vmem>>, vector<64x128xbf16>
    %c0_4 = arith.constant 0 : index
    %c0_5 = arith.constant 0 : index
    %5 = vector.load %arg4[%c0_4, %c0_5] : memref<128x128xbf16, #tpu.memory_space<vmem>>, vector<128x128xbf16>
    %cst = arith.constant dense<0.000000e+00> : vector<64x128xf32>
    %6 = tpu.matmul %4, %5, %cst {dimension_numbers = #tpu.dot_dimension_numbers<[1], [0], [0], [1], [0, 0, 1, 1], [], []>} : vector<64x128xbf16>, vector<128x128xbf16>, vector<64x128xf32> -> vector<64x128xf32>
    %7 = arith.addf %3, %6 : vector<64x128xf32>
    %c0_6 = arith.constant 0 : index
    %c0_7 = arith.constant 0 : index
    %8 = vector.load %arg8[%c0_6, %c0_7] : memref<64x128xf32, #tpu.memory_space<vmem>>, vector<64x128xf32>
    tpu.vector_store %arg8[%c0_6, %c0_7], %7 {strides = array<i32>} : memref<64x128xf32, #tpu.memory_space<vmem>>, vector<64x128xf32>,
    %c0_i32_8 = arith.constant 0 : i32
    %9 = arith.cmpi eq, %arg2, %c0_i32_8 : i32
    %10 = arith.extui %9 : i1 to i32
    %c0_i32_9 = arith.constant 0 : i32
    %11 = arith.cmpi ne, %10, %c0_i32_9 : i32
    scf.if %11 {
      %c0_10 = arith.constant 0 : index
      %c0_11 = arith.constant 0 : index
      %12 = vector.load %arg8[%c0_10, %c0_11] : memref<64x128xf32, #tpu.memory_space<vmem>>, vector<64x128xf32>
      %c0_12 = arith.constant 0 : index
      %c0_13 = arith.constant 0 : index
      %13 = vector.load %arg5[%c0_12, %c0_13] : memref<1x128xf32, #tpu.memory_space<vmem>>, vector<1x128xf32>
      %14 = vector.broadcast %13 : vector<1x128xf32> to vector<64x128xf32>
      %15 = arith.mulf %12, %14 : vector<64x128xf32>
      %c0_14 = arith.constant 0 : index
      %c0_15 = arith.constant 0 : index
      %16 = vector.load %arg6[%c0_14, %c0_15] : memref<1x128xf32, #tpu.memory_space<vmem>>, vector<1x128xf32>
      %17 = vector.broadcast %16 : vector<1x128xf32> to vector<64x128xf32>
      %18 = arith.addf %15, %17 : vector<64x128xf32>
      %cst_16 = arith.constant 0.000000e+00 : f32
      %19 = vector.broadcast %cst_16 : f32 to vector<64x128xf32>
      %20 = arith.maximumf %18, %19 : vector<64x128xf32>
      %21 = arith.truncf %20 : vector<64x128xf32> to vector<64x128xbf16>
      %c0_17 = arith.constant 0 : index
      %c0_18 = arith.constant 0 : index
      %22 = vector.load %arg7[%c0_17, %c0_18] : memref<64x128xbf16, #tpu.memory_space<vmem>>, vector<64x128xbf16>
      tpu.vector_store %arg7[%c0_17, %c0_18], %21 {strides = array<i32>} : memref<64x128xbf16, #tpu.memory_space<vmem>>, vector<64x128xbf16>,
    } else {
    }
    return
  }
  func.func @transform_0(%arg0: i32, %arg1: i32, %arg2: i32) -> (i32, i32) {
    %c0_i32 = arith.constant 0 : i32
    return %arg0, %arg2 : i32, i32
  }
  func.func @transform_1(%arg0: i32, %arg1: i32, %arg2: i32) -> (i32, i32) {
    %c0_i32 = arith.constant 0 : i32
    return %arg2, %arg1 : i32, i32
  }
  func.func @transform_2(%arg0: i32, %arg1: i32, %arg2: i32) -> (i32, i32) {
    %c0_i32 = arith.constant 0 : i32
    %c0_i32_0 = arith.constant 0 : i32
    return %c0_i32, %arg1 : i32, i32
  }
  func.func @transform_3(%arg0: i32, %arg1: i32, %arg2: i32) -> (i32, i32) {
    %c0_i32 = arith.constant 0 : i32
    %c0_i32_0 = arith.constant 0 : i32
    return %c0_i32, %arg1 : i32, i32
  }
  func.func @transform_4(%arg0: i32, %arg1: i32, %arg2: i32) -> (i32, i32) {
    %c0_i32 = arith.constant 0 : i32
    return %arg0, %arg1 : i32, i32
  }
}

module attributes {stable_mosaic.version = 11 : i64} {
  func.func @_dense_kernel(%arg0: i32, %arg1: i32, %arg2: i32, %arg3: memref<16x128xbf16, #tpu.memory_space<vmem>>, %arg4: memref<128x128xbf16, #tpu.memory_space<vmem>>, %arg5: memref<1x128xf32, #tpu.memory_space<vmem>>, %arg6: memref<1x128xf32, #tpu.memory_space<vmem>>, %arg7: memref<16x128xbf16, #tpu.memory_space<vmem>>, %arg8: memref<16x128xf32, #tpu.memory_space<vmem>>) attributes {dimension_semantics = [#tpu.dimension_semantics<parallel>, #tpu.dimension_semantics<parallel>, #tpu.dimension_semantics<arbitrary>], iteration_bounds = array<i64: 2, 1, 1>, scalar_prefetch = 0 : i64, scratch_operands = 1 : i64, tpu.core_type = #tpu.core_type<tc>, window_params = [{transform_indices = @transform_0, window_bounds = array<i64: 16, 128>}, {transform_indices = @transform_1, window_bounds = array<i64: 128, 128>}, {transform_indices = @transform_2, window_bounds = array<i64: 1, 128>}, {transform_indices = @transform_3, window_bounds = array<i64: 1, 128>}, {transform_indices = @transform_4, window_bounds = array<i64: 16, 128>}]} {
    %c0_i32 = arith.constant 0 : i32
    %0 = arith.cmpi eq, %arg2, %c0_i32 : i32
    %1 = arith.extui %0 : i1 to i32
    %c0_i32_0 = arith.constant 0 : i32
    %2 = arith.cmpi ne, %1, %c0_i32_0 : i32
    scf.if %2 {
      %cst_10 = arith.constant 0.000000e+00 : f32
      %12 = vector.broadcast %cst_10 : f32 to vector<16x128xf32>
      %c0_11 = arith.constant 0 : index
      %c0_12 = arith.constant 0 : index
      %13 = vector.load %arg8[%c0_11, %c0_12] : memref<16x128xf32, #tpu.memory_space<vmem>>, vector<16x128xf32>
      tpu.vector_store %arg8[%c0_11, %c0_12], %12 {strides = array<i32>} : memref<16x128xf32, #tpu.memory_space<vmem>>, vector<16x128xf32>,
    } else {
    }
    %c0 = arith.constant 0 : index
    %c0_1 = arith.constant 0 : index
    %3 = vector.load %arg8[%c0, %c0_1] : memref<16x128xf32, #tpu.memory_space<vmem>>, vector<16x128xf32>
    %c0_2 = arith.constant 0 : index
    %c0_3 = arith.constant 0 : index
    %4 = vector.load %arg3[%c0_2, %c0_3] : memref<16x128xbf16, #tpu.memory_space<vmem>>, vector<16x128xbf16>
    %c0_4 = arith.constant 0 : index
    %c0_5 = arith.constant 0 : index
    %5 = vector.load %arg4[%c0_4, %c0_5] : memref<128x128xbf16, #tpu.memory_space<vmem>>, vector<128x128xbf16>
    %cst = arith.constant dense<0.000000e+00> : vector<16x128xf32>
    %6 = tpu.matmul %4, %5, %cst {dimension_numbers = #tpu.dot_dimension_numbers<[1], [0], [0], [1], [0, 0, 1, 1], [], []>} : vector<16x128xbf16>, vector<128x128xbf16>, vector<16x128xf32> -> vector<16x128xf32>
    %7 = arith.addf %3, %6 : vector<16x128xf32>
    %c0_6 = arith.constant 0 : index
    %c0_7 = arith.constant 0 : index
    %8 = vector.load %arg8[%c0_6, %c0_7] : memref<16x128xf32, #tpu.memory_space<vmem>>, vector<16x128xf32>
    tpu.vector_store %arg8[%c0_6, %c0_7], %7 {strides = array<i32>} : memref<16x128xf32, #tpu.memory_space<vmem>>, vector<16x128xf32>,
    %c0_i32_8 = arith.constant 0 : i32
    %9 = arith.cmpi eq, %arg2, %c0_i32_8 : i32
    %10 = arith.extui %9 : i1 to i32
    %c0_i32_9 = arith.constant 0 : i32
    %11 = arith.cmpi ne, %10, %c0_i32_9 : i32
    scf.if %11 {
      %c0_10 = arith.constant 0 : index
      %c0_11 = arith.constant 0 : index
      %12 = vector.load %arg8[%c0_10, %c0_11] : memref<16x128xf32, #tpu.memory_space<vmem>>, vector<16x128xf32>
      %c0_12 = arith.constant 0 : index
      %c0_13 = arith.constant 0 : index
      %13 = vector.load %arg5[%c0_12, %c0_13] : memref<1x128xf32, #tpu.memory_space<vmem>>, vector<1x128xf32>
      %14 = vector.broadcast %13 : vector<1x128xf32> to vector<16x128xf32>
      %15 = arith.mulf %12, %14 : vector<16x128xf32>
      %c0_14 = arith.constant 0 : index
      %c0_15 = arith.constant 0 : index
      %16 = vector.load %arg6[%c0_14, %c0_15] : memref<1x128xf32, #tpu.memory_space<vmem>>, vector<1x128xf32>
      %17 = vector.broadcast %16 : vector<1x128xf32> to vector<16x128xf32>
      %18 = arith.addf %15, %17 : vector<16x128xf32>
      %19 = arith.truncf %18 : vector<16x128xf32> to vector<16x128xbf16>
      %c0_16 = arith.constant 0 : index
      %c0_17 = arith.constant 0 : index
      %20 = vector.load %arg7[%c0_16, %c0_17] : memref<16x128xbf16, #tpu.memory_space<vmem>>, vector<16x128xbf16>
      tpu.vector_store %arg7[%c0_16, %c0_17], %19 {strides = array<i32>} : memref<16x128xbf16, #tpu.memory_space<vmem>>, vector<16x128xbf16>,
    } else {
    }
    return
  }
  func.func @transform_0(%arg0: i32, %arg1: i32, %arg2: i32) -> (i32, i32) {
    %c0_i32 = arith.constant 0 : i32
    return %arg0, %arg2 : i32, i32
  }
  func.func @transform_1(%arg0: i32, %arg1: i32, %arg2: i32) -> (i32, i32) {
    %c0_i32 = arith.constant 0 : i32
    return %arg2, %arg1 : i32, i32
  }
  func.func @transform_2(%arg0: i32, %arg1: i32, %arg2: i32) -> (i32, i32) {
    %c0_i32 = arith.constant 0 : i32
    %c0_i32_0 = arith.constant 0 : i32
    return %c0_i32, %arg1 : i32, i32
  }
  func.func @transform_3(%arg0: i32, %arg1: i32, %arg2: i32) -> (i32, i32) {
    %c0_i32 = arith.constant 0 : i32
    %c0_i32_0 = arith.constant 0 : i32
    return %c0_i32, %arg1 : i32, i32
  }
  func.func @transform_4(%arg0: i32, %arg1: i32, %arg2: i32) -> (i32, i32) {
    %c0_i32 = arith.constant 0 : i32
    return %arg0, %arg1 : i32, i32
  }
}

module attributes {stable_mosaic.version = 11 : i64} {
  func.func @_dense_kernel(%arg0: i32, %arg1: i32, %arg2: i32, %arg3: memref<16x512xbf16, #tpu.memory_space<vmem>>, %arg4: memref<512x128xbf16, #tpu.memory_space<vmem>>, %arg5: memref<1x128xf32, #tpu.memory_space<vmem>>, %arg6: memref<1x128xf32, #tpu.memory_space<vmem>>, %arg7: memref<16x128xbf16, #tpu.memory_space<vmem>>, %arg8: memref<16x128xf32, #tpu.memory_space<vmem>>) attributes {dimension_semantics = [#tpu.dimension_semantics<parallel>, #tpu.dimension_semantics<parallel>, #tpu.dimension_semantics<arbitrary>], iteration_bounds = array<i64: 2, 1, 1>, scalar_prefetch = 0 : i64, scratch_operands = 1 : i64, tpu.core_type = #tpu.core_type<tc>, window_params = [{transform_indices = @transform_0, window_bounds = array<i64: 16, 512>}, {transform_indices = @transform_1, window_bounds = array<i64: 512, 128>}, {transform_indices = @transform_2, window_bounds = array<i64: 1, 128>}, {transform_indices = @transform_3, window_bounds = array<i64: 1, 128>}, {transform_indices = @transform_4, window_bounds = array<i64: 16, 128>}]} {
    %c0_i32 = arith.constant 0 : i32
    %0 = arith.cmpi eq, %arg2, %c0_i32 : i32
    %1 = arith.extui %0 : i1 to i32
    %c0_i32_0 = arith.constant 0 : i32
    %2 = arith.cmpi ne, %1, %c0_i32_0 : i32
    scf.if %2 {
      %cst_10 = arith.constant 0.000000e+00 : f32
      %12 = vector.broadcast %cst_10 : f32 to vector<16x128xf32>
      %c0_11 = arith.constant 0 : index
      %c0_12 = arith.constant 0 : index
      %13 = vector.load %arg8[%c0_11, %c0_12] : memref<16x128xf32, #tpu.memory_space<vmem>>, vector<16x128xf32>
      tpu.vector_store %arg8[%c0_11, %c0_12], %12 {strides = array<i32>} : memref<16x128xf32, #tpu.memory_space<vmem>>, vector<16x128xf32>,
    } else {
    }
    %c0 = arith.constant 0 : index
    %c0_1 = arith.constant 0 : index
    %3 = vector.load %arg8[%c0, %c0_1] : memref<16x128xf32, #tpu.memory_space<vmem>>, vector<16x128xf32>
    %c0_2 = arith.constant 0 : index
    %c0_3 = arith.constant 0 : index
    %4 = vector.load %arg3[%c0_2, %c0_3] : memref<16x512xbf16, #tpu.memory_space<vmem>>, vector<16x512xbf16>
    %c0_4 = arith.constant 0 : index
    %c0_5 = arith.constant 0 : index
    %5 = vector.load %arg4[%c0_4, %c0_5] : memref<512x128xbf16, #tpu.memory_space<vmem>>, vector<512x128xbf16>
    %cst = arith.constant dense<0.000000e+00> : vector<16x128xf32>
    %6 = tpu.matmul %4, %5, %cst {dimension_numbers = #tpu.dot_dimension_numbers<[1], [0], [0], [1], [0, 0, 1, 1], [], []>} : vector<16x512xbf16>, vector<512x128xbf16>, vector<16x128xf32> -> vector<16x128xf32>
    %7 = arith.addf %3, %6 : vector<16x128xf32>
    %c0_6 = arith.constant 0 : index
    %c0_7 = arith.constant 0 : index
    %8 = vector.load %arg8[%c0_6, %c0_7] : memref<16x128xf32, #tpu.memory_space<vmem>>, vector<16x128xf32>
    tpu.vector_store %arg8[%c0_6, %c0_7], %7 {strides = array<i32>} : memref<16x128xf32, #tpu.memory_space<vmem>>, vector<16x128xf32>,
    %c0_i32_8 = arith.constant 0 : i32
    %9 = arith.cmpi eq, %arg2, %c0_i32_8 : i32
    %10 = arith.extui %9 : i1 to i32
    %c0_i32_9 = arith.constant 0 : i32
    %11 = arith.cmpi ne, %10, %c0_i32_9 : i32
    scf.if %11 {
      %c0_10 = arith.constant 0 : index
      %c0_11 = arith.constant 0 : index
      %12 = vector.load %arg8[%c0_10, %c0_11] : memref<16x128xf32, #tpu.memory_space<vmem>>, vector<16x128xf32>
      %c0_12 = arith.constant 0 : index
      %c0_13 = arith.constant 0 : index
      %13 = vector.load %arg5[%c0_12, %c0_13] : memref<1x128xf32, #tpu.memory_space<vmem>>, vector<1x128xf32>
      %14 = vector.broadcast %13 : vector<1x128xf32> to vector<16x128xf32>
      %15 = arith.mulf %12, %14 : vector<16x128xf32>
      %c0_14 = arith.constant 0 : index
      %c0_15 = arith.constant 0 : index
      %16 = vector.load %arg6[%c0_14, %c0_15] : memref<1x128xf32, #tpu.memory_space<vmem>>, vector<1x128xf32>
      %17 = vector.broadcast %16 : vector<1x128xf32> to vector<16x128xf32>
      %18 = arith.addf %15, %17 : vector<16x128xf32>
      %cst_16 = arith.constant 0.000000e+00 : f32
      %19 = vector.broadcast %cst_16 : f32 to vector<16x128xf32>
      %20 = arith.maximumf %18, %19 : vector<16x128xf32>
      %21 = arith.truncf %20 : vector<16x128xf32> to vector<16x128xbf16>
      %c0_17 = arith.constant 0 : index
      %c0_18 = arith.constant 0 : index
      %22 = vector.load %arg7[%c0_17, %c0_18] : memref<16x128xbf16, #tpu.memory_space<vmem>>, vector<16x128xbf16>
      tpu.vector_store %arg7[%c0_17, %c0_18], %21 {strides = array<i32>} : memref<16x128xbf16, #tpu.memory_space<vmem>>, vector<16x128xbf16>,
    } else {
    }
    return
  }
  func.func @transform_0(%arg0: i32, %arg1: i32, %arg2: i32) -> (i32, i32) {
    %c0_i32 = arith.constant 0 : i32
    return %arg0, %arg2 : i32, i32
  }
  func.func @transform_1(%arg0: i32, %arg1: i32, %arg2: i32) -> (i32, i32) {
    %c0_i32 = arith.constant 0 : i32
    return %arg2, %arg1 : i32, i32
  }
  func.func @transform_2(%arg0: i32, %arg1: i32, %arg2: i32) -> (i32, i32) {
    %c0_i32 = arith.constant 0 : i32
    %c0_i32_0 = arith.constant 0 : i32
    return %c0_i32, %arg1 : i32, i32
  }
  func.func @transform_3(%arg0: i32, %arg1: i32, %arg2: i32) -> (i32, i32) {
    %c0_i32 = arith.constant 0 : i32
    %c0_i32_0 = arith.constant 0 : i32
    return %c0_i32, %arg1 : i32, i32
  }
  func.func @transform_4(%arg0: i32, %arg1: i32, %arg2: i32) -> (i32, i32) {
    %c0_i32 = arith.constant 0 : i32
    return %arg0, %arg1 : i32, i32
  }
}

module attributes {stable_mosaic.version = 11 : i64} {
  func.func @_se_kernel(%arg0: memref<2x128xbf16, #tpu.memory_space<vmem>>, %arg1: memref<128x128xbf16, #tpu.memory_space<vmem>>, %arg2: memref<1x128xf32, #tpu.memory_space<vmem>>, %arg3: memref<128x128xbf16, #tpu.memory_space<vmem>>, %arg4: memref<1x128xf32, #tpu.memory_space<vmem>>, %arg5: memref<2x128xf32, #tpu.memory_space<vmem>>) attributes {dimension_semantics = [], scalar_prefetch = 0 : i64, scratch_operands = 0 : i64, tpu.core_type = #tpu.core_type<tc>} {
    %c0 = arith.constant 0 : index
    %c0_0 = arith.constant 0 : index
    %0 = vector.load %arg0[%c0, %c0_0] : memref<2x128xbf16, #tpu.memory_space<vmem>>, vector<2x128xbf16>
    %c0_1 = arith.constant 0 : index
    %c0_2 = arith.constant 0 : index
    %1 = vector.load %arg1[%c0_1, %c0_2] : memref<128x128xbf16, #tpu.memory_space<vmem>>, vector<128x128xbf16>
    %cst = arith.constant dense<0.000000e+00> : vector<2x128xf32>
    %2 = tpu.matmul %0, %1, %cst {dimension_numbers = #tpu.dot_dimension_numbers<[1], [0], [0], [1], [0, 0, 1, 1], [], []>} : vector<2x128xbf16>, vector<128x128xbf16>, vector<2x128xf32> -> vector<2x128xf32>
    %c0_3 = arith.constant 0 : index
    %c0_4 = arith.constant 0 : index
    %3 = vector.load %arg2[%c0_3, %c0_4] : memref<1x128xf32, #tpu.memory_space<vmem>>, vector<1x128xf32>
    %4 = vector.broadcast %3 : vector<1x128xf32> to vector<2x128xf32>
    %5 = arith.addf %2, %4 : vector<2x128xf32>
    %cst_5 = arith.constant 0.000000e+00 : f32
    %6 = vector.broadcast %cst_5 : f32 to vector<2x128xf32>
    %7 = arith.maximumf %5, %6 : vector<2x128xf32>
    %8 = arith.truncf %7 : vector<2x128xf32> to vector<2x128xbf16>
    %c0_6 = arith.constant 0 : index
    %c0_7 = arith.constant 0 : index
    %9 = vector.load %arg3[%c0_6, %c0_7] : memref<128x128xbf16, #tpu.memory_space<vmem>>, vector<128x128xbf16>
    %cst_8 = arith.constant dense<0.000000e+00> : vector<2x128xf32>
    %10 = tpu.matmul %8, %9, %cst_8 {dimension_numbers = #tpu.dot_dimension_numbers<[1], [0], [0], [1], [0, 0, 1, 1], [], []>} : vector<2x128xbf16>, vector<128x128xbf16>, vector<2x128xf32> -> vector<2x128xf32>
    %c0_9 = arith.constant 0 : index
    %c0_10 = arith.constant 0 : index
    %11 = vector.load %arg4[%c0_9, %c0_10] : memref<1x128xf32, #tpu.memory_space<vmem>>, vector<1x128xf32>
    %12 = vector.broadcast %11 : vector<1x128xf32> to vector<2x128xf32>
    %13 = arith.addf %10, %12 : vector<2x128xf32>
    %14 = arith.negf %13 : vector<2x128xf32>
    %15 = math.exp %14 : vector<2x128xf32>
    %cst_11 = arith.constant 1.000000e+00 : f32
    %16 = vector.broadcast %cst_11 : f32 to vector<2x128xf32>
    %17 = arith.addf %16, %15 : vector<2x128xf32>
    %18 = arith.divf %16, %17 : vector<2x128xf32>
    %c0_12 = arith.constant 0 : index
    %c0_13 = arith.constant 0 : index
    %19 = vector.load %arg5[%c0_12, %c0_13] : memref<2x128xf32, #tpu.memory_space<vmem>>, vector<2x128xf32>
    tpu.vector_store %arg5[%c0_12, %c0_13], %18 {strides = array<i32>} : memref<2x128xf32, #tpu.memory_space<vmem>>, vector<2x128xf32>,
    return
  }
}

module attributes {stable_mosaic.version = 11 : i64} {
  func.func @_dense_kernel(%arg0: i32, %arg1: i32, %arg2: i32, %arg3: memref<16x128xbf16, #tpu.memory_space<vmem>>, %arg4: memref<128x128xbf16, #tpu.memory_space<vmem>>, %arg5: memref<1x128xf32, #tpu.memory_space<vmem>>, %arg6: memref<1x128xf32, #tpu.memory_space<vmem>>, %arg7: memref<16x128xbf16, #tpu.memory_space<vmem>>, %arg8: memref<16x128xbf16, #tpu.memory_space<vmem>>, %arg9: memref<16x128xf32, #tpu.memory_space<vmem>>) attributes {dimension_semantics = [#tpu.dimension_semantics<parallel>, #tpu.dimension_semantics<parallel>, #tpu.dimension_semantics<arbitrary>], iteration_bounds = array<i64: 2, 1, 1>, scalar_prefetch = 0 : i64, scratch_operands = 1 : i64, tpu.core_type = #tpu.core_type<tc>, window_params = [{transform_indices = @transform_0, window_bounds = array<i64: 16, 128>}, {transform_indices = @transform_1, window_bounds = array<i64: 128, 128>}, {transform_indices = @transform_2, window_bounds = array<i64: 1, 128>}, {transform_indices = @transform_3, window_bounds = array<i64: 1, 128>}, {transform_indices = @transform_4, window_bounds = array<i64: 16, 128>}, {transform_indices = @transform_5, window_bounds = array<i64: 16, 128>}]} {
    %c0_i32 = arith.constant 0 : i32
    %0 = arith.cmpi eq, %arg2, %c0_i32 : i32
    %1 = arith.extui %0 : i1 to i32
    %c0_i32_0 = arith.constant 0 : i32
    %2 = arith.cmpi ne, %1, %c0_i32_0 : i32
    scf.if %2 {
      %cst_10 = arith.constant 0.000000e+00 : f32
      %12 = vector.broadcast %cst_10 : f32 to vector<16x128xf32>
      %c0_11 = arith.constant 0 : index
      %c0_12 = arith.constant 0 : index
      %13 = vector.load %arg9[%c0_11, %c0_12] : memref<16x128xf32, #tpu.memory_space<vmem>>, vector<16x128xf32>
      tpu.vector_store %arg9[%c0_11, %c0_12], %12 {strides = array<i32>} : memref<16x128xf32, #tpu.memory_space<vmem>>, vector<16x128xf32>,
    } else {
    }
    %c0 = arith.constant 0 : index
    %c0_1 = arith.constant 0 : index
    %3 = vector.load %arg9[%c0, %c0_1] : memref<16x128xf32, #tpu.memory_space<vmem>>, vector<16x128xf32>
    %c0_2 = arith.constant 0 : index
    %c0_3 = arith.constant 0 : index
    %4 = vector.load %arg3[%c0_2, %c0_3] : memref<16x128xbf16, #tpu.memory_space<vmem>>, vector<16x128xbf16>
    %c0_4 = arith.constant 0 : index
    %c0_5 = arith.constant 0 : index
    %5 = vector.load %arg4[%c0_4, %c0_5] : memref<128x128xbf16, #tpu.memory_space<vmem>>, vector<128x128xbf16>
    %cst = arith.constant dense<0.000000e+00> : vector<16x128xf32>
    %6 = tpu.matmul %4, %5, %cst {dimension_numbers = #tpu.dot_dimension_numbers<[1], [0], [0], [1], [0, 0, 1, 1], [], []>} : vector<16x128xbf16>, vector<128x128xbf16>, vector<16x128xf32> -> vector<16x128xf32>
    %7 = arith.addf %3, %6 : vector<16x128xf32>
    %c0_6 = arith.constant 0 : index
    %c0_7 = arith.constant 0 : index
    %8 = vector.load %arg9[%c0_6, %c0_7] : memref<16x128xf32, #tpu.memory_space<vmem>>, vector<16x128xf32>
    tpu.vector_store %arg9[%c0_6, %c0_7], %7 {strides = array<i32>} : memref<16x128xf32, #tpu.memory_space<vmem>>, vector<16x128xf32>,
    %c0_i32_8 = arith.constant 0 : i32
    %9 = arith.cmpi eq, %arg2, %c0_i32_8 : i32
    %10 = arith.extui %9 : i1 to i32
    %c0_i32_9 = arith.constant 0 : i32
    %11 = arith.cmpi ne, %10, %c0_i32_9 : i32
    scf.if %11 {
      %c0_10 = arith.constant 0 : index
      %c0_11 = arith.constant 0 : index
      %12 = vector.load %arg9[%c0_10, %c0_11] : memref<16x128xf32, #tpu.memory_space<vmem>>, vector<16x128xf32>
      %c0_12 = arith.constant 0 : index
      %c0_13 = arith.constant 0 : index
      %13 = vector.load %arg5[%c0_12, %c0_13] : memref<1x128xf32, #tpu.memory_space<vmem>>, vector<1x128xf32>
      %14 = vector.broadcast %13 : vector<1x128xf32> to vector<16x128xf32>
      %15 = arith.mulf %12, %14 : vector<16x128xf32>
      %c0_14 = arith.constant 0 : index
      %c0_15 = arith.constant 0 : index
      %16 = vector.load %arg6[%c0_14, %c0_15] : memref<1x128xf32, #tpu.memory_space<vmem>>, vector<1x128xf32>
      %17 = vector.broadcast %16 : vector<1x128xf32> to vector<16x128xf32>
      %18 = arith.addf %15, %17 : vector<16x128xf32>
      %c0_16 = arith.constant 0 : index
      %c0_17 = arith.constant 0 : index
      %19 = vector.load %arg7[%c0_16, %c0_17] : memref<16x128xbf16, #tpu.memory_space<vmem>>, vector<16x128xbf16>
      %20 = arith.extf %19 : vector<16x128xbf16> to vector<16x128xf32>
      %21 = arith.addf %18, %20 : vector<16x128xf32>
      %cst_18 = arith.constant 0.000000e+00 : f32
      %22 = vector.broadcast %cst_18 : f32 to vector<16x128xf32>
      %23 = arith.maximumf %21, %22 : vector<16x128xf32>
      %24 = arith.truncf %23 : vector<16x128xf32> to vector<16x128xbf16>
      %c0_19 = arith.constant 0 : index
      %c0_20 = arith.constant 0 : index
      %25 = vector.load %arg8[%c0_19, %c0_20] : memref<16x128xbf16, #tpu.memory_space<vmem>>, vector<16x128xbf16>
      tpu.vector_store %arg8[%c0_19, %c0_20], %24 {strides = array<i32>} : memref<16x128xbf16, #tpu.memory_space<vmem>>, vector<16x128xbf16>,
    } else {
    }
    return
  }
  func.func @transform_0(%arg0: i32, %arg1: i32, %arg2: i32) -> (i32, i32) {
    %c0_i32 = arith.constant 0 : i32
    return %arg0, %arg2 : i32, i32
  }
  func.func @transform_1(%arg0: i32, %arg1: i32, %arg2: i32) -> (i32, i32) {
    %c0_i32 = arith.constant 0 : i32
    return %arg2, %arg1 : i32, i32
  }
  func.func @transform_2(%arg0: i32, %arg1: i32, %arg2: i32) -> (i32, i32) {
    %c0_i32 = arith.constant 0 : i32
    %c0_i32_0 = arith.constant 0 : i32
    return %c0_i32, %arg1 : i32, i32
  }
  func.func @transform_3(%arg0: i32, %arg1: i32, %arg2: i32) -> (i32, i32) {
    %c0_i32 = arith.constant 0 : i32
    %c0_i32_0 = arith.constant 0 : i32
    return %c0_i32, %arg1 : i32, i32
  }
  func.func @transform_4(%arg0: i32, %arg1: i32, %arg2: i32) -> (i32, i32) {
    %c0_i32 = arith.constant 0 : i32
    return %arg0, %arg1 : i32, i32
  }
  func.func @transform_5(%arg0: i32, %arg1: i32, %arg2: i32) -> (i32, i32) {
    %c0_i32 = arith.constant 0 : i32
    return %arg0, %arg1 : i32, i32
  }
}

module attributes {stable_mosaic.version = 11 : i64} {
  func.func @_dense_kernel(%arg0: i32, %arg1: i32, %arg2: i32, %arg3: memref<16x128xbf16, #tpu.memory_space<vmem>>, %arg4: memref<128x128xbf16, #tpu.memory_space<vmem>>, %arg5: memref<1x128xf32, #tpu.memory_space<vmem>>, %arg6: memref<1x128xf32, #tpu.memory_space<vmem>>, %arg7: memref<16x128xbf16, #tpu.memory_space<vmem>>, %arg8: memref<16x128xf32, #tpu.memory_space<vmem>>) attributes {dimension_semantics = [#tpu.dimension_semantics<parallel>, #tpu.dimension_semantics<parallel>, #tpu.dimension_semantics<arbitrary>], iteration_bounds = array<i64: 2, 1, 1>, scalar_prefetch = 0 : i64, scratch_operands = 1 : i64, tpu.core_type = #tpu.core_type<tc>, window_params = [{transform_indices = @transform_0, window_bounds = array<i64: 16, 128>}, {transform_indices = @transform_1, window_bounds = array<i64: 128, 128>}, {transform_indices = @transform_2, window_bounds = array<i64: 1, 128>}, {transform_indices = @transform_3, window_bounds = array<i64: 1, 128>}, {transform_indices = @transform_4, window_bounds = array<i64: 16, 128>}]} {
    %c0_i32 = arith.constant 0 : i32
    %0 = arith.cmpi eq, %arg2, %c0_i32 : i32
    %1 = arith.extui %0 : i1 to i32
    %c0_i32_0 = arith.constant 0 : i32
    %2 = arith.cmpi ne, %1, %c0_i32_0 : i32
    scf.if %2 {
      %cst_10 = arith.constant 0.000000e+00 : f32
      %12 = vector.broadcast %cst_10 : f32 to vector<16x128xf32>
      %c0_11 = arith.constant 0 : index
      %c0_12 = arith.constant 0 : index
      %13 = vector.load %arg8[%c0_11, %c0_12] : memref<16x128xf32, #tpu.memory_space<vmem>>, vector<16x128xf32>
      tpu.vector_store %arg8[%c0_11, %c0_12], %12 {strides = array<i32>} : memref<16x128xf32, #tpu.memory_space<vmem>>, vector<16x128xf32>,
    } else {
    }
    %c0 = arith.constant 0 : index
    %c0_1 = arith.constant 0 : index
    %3 = vector.load %arg8[%c0, %c0_1] : memref<16x128xf32, #tpu.memory_space<vmem>>, vector<16x128xf32>
    %c0_2 = arith.constant 0 : index
    %c0_3 = arith.constant 0 : index
    %4 = vector.load %arg3[%c0_2, %c0_3] : memref<16x128xbf16, #tpu.memory_space<vmem>>, vector<16x128xbf16>
    %c0_4 = arith.constant 0 : index
    %c0_5 = arith.constant 0 : index
    %5 = vector.load %arg4[%c0_4, %c0_5] : memref<128x128xbf16, #tpu.memory_space<vmem>>, vector<128x128xbf16>
    %cst = arith.constant dense<0.000000e+00> : vector<16x128xf32>
    %6 = tpu.matmul %4, %5, %cst {dimension_numbers = #tpu.dot_dimension_numbers<[1], [0], [0], [1], [0, 0, 1, 1], [], []>} : vector<16x128xbf16>, vector<128x128xbf16>, vector<16x128xf32> -> vector<16x128xf32>
    %7 = arith.addf %3, %6 : vector<16x128xf32>
    %c0_6 = arith.constant 0 : index
    %c0_7 = arith.constant 0 : index
    %8 = vector.load %arg8[%c0_6, %c0_7] : memref<16x128xf32, #tpu.memory_space<vmem>>, vector<16x128xf32>
    tpu.vector_store %arg8[%c0_6, %c0_7], %7 {strides = array<i32>} : memref<16x128xf32, #tpu.memory_space<vmem>>, vector<16x128xf32>,
    %c0_i32_8 = arith.constant 0 : i32
    %9 = arith.cmpi eq, %arg2, %c0_i32_8 : i32
    %10 = arith.extui %9 : i1 to i32
    %c0_i32_9 = arith.constant 0 : i32
    %11 = arith.cmpi ne, %10, %c0_i32_9 : i32
    scf.if %11 {
      %c0_10 = arith.constant 0 : index
      %c0_11 = arith.constant 0 : index
      %12 = vector.load %arg8[%c0_10, %c0_11] : memref<16x128xf32, #tpu.memory_space<vmem>>, vector<16x128xf32>
      %c0_12 = arith.constant 0 : index
      %c0_13 = arith.constant 0 : index
      %13 = vector.load %arg5[%c0_12, %c0_13] : memref<1x128xf32, #tpu.memory_space<vmem>>, vector<1x128xf32>
      %14 = vector.broadcast %13 : vector<1x128xf32> to vector<16x128xf32>
      %15 = arith.mulf %12, %14 : vector<16x128xf32>
      %c0_14 = arith.constant 0 : index
      %c0_15 = arith.constant 0 : index
      %16 = vector.load %arg6[%c0_14, %c0_15] : memref<1x128xf32, #tpu.memory_space<vmem>>, vector<1x128xf32>
      %17 = vector.broadcast %16 : vector<1x128xf32> to vector<16x128xf32>
      %18 = arith.addf %15, %17 : vector<16x128xf32>
      %cst_16 = arith.constant 0.000000e+00 : f32
      %19 = vector.broadcast %cst_16 : f32 to vector<16x128xf32>
      %20 = arith.maximumf %18, %19 : vector<16x128xf32>
      %21 = arith.truncf %20 : vector<16x128xf32> to vector<16x128xbf16>
      %c0_17 = arith.constant 0 : index
      %c0_18 = arith.constant 0 : index
      %22 = vector.load %arg7[%c0_17, %c0_18] : memref<16x128xbf16, #tpu.memory_space<vmem>>, vector<16x128xbf16>
      tpu.vector_store %arg7[%c0_17, %c0_18], %21 {strides = array<i32>} : memref<16x128xbf16, #tpu.memory_space<vmem>>, vector<16x128xbf16>,
    } else {
    }
    return
  }
  func.func @transform_0(%arg0: i32, %arg1: i32, %arg2: i32) -> (i32, i32) {
    %c0_i32 = arith.constant 0 : i32
    return %arg0, %arg2 : i32, i32
  }
  func.func @transform_1(%arg0: i32, %arg1: i32, %arg2: i32) -> (i32, i32) {
    %c0_i32 = arith.constant 0 : i32
    return %arg2, %arg1 : i32, i32
  }
  func.func @transform_2(%arg0: i32, %arg1: i32, %arg2: i32) -> (i32, i32) {
    %c0_i32 = arith.constant 0 : i32
    %c0_i32_0 = arith.constant 0 : i32
    return %c0_i32, %arg1 : i32, i32
  }
  func.func @transform_3(%arg0: i32, %arg1: i32, %arg2: i32) -> (i32, i32) {
    %c0_i32 = arith.constant 0 : i32
    %c0_i32_0 = arith.constant 0 : i32
    return %c0_i32, %arg1 : i32, i32
  }
  func.func @transform_4(%arg0: i32, %arg1: i32, %arg2: i32) -> (i32, i32) {
    %c0_i32 = arith.constant 0 : i32
    return %arg0, %arg1 : i32, i32
  }
}

module attributes {stable_mosaic.version = 11 : i64} {
  func.func @_dense_kernel(%arg0: i32, %arg1: i32, %arg2: i32, %arg3: memref<8x128xbf16, #tpu.memory_space<vmem>>, %arg4: memref<128x128xbf16, #tpu.memory_space<vmem>>, %arg5: memref<1x128xf32, #tpu.memory_space<vmem>>, %arg6: memref<1x128xf32, #tpu.memory_space<vmem>>, %arg7: memref<8x128xbf16, #tpu.memory_space<vmem>>, %arg8: memref<8x128xf32, #tpu.memory_space<vmem>>) attributes {dimension_semantics = [#tpu.dimension_semantics<parallel>, #tpu.dimension_semantics<parallel>, #tpu.dimension_semantics<arbitrary>], iteration_bounds = array<i64: 1, 1, 1>, scalar_prefetch = 0 : i64, scratch_operands = 1 : i64, tpu.core_type = #tpu.core_type<tc>, window_params = [{transform_indices = @transform_0, window_bounds = array<i64: 8, 128>}, {transform_indices = @transform_1, window_bounds = array<i64: 128, 128>}, {transform_indices = @transform_2, window_bounds = array<i64: 1, 128>}, {transform_indices = @transform_3, window_bounds = array<i64: 1, 128>}, {transform_indices = @transform_4, window_bounds = array<i64: 8, 128>}]} {
    %c0_i32 = arith.constant 0 : i32
    %0 = arith.cmpi eq, %arg2, %c0_i32 : i32
    %1 = arith.extui %0 : i1 to i32
    %c0_i32_0 = arith.constant 0 : i32
    %2 = arith.cmpi ne, %1, %c0_i32_0 : i32
    scf.if %2 {
      %cst_10 = arith.constant 0.000000e+00 : f32
      %12 = vector.broadcast %cst_10 : f32 to vector<8x128xf32>
      %c0_11 = arith.constant 0 : index
      %c0_12 = arith.constant 0 : index
      %13 = vector.load %arg8[%c0_11, %c0_12] : memref<8x128xf32, #tpu.memory_space<vmem>>, vector<8x128xf32>
      tpu.vector_store %arg8[%c0_11, %c0_12], %12 {strides = array<i32>} : memref<8x128xf32, #tpu.memory_space<vmem>>, vector<8x128xf32>,
    } else {
    }
    %c0 = arith.constant 0 : index
    %c0_1 = arith.constant 0 : index
    %3 = vector.load %arg8[%c0, %c0_1] : memref<8x128xf32, #tpu.memory_space<vmem>>, vector<8x128xf32>
    %c0_2 = arith.constant 0 : index
    %c0_3 = arith.constant 0 : index
    %4 = vector.load %arg3[%c0_2, %c0_3] : memref<8x128xbf16, #tpu.memory_space<vmem>>, vector<8x128xbf16>
    %c0_4 = arith.constant 0 : index
    %c0_5 = arith.constant 0 : index
    %5 = vector.load %arg4[%c0_4, %c0_5] : memref<128x128xbf16, #tpu.memory_space<vmem>>, vector<128x128xbf16>
    %cst = arith.constant dense<0.000000e+00> : vector<8x128xf32>
    %6 = tpu.matmul %4, %5, %cst {dimension_numbers = #tpu.dot_dimension_numbers<[1], [0], [0], [1], [0, 0, 1, 1], [], []>} : vector<8x128xbf16>, vector<128x128xbf16>, vector<8x128xf32> -> vector<8x128xf32>
    %7 = arith.addf %3, %6 : vector<8x128xf32>
    %c0_6 = arith.constant 0 : index
    %c0_7 = arith.constant 0 : index
    %8 = vector.load %arg8[%c0_6, %c0_7] : memref<8x128xf32, #tpu.memory_space<vmem>>, vector<8x128xf32>
    tpu.vector_store %arg8[%c0_6, %c0_7], %7 {strides = array<i32>} : memref<8x128xf32, #tpu.memory_space<vmem>>, vector<8x128xf32>,
    %c0_i32_8 = arith.constant 0 : i32
    %9 = arith.cmpi eq, %arg2, %c0_i32_8 : i32
    %10 = arith.extui %9 : i1 to i32
    %c0_i32_9 = arith.constant 0 : i32
    %11 = arith.cmpi ne, %10, %c0_i32_9 : i32
    scf.if %11 {
      %c0_10 = arith.constant 0 : index
      %c0_11 = arith.constant 0 : index
      %12 = vector.load %arg8[%c0_10, %c0_11] : memref<8x128xf32, #tpu.memory_space<vmem>>, vector<8x128xf32>
      %c0_12 = arith.constant 0 : index
      %c0_13 = arith.constant 0 : index
      %13 = vector.load %arg5[%c0_12, %c0_13] : memref<1x128xf32, #tpu.memory_space<vmem>>, vector<1x128xf32>
      %14 = vector.broadcast %13 : vector<1x128xf32> to vector<8x128xf32>
      %15 = arith.mulf %12, %14 : vector<8x128xf32>
      %c0_14 = arith.constant 0 : index
      %c0_15 = arith.constant 0 : index
      %16 = vector.load %arg6[%c0_14, %c0_15] : memref<1x128xf32, #tpu.memory_space<vmem>>, vector<1x128xf32>
      %17 = vector.broadcast %16 : vector<1x128xf32> to vector<8x128xf32>
      %18 = arith.addf %15, %17 : vector<8x128xf32>
      %19 = arith.truncf %18 : vector<8x128xf32> to vector<8x128xbf16>
      %c0_16 = arith.constant 0 : index
      %c0_17 = arith.constant 0 : index
      %20 = vector.load %arg7[%c0_16, %c0_17] : memref<8x128xbf16, #tpu.memory_space<vmem>>, vector<8x128xbf16>
      tpu.vector_store %arg7[%c0_16, %c0_17], %19 {strides = array<i32>} : memref<8x128xbf16, #tpu.memory_space<vmem>>, vector<8x128xbf16>,
    } else {
    }
    return
  }
  func.func @transform_0(%arg0: i32, %arg1: i32, %arg2: i32) -> (i32, i32) {
    %c0_i32 = arith.constant 0 : i32
    return %arg0, %arg2 : i32, i32
  }
  func.func @transform_1(%arg0: i32, %arg1: i32, %arg2: i32) -> (i32, i32) {
    %c0_i32 = arith.constant 0 : i32
    return %arg2, %arg1 : i32, i32
  }
  func.func @transform_2(%arg0: i32, %arg1: i32, %arg2: i32) -> (i32, i32) {
    %c0_i32 = arith.constant 0 : i32
    %c0_i32_0 = arith.constant 0 : i32
    return %c0_i32, %arg1 : i32, i32
  }
  func.func @transform_3(%arg0: i32, %arg1: i32, %arg2: i32) -> (i32, i32) {
    %c0_i32 = arith.constant 0 : i32
    %c0_i32_0 = arith.constant 0 : i32
    return %c0_i32, %arg1 : i32, i32
  }
  func.func @transform_4(%arg0: i32, %arg1: i32, %arg2: i32) -> (i32, i32) {
    %c0_i32 = arith.constant 0 : i32
    return %arg0, %arg1 : i32, i32
  }
}

module attributes {stable_mosaic.version = 11 : i64} {
  func.func @_dense_kernel(%arg0: i32, %arg1: i32, %arg2: i32, %arg3: memref<8x640xbf16, #tpu.memory_space<vmem>>, %arg4: memref<640x128xbf16, #tpu.memory_space<vmem>>, %arg5: memref<1x128xf32, #tpu.memory_space<vmem>>, %arg6: memref<1x128xf32, #tpu.memory_space<vmem>>, %arg7: memref<8x128xbf16, #tpu.memory_space<vmem>>, %arg8: memref<8x128xf32, #tpu.memory_space<vmem>>) attributes {dimension_semantics = [#tpu.dimension_semantics<parallel>, #tpu.dimension_semantics<parallel>, #tpu.dimension_semantics<arbitrary>], iteration_bounds = array<i64: 1, 1, 1>, scalar_prefetch = 0 : i64, scratch_operands = 1 : i64, tpu.core_type = #tpu.core_type<tc>, window_params = [{transform_indices = @transform_0, window_bounds = array<i64: 8, 640>}, {transform_indices = @transform_1, window_bounds = array<i64: 640, 128>}, {transform_indices = @transform_2, window_bounds = array<i64: 1, 128>}, {transform_indices = @transform_3, window_bounds = array<i64: 1, 128>}, {transform_indices = @transform_4, window_bounds = array<i64: 8, 128>}]} {
    %c0_i32 = arith.constant 0 : i32
    %0 = arith.cmpi eq, %arg2, %c0_i32 : i32
    %1 = arith.extui %0 : i1 to i32
    %c0_i32_0 = arith.constant 0 : i32
    %2 = arith.cmpi ne, %1, %c0_i32_0 : i32
    scf.if %2 {
      %cst_10 = arith.constant 0.000000e+00 : f32
      %12 = vector.broadcast %cst_10 : f32 to vector<8x128xf32>
      %c0_11 = arith.constant 0 : index
      %c0_12 = arith.constant 0 : index
      %13 = vector.load %arg8[%c0_11, %c0_12] : memref<8x128xf32, #tpu.memory_space<vmem>>, vector<8x128xf32>
      tpu.vector_store %arg8[%c0_11, %c0_12], %12 {strides = array<i32>} : memref<8x128xf32, #tpu.memory_space<vmem>>, vector<8x128xf32>,
    } else {
    }
    %c0 = arith.constant 0 : index
    %c0_1 = arith.constant 0 : index
    %3 = vector.load %arg8[%c0, %c0_1] : memref<8x128xf32, #tpu.memory_space<vmem>>, vector<8x128xf32>
    %c0_2 = arith.constant 0 : index
    %c0_3 = arith.constant 0 : index
    %4 = vector.load %arg3[%c0_2, %c0_3] : memref<8x640xbf16, #tpu.memory_space<vmem>>, vector<8x640xbf16>
    %c0_4 = arith.constant 0 : index
    %c0_5 = arith.constant 0 : index
    %5 = vector.load %arg4[%c0_4, %c0_5] : memref<640x128xbf16, #tpu.memory_space<vmem>>, vector<640x128xbf16>
    %cst = arith.constant dense<0.000000e+00> : vector<8x128xf32>
    %6 = tpu.matmul %4, %5, %cst {dimension_numbers = #tpu.dot_dimension_numbers<[1], [0], [0], [1], [0, 0, 1, 1], [], []>} : vector<8x640xbf16>, vector<640x128xbf16>, vector<8x128xf32> -> vector<8x128xf32>
    %7 = arith.addf %3, %6 : vector<8x128xf32>
    %c0_6 = arith.constant 0 : index
    %c0_7 = arith.constant 0 : index
    %8 = vector.load %arg8[%c0_6, %c0_7] : memref<8x128xf32, #tpu.memory_space<vmem>>, vector<8x128xf32>
    tpu.vector_store %arg8[%c0_6, %c0_7], %7 {strides = array<i32>} : memref<8x128xf32, #tpu.memory_space<vmem>>, vector<8x128xf32>,
    %c0_i32_8 = arith.constant 0 : i32
    %9 = arith.cmpi eq, %arg2, %c0_i32_8 : i32
    %10 = arith.extui %9 : i1 to i32
    %c0_i32_9 = arith.constant 0 : i32
    %11 = arith.cmpi ne, %10, %c0_i32_9 : i32
    scf.if %11 {
      %c0_10 = arith.constant 0 : index
      %c0_11 = arith.constant 0 : index
      %12 = vector.load %arg8[%c0_10, %c0_11] : memref<8x128xf32, #tpu.memory_space<vmem>>, vector<8x128xf32>
      %c0_12 = arith.constant 0 : index
      %c0_13 = arith.constant 0 : index
      %13 = vector.load %arg5[%c0_12, %c0_13] : memref<1x128xf32, #tpu.memory_space<vmem>>, vector<1x128xf32>
      %14 = vector.broadcast %13 : vector<1x128xf32> to vector<8x128xf32>
      %15 = arith.mulf %12, %14 : vector<8x128xf32>
      %c0_14 = arith.constant 0 : index
      %c0_15 = arith.constant 0 : index
      %16 = vector.load %arg6[%c0_14, %c0_15] : memref<1x128xf32, #tpu.memory_space<vmem>>, vector<1x128xf32>
      %17 = vector.broadcast %16 : vector<1x128xf32> to vector<8x128xf32>
      %18 = arith.addf %15, %17 : vector<8x128xf32>
      %cst_16 = arith.constant 0.000000e+00 : f32
      %19 = vector.broadcast %cst_16 : f32 to vector<8x128xf32>
      %20 = arith.maximumf %18, %19 : vector<8x128xf32>
      %21 = arith.truncf %20 : vector<8x128xf32> to vector<8x128xbf16>
      %c0_17 = arith.constant 0 : index
      %c0_18 = arith.constant 0 : index
      %22 = vector.load %arg7[%c0_17, %c0_18] : memref<8x128xbf16, #tpu.memory_space<vmem>>, vector<8x128xbf16>
      tpu.vector_store %arg7[%c0_17, %c0_18], %21 {strides = array<i32>} : memref<8x128xbf16, #tpu.memory_space<vmem>>, vector<8x128xbf16>,
    } else {
    }
    return
  }
  func.func @transform_0(%arg0: i32, %arg1: i32, %arg2: i32) -> (i32, i32) {
    %c0_i32 = arith.constant 0 : i32
    return %arg0, %arg2 : i32, i32
  }
  func.func @transform_1(%arg0: i32, %arg1: i32, %arg2: i32) -> (i32, i32) {
    %c0_i32 = arith.constant 0 : i32
    return %arg2, %arg1 : i32, i32
  }
  func.func @transform_2(%arg0: i32, %arg1: i32, %arg2: i32) -> (i32, i32) {
    %c0_i32 = arith.constant 0 : i32
    %c0_i32_0 = arith.constant 0 : i32
    return %c0_i32, %arg1 : i32, i32
  }
  func.func @transform_3(%arg0: i32, %arg1: i32, %arg2: i32) -> (i32, i32) {
    %c0_i32 = arith.constant 0 : i32
    %c0_i32_0 = arith.constant 0 : i32
    return %c0_i32, %arg1 : i32, i32
  }
  func.func @transform_4(%arg0: i32, %arg1: i32, %arg2: i32) -> (i32, i32) {
    %c0_i32 = arith.constant 0 : i32
    return %arg0, %arg1 : i32, i32
  }
}

module attributes {stable_mosaic.version = 11 : i64} {
  func.func @_dense_kernel(%arg0: i32, %arg1: i32, %arg2: i32, %arg3: memref<8x128xbf16, #tpu.memory_space<vmem>>, %arg4: memref<128x128xbf16, #tpu.memory_space<vmem>>, %arg5: memref<1x128xf32, #tpu.memory_space<vmem>>, %arg6: memref<1x128xf32, #tpu.memory_space<vmem>>, %arg7: memref<8x128xbf16, #tpu.memory_space<vmem>>, %arg8: memref<8x128xbf16, #tpu.memory_space<vmem>>, %arg9: memref<8x128xf32, #tpu.memory_space<vmem>>) attributes {dimension_semantics = [#tpu.dimension_semantics<parallel>, #tpu.dimension_semantics<parallel>, #tpu.dimension_semantics<arbitrary>], iteration_bounds = array<i64: 1, 1, 1>, scalar_prefetch = 0 : i64, scratch_operands = 1 : i64, tpu.core_type = #tpu.core_type<tc>, window_params = [{transform_indices = @transform_0, window_bounds = array<i64: 8, 128>}, {transform_indices = @transform_1, window_bounds = array<i64: 128, 128>}, {transform_indices = @transform_2, window_bounds = array<i64: 1, 128>}, {transform_indices = @transform_3, window_bounds = array<i64: 1, 128>}, {transform_indices = @transform_4, window_bounds = array<i64: 8, 128>}, {transform_indices = @transform_5, window_bounds = array<i64: 8, 128>}]} {
    %c0_i32 = arith.constant 0 : i32
    %0 = arith.cmpi eq, %arg2, %c0_i32 : i32
    %1 = arith.extui %0 : i1 to i32
    %c0_i32_0 = arith.constant 0 : i32
    %2 = arith.cmpi ne, %1, %c0_i32_0 : i32
    scf.if %2 {
      %cst_10 = arith.constant 0.000000e+00 : f32
      %12 = vector.broadcast %cst_10 : f32 to vector<8x128xf32>
      %c0_11 = arith.constant 0 : index
      %c0_12 = arith.constant 0 : index
      %13 = vector.load %arg9[%c0_11, %c0_12] : memref<8x128xf32, #tpu.memory_space<vmem>>, vector<8x128xf32>
      tpu.vector_store %arg9[%c0_11, %c0_12], %12 {strides = array<i32>} : memref<8x128xf32, #tpu.memory_space<vmem>>, vector<8x128xf32>,
    } else {
    }
    %c0 = arith.constant 0 : index
    %c0_1 = arith.constant 0 : index
    %3 = vector.load %arg9[%c0, %c0_1] : memref<8x128xf32, #tpu.memory_space<vmem>>, vector<8x128xf32>
    %c0_2 = arith.constant 0 : index
    %c0_3 = arith.constant 0 : index
    %4 = vector.load %arg3[%c0_2, %c0_3] : memref<8x128xbf16, #tpu.memory_space<vmem>>, vector<8x128xbf16>
    %c0_4 = arith.constant 0 : index
    %c0_5 = arith.constant 0 : index
    %5 = vector.load %arg4[%c0_4, %c0_5] : memref<128x128xbf16, #tpu.memory_space<vmem>>, vector<128x128xbf16>
    %cst = arith.constant dense<0.000000e+00> : vector<8x128xf32>
    %6 = tpu.matmul %4, %5, %cst {dimension_numbers = #tpu.dot_dimension_numbers<[1], [0], [0], [1], [0, 0, 1, 1], [], []>} : vector<8x128xbf16>, vector<128x128xbf16>, vector<8x128xf32> -> vector<8x128xf32>
    %7 = arith.addf %3, %6 : vector<8x128xf32>
    %c0_6 = arith.constant 0 : index
    %c0_7 = arith.constant 0 : index
    %8 = vector.load %arg9[%c0_6, %c0_7] : memref<8x128xf32, #tpu.memory_space<vmem>>, vector<8x128xf32>
    tpu.vector_store %arg9[%c0_6, %c0_7], %7 {strides = array<i32>} : memref<8x128xf32, #tpu.memory_space<vmem>>, vector<8x128xf32>,
    %c0_i32_8 = arith.constant 0 : i32
    %9 = arith.cmpi eq, %arg2, %c0_i32_8 : i32
    %10 = arith.extui %9 : i1 to i32
    %c0_i32_9 = arith.constant 0 : i32
    %11 = arith.cmpi ne, %10, %c0_i32_9 : i32
    scf.if %11 {
      %c0_10 = arith.constant 0 : index
      %c0_11 = arith.constant 0 : index
      %12 = vector.load %arg9[%c0_10, %c0_11] : memref<8x128xf32, #tpu.memory_space<vmem>>, vector<8x128xf32>
      %c0_12 = arith.constant 0 : index
      %c0_13 = arith.constant 0 : index
      %13 = vector.load %arg5[%c0_12, %c0_13] : memref<1x128xf32, #tpu.memory_space<vmem>>, vector<1x128xf32>
      %14 = vector.broadcast %13 : vector<1x128xf32> to vector<8x128xf32>
      %15 = arith.mulf %12, %14 : vector<8x128xf32>
      %c0_14 = arith.constant 0 : index
      %c0_15 = arith.constant 0 : index
      %16 = vector.load %arg6[%c0_14, %c0_15] : memref<1x128xf32, #tpu.memory_space<vmem>>, vector<1x128xf32>
      %17 = vector.broadcast %16 : vector<1x128xf32> to vector<8x128xf32>
      %18 = arith.addf %15, %17 : vector<8x128xf32>
      %c0_16 = arith.constant 0 : index
      %c0_17 = arith.constant 0 : index
      %19 = vector.load %arg7[%c0_16, %c0_17] : memref<8x128xbf16, #tpu.memory_space<vmem>>, vector<8x128xbf16>
      %20 = arith.extf %19 : vector<8x128xbf16> to vector<8x128xf32>
      %21 = arith.addf %18, %20 : vector<8x128xf32>
      %cst_18 = arith.constant 0.000000e+00 : f32
      %22 = vector.broadcast %cst_18 : f32 to vector<8x128xf32>
      %23 = arith.maximumf %21, %22 : vector<8x128xf32>
      %24 = arith.truncf %23 : vector<8x128xf32> to vector<8x128xbf16>
      %c0_19 = arith.constant 0 : index
      %c0_20 = arith.constant 0 : index
      %25 = vector.load %arg8[%c0_19, %c0_20] : memref<8x128xbf16, #tpu.memory_space<vmem>>, vector<8x128xbf16>
      tpu.vector_store %arg8[%c0_19, %c0_20], %24 {strides = array<i32>} : memref<8x128xbf16, #tpu.memory_space<vmem>>, vector<8x128xbf16>,
    } else {
    }
    return
  }
  func.func @transform_0(%arg0: i32, %arg1: i32, %arg2: i32) -> (i32, i32) {
    %c0_i32 = arith.constant 0 : i32
    return %arg0, %arg2 : i32, i32
  }
  func.func @transform_1(%arg0: i32, %arg1: i32, %arg2: i32) -> (i32, i32) {
    %c0_i32 = arith.constant 0 : i32
    return %arg2, %arg1 : i32, i32
  }
  func.func @transform_2(%arg0: i32, %arg1: i32, %arg2: i32) -> (i32, i32) {
    %c0_i32 = arith.constant 0 : i32
    %c0_i32_0 = arith.constant 0 : i32
    return %c0_i32, %arg1 : i32, i32
  }
  func.func @transform_3(%arg0: i32, %arg1: i32, %arg2: i32) -> (i32, i32) {
    %c0_i32 = arith.constant 0 : i32
    %c0_i32_0 = arith.constant 0 : i32
    return %c0_i32, %arg1 : i32, i32
  }
  func.func @transform_4(%arg0: i32, %arg1: i32, %arg2: i32) -> (i32, i32) {
    %c0_i32 = arith.constant 0 : i32
    return %arg0, %arg1 : i32, i32
  }
  func.func @transform_5(%arg0: i32, %arg1: i32, %arg2: i32) -> (i32, i32) {
    %c0_i32 = arith.constant 0 : i32
    return %arg0, %arg1 : i32, i32
  }
}

module attributes {stable_mosaic.version = 11 : i64} {
  func.func @_dense_kernel(%arg0: i32, %arg1: i32, %arg2: i32, %arg3: memref<2x128xbf16, #tpu.memory_space<vmem>>, %arg4: memref<128x256xbf16, #tpu.memory_space<vmem>>, %arg5: memref<1x256xf32, #tpu.memory_space<vmem>>, %arg6: memref<1x256xf32, #tpu.memory_space<vmem>>, %arg7: memref<2x256xbf16, #tpu.memory_space<vmem>>, %arg8: memref<2x256xf32, #tpu.memory_space<vmem>>) attributes {dimension_semantics = [#tpu.dimension_semantics<parallel>, #tpu.dimension_semantics<parallel>, #tpu.dimension_semantics<arbitrary>], iteration_bounds = array<i64: 1, 4, 1>, scalar_prefetch = 0 : i64, scratch_operands = 1 : i64, tpu.core_type = #tpu.core_type<tc>, window_params = [{transform_indices = @transform_0, window_bounds = array<i64: 2, 128>}, {transform_indices = @transform_1, window_bounds = array<i64: 128, 256>}, {transform_indices = @transform_2, window_bounds = array<i64: 1, 256>}, {transform_indices = @transform_3, window_bounds = array<i64: 1, 256>}, {transform_indices = @transform_4, window_bounds = array<i64: 2, 256>}]} {
    %c0_i32 = arith.constant 0 : i32
    %0 = arith.cmpi eq, %arg2, %c0_i32 : i32
    %1 = arith.extui %0 : i1 to i32
    %c0_i32_0 = arith.constant 0 : i32
    %2 = arith.cmpi ne, %1, %c0_i32_0 : i32
    scf.if %2 {
      %cst_10 = arith.constant 0.000000e+00 : f32
      %12 = vector.broadcast %cst_10 : f32 to vector<2x256xf32>
      %c0_11 = arith.constant 0 : index
      %c0_12 = arith.constant 0 : index
      %13 = vector.load %arg8[%c0_11, %c0_12] : memref<2x256xf32, #tpu.memory_space<vmem>>, vector<2x256xf32>
      tpu.vector_store %arg8[%c0_11, %c0_12], %12 {strides = array<i32>} : memref<2x256xf32, #tpu.memory_space<vmem>>, vector<2x256xf32>,
    } else {
    }
    %c0 = arith.constant 0 : index
    %c0_1 = arith.constant 0 : index
    %3 = vector.load %arg8[%c0, %c0_1] : memref<2x256xf32, #tpu.memory_space<vmem>>, vector<2x256xf32>
    %c0_2 = arith.constant 0 : index
    %c0_3 = arith.constant 0 : index
    %4 = vector.load %arg3[%c0_2, %c0_3] : memref<2x128xbf16, #tpu.memory_space<vmem>>, vector<2x128xbf16>
    %c0_4 = arith.constant 0 : index
    %c0_5 = arith.constant 0 : index
    %5 = vector.load %arg4[%c0_4, %c0_5] : memref<128x256xbf16, #tpu.memory_space<vmem>>, vector<128x256xbf16>
    %cst = arith.constant dense<0.000000e+00> : vector<2x256xf32>
    %6 = tpu.matmul %4, %5, %cst {dimension_numbers = #tpu.dot_dimension_numbers<[1], [0], [0], [1], [0, 0, 1, 1], [], []>} : vector<2x128xbf16>, vector<128x256xbf16>, vector<2x256xf32> -> vector<2x256xf32>
    %7 = arith.addf %3, %6 : vector<2x256xf32>
    %c0_6 = arith.constant 0 : index
    %c0_7 = arith.constant 0 : index
    %8 = vector.load %arg8[%c0_6, %c0_7] : memref<2x256xf32, #tpu.memory_space<vmem>>, vector<2x256xf32>
    tpu.vector_store %arg8[%c0_6, %c0_7], %7 {strides = array<i32>} : memref<2x256xf32, #tpu.memory_space<vmem>>, vector<2x256xf32>,
    %c0_i32_8 = arith.constant 0 : i32
    %9 = arith.cmpi eq, %arg2, %c0_i32_8 : i32
    %10 = arith.extui %9 : i1 to i32
    %c0_i32_9 = arith.constant 0 : i32
    %11 = arith.cmpi ne, %10, %c0_i32_9 : i32
    scf.if %11 {
      %c0_10 = arith.constant 0 : index
      %c0_11 = arith.constant 0 : index
      %12 = vector.load %arg8[%c0_10, %c0_11] : memref<2x256xf32, #tpu.memory_space<vmem>>, vector<2x256xf32>
      %c0_12 = arith.constant 0 : index
      %c0_13 = arith.constant 0 : index
      %13 = vector.load %arg5[%c0_12, %c0_13] : memref<1x256xf32, #tpu.memory_space<vmem>>, vector<1x256xf32>
      %14 = vector.broadcast %13 : vector<1x256xf32> to vector<2x256xf32>
      %15 = arith.mulf %12, %14 : vector<2x256xf32>
      %c0_14 = arith.constant 0 : index
      %c0_15 = arith.constant 0 : index
      %16 = vector.load %arg6[%c0_14, %c0_15] : memref<1x256xf32, #tpu.memory_space<vmem>>, vector<1x256xf32>
      %17 = vector.broadcast %16 : vector<1x256xf32> to vector<2x256xf32>
      %18 = arith.addf %15, %17 : vector<2x256xf32>
      %19 = arith.truncf %18 : vector<2x256xf32> to vector<2x256xbf16>
      %c0_16 = arith.constant 0 : index
      %c0_17 = arith.constant 0 : index
      %20 = vector.load %arg7[%c0_16, %c0_17] : memref<2x256xbf16, #tpu.memory_space<vmem>>, vector<2x256xbf16>
      tpu.vector_store %arg7[%c0_16, %c0_17], %19 {strides = array<i32>} : memref<2x256xbf16, #tpu.memory_space<vmem>>, vector<2x256xbf16>,
    } else {
    }
    return
  }
  func.func @transform_0(%arg0: i32, %arg1: i32, %arg2: i32) -> (i32, i32) {
    %c0_i32 = arith.constant 0 : i32
    return %arg0, %arg2 : i32, i32
  }
  func.func @transform_1(%arg0: i32, %arg1: i32, %arg2: i32) -> (i32, i32) {
    %c0_i32 = arith.constant 0 : i32
    return %arg2, %arg1 : i32, i32
  }
  func.func @transform_2(%arg0: i32, %arg1: i32, %arg2: i32) -> (i32, i32) {
    %c0_i32 = arith.constant 0 : i32
    %c0_i32_0 = arith.constant 0 : i32
    return %c0_i32, %arg1 : i32, i32
  }
  func.func @transform_3(%arg0: i32, %arg1: i32, %arg2: i32) -> (i32, i32) {
    %c0_i32 = arith.constant 0 : i32
    %c0_i32_0 = arith.constant 0 : i32
    return %c0_i32, %arg1 : i32, i32
  }
  func.func @transform_4(%arg0: i32, %arg1: i32, %arg2: i32) -> (i32, i32) {
    %c0_i32 = arith.constant 0 : i32
    return %arg0, %arg1 : i32, i32
  }
}

module attributes {stable_mosaic.version = 11 : i64} {
  func.func @_dense_kernel(%arg0: i32, %arg1: i32, %arg2: i32, %arg3: memref<2x1024xbf16, #tpu.memory_space<vmem>>, %arg4: memref<1024x256xbf16, #tpu.memory_space<vmem>>, %arg5: memref<1x256xf32, #tpu.memory_space<vmem>>, %arg6: memref<2x256xbf16, #tpu.memory_space<vmem>>, %arg7: memref<2x256xf32, #tpu.memory_space<vmem>>) attributes {dimension_semantics = [#tpu.dimension_semantics<parallel>, #tpu.dimension_semantics<parallel>, #tpu.dimension_semantics<arbitrary>], iteration_bounds = array<i64: 1, 3, 1>, scalar_prefetch = 0 : i64, scratch_operands = 1 : i64, tpu.core_type = #tpu.core_type<tc>, window_params = [{transform_indices = @transform_0, window_bounds = array<i64: 2, 1024>}, {transform_indices = @transform_1, window_bounds = array<i64: 1024, 256>}, {transform_indices = @transform_2, window_bounds = array<i64: 1, 256>}, {transform_indices = @transform_3, window_bounds = array<i64: 2, 256>}]} {
    %c0_i32 = arith.constant 0 : i32
    %0 = arith.cmpi eq, %arg2, %c0_i32 : i32
    %1 = arith.extui %0 : i1 to i32
    %c0_i32_0 = arith.constant 0 : i32
    %2 = arith.cmpi ne, %1, %c0_i32_0 : i32
    scf.if %2 {
      %cst_10 = arith.constant 0.000000e+00 : f32
      %12 = vector.broadcast %cst_10 : f32 to vector<2x256xf32>
      %c0_11 = arith.constant 0 : index
      %c0_12 = arith.constant 0 : index
      %13 = vector.load %arg7[%c0_11, %c0_12] : memref<2x256xf32, #tpu.memory_space<vmem>>, vector<2x256xf32>
      tpu.vector_store %arg7[%c0_11, %c0_12], %12 {strides = array<i32>} : memref<2x256xf32, #tpu.memory_space<vmem>>, vector<2x256xf32>,
    } else {
    }
    %c0 = arith.constant 0 : index
    %c0_1 = arith.constant 0 : index
    %3 = vector.load %arg7[%c0, %c0_1] : memref<2x256xf32, #tpu.memory_space<vmem>>, vector<2x256xf32>
    %c0_2 = arith.constant 0 : index
    %c0_3 = arith.constant 0 : index
    %4 = vector.load %arg3[%c0_2, %c0_3] : memref<2x1024xbf16, #tpu.memory_space<vmem>>, vector<2x1024xbf16>
    %c0_4 = arith.constant 0 : index
    %c0_5 = arith.constant 0 : index
    %5 = vector.load %arg4[%c0_4, %c0_5] : memref<1024x256xbf16, #tpu.memory_space<vmem>>, vector<1024x256xbf16>
    %cst = arith.constant dense<0.000000e+00> : vector<2x256xf32>
    %6 = tpu.matmul %4, %5, %cst {dimension_numbers = #tpu.dot_dimension_numbers<[1], [0], [0], [1], [0, 0, 1, 1], [], []>} : vector<2x1024xbf16>, vector<1024x256xbf16>, vector<2x256xf32> -> vector<2x256xf32>
    %7 = arith.addf %3, %6 : vector<2x256xf32>
    %c0_6 = arith.constant 0 : index
    %c0_7 = arith.constant 0 : index
    %8 = vector.load %arg7[%c0_6, %c0_7] : memref<2x256xf32, #tpu.memory_space<vmem>>, vector<2x256xf32>
    tpu.vector_store %arg7[%c0_6, %c0_7], %7 {strides = array<i32>} : memref<2x256xf32, #tpu.memory_space<vmem>>, vector<2x256xf32>,
    %c0_i32_8 = arith.constant 0 : i32
    %9 = arith.cmpi eq, %arg2, %c0_i32_8 : i32
    %10 = arith.extui %9 : i1 to i32
    %c0_i32_9 = arith.constant 0 : i32
    %11 = arith.cmpi ne, %10, %c0_i32_9 : i32
    scf.if %11 {
      %c0_10 = arith.constant 0 : index
      %c0_11 = arith.constant 0 : index
      %12 = vector.load %arg7[%c0_10, %c0_11] : memref<2x256xf32, #tpu.memory_space<vmem>>, vector<2x256xf32>
      %c0_12 = arith.constant 0 : index
      %c0_13 = arith.constant 0 : index
      %13 = vector.load %arg5[%c0_12, %c0_13] : memref<1x256xf32, #tpu.memory_space<vmem>>, vector<1x256xf32>
      %14 = vector.broadcast %13 : vector<1x256xf32> to vector<2x256xf32>
      %15 = arith.addf %12, %14 : vector<2x256xf32>
      %16 = arith.truncf %15 : vector<2x256xf32> to vector<2x256xbf16>
      %c0_14 = arith.constant 0 : index
      %c0_15 = arith.constant 0 : index
      %17 = vector.load %arg6[%c0_14, %c0_15] : memref<2x256xbf16, #tpu.memory_space<vmem>>, vector<2x256xbf16>
      tpu.vector_store %arg6[%c0_14, %c0_15], %16 {strides = array<i32>} : memref<2x256xbf16, #tpu.memory_space<vmem>>, vector<2x256xbf16>,
    } else {
    }
    return
  }
  func.func @transform_0(%arg0: i32, %arg1: i32, %arg2: i32) -> (i32, i32) {
    %c0_i32 = arith.constant 0 : i32
    return %arg0, %arg2 : i32, i32
  }
  func.func @transform_1(%arg0: i32, %arg1: i32, %arg2: i32) -> (i32, i32) {
    %c0_i32 = arith.constant 0 : i32
    return %arg2, %arg1 : i32, i32
  }
  func.func @transform_2(%arg0: i32, %arg1: i32, %arg2: i32) -> (i32, i32) {
    %c0_i32 = arith.constant 0 : i32
    %c0_i32_0 = arith.constant 0 : i32
    return %c0_i32, %arg1 : i32, i32
  }
  func.func @transform_3(%arg0: i32, %arg1: i32, %arg2: i32) -> (i32, i32) {
    %c0_i32 = arith.constant 0 : i32
    return %arg0, %arg1 : i32, i32
  }
}

module attributes {stable_mosaic.version = 11 : i64} {
  func.func @_attn_kernel(%arg0: memref<8x2x32xbf16, #tpu.memory_space<vmem>>, %arg1: memref<8x2x32xbf16, #tpu.memory_space<vmem>>, %arg2: memref<8x2x32xbf16, #tpu.memory_space<vmem>>, %arg3: memref<8x2x32xbf16, #tpu.memory_space<vmem>>) attributes {dimension_semantics = [], scalar_prefetch = 0 : i64, scratch_operands = 0 : i64, tpu.core_type = #tpu.core_type<tc>} {
    %c0 = arith.constant 0 : index
    %c0_0 = arith.constant 0 : index
    %c0_1 = arith.constant 0 : index
    %0 = vector.load %arg0[%c0, %c0_0, %c0_1] : memref<8x2x32xbf16, #tpu.memory_space<vmem>>, vector<8x2x32xbf16>
    %c0_2 = arith.constant 0 : index
    %c0_3 = arith.constant 0 : index
    %c0_4 = arith.constant 0 : index
    %1 = vector.load %arg1[%c0_2, %c0_3, %c0_4] : memref<8x2x32xbf16, #tpu.memory_space<vmem>>, vector<8x2x32xbf16>
    %c0_5 = arith.constant 0 : index
    %c0_6 = arith.constant 0 : index
    %c0_7 = arith.constant 0 : index
    %2 = vector.load %arg2[%c0_5, %c0_6, %c0_7] : memref<8x2x32xbf16, #tpu.memory_space<vmem>>, vector<8x2x32xbf16>
    %cst = arith.constant dense<0.000000e+00> : vector<8x2x2xf32>
    %3 = tpu.matmul %0, %1, %cst {dimension_numbers = #tpu.dot_dimension_numbers<[2], [2], [1], [1], [0, 0, 0, 1, 1, 1], [0], [0]>} : vector<8x2x32xbf16>, vector<8x2x32xbf16>, vector<8x2x2xf32> -> vector<8x2x2xf32>
    %cst_8 = arith.constant dense<0xFF800000> : vector<8x2xf32>
    %4 = vector.multi_reduction <maximumf>, %3, %cst_8 [2] : vector<8x2x2xf32> to vector<8x2xf32>
    %5 = vector.shape_cast %4 : vector<8x2xf32> to vector<8x2x1xf32>
    %6 = vector.broadcast %5 : vector<8x2x1xf32> to vector<8x2x2xf32>
    %7 = arith.subf %3, %6 : vector<8x2x2xf32>
    %8 = math.exp %7 : vector<8x2x2xf32>
    %cst_9 = arith.constant dense<0.000000e+00> : vector<8x2xf32>
    %9 = vector.multi_reduction <add>, %8, %cst_9 [2] : vector<8x2x2xf32> to vector<8x2xf32>
    %10 = vector.shape_cast %9 : vector<8x2xf32> to vector<8x2x1xf32>
    %11 = arith.truncf %8 : vector<8x2x2xf32> to vector<8x2x2xbf16>
    %cst_10 = arith.constant dense<0.000000e+00> : vector<8x2x32xf32>
    %12 = tpu.matmul %11, %2, %cst_10 {dimension_numbers = #tpu.dot_dimension_numbers<[2], [1], [1], [2], [0, 0, 0, 1, 1, 2], [0], [0]>} : vector<8x2x2xbf16>, vector<8x2x32xbf16>, vector<8x2x32xf32> -> vector<8x2x32xf32>
    %13 = vector.broadcast %10 : vector<8x2x1xf32> to vector<8x2x32xf32>
    %14 = arith.divf %12, %13 : vector<8x2x32xf32>
    %15 = arith.truncf %14 : vector<8x2x32xf32> to vector<8x2x32xbf16>
    %c0_11 = arith.constant 0 : index
    %c0_12 = arith.constant 0 : index
    %c0_13 = arith.constant 0 : index
    %16 = vector.load %arg3[%c0_11, %c0_12, %c0_13] : memref<8x2x32xbf16, #tpu.memory_space<vmem>>, vector<8x2x32xbf16>
    tpu.vector_store %arg3[%c0_11, %c0_12, %c0_13], %15 {strides = array<i32>} : memref<8x2x32xbf16, #tpu.memory_space<vmem>>, vector<8x2x32xbf16>,
    return
  }
}

module attributes {stable_mosaic.version = 11 : i64} {
  func.func @_dense_kernel(%arg0: i32, %arg1: i32, %arg2: i32, %arg3: memref<2x256xbf16, #tpu.memory_space<vmem>>, %arg4: memref<256x128xbf16, #tpu.memory_space<vmem>>, %arg5: memref<1x128xf32, #tpu.memory_space<vmem>>, %arg6: memref<2x128xbf16, #tpu.memory_space<vmem>>, %arg7: memref<2x128xf32, #tpu.memory_space<vmem>>) attributes {dimension_semantics = [#tpu.dimension_semantics<parallel>, #tpu.dimension_semantics<parallel>, #tpu.dimension_semantics<arbitrary>], iteration_bounds = array<i64: 1, 2, 1>, scalar_prefetch = 0 : i64, scratch_operands = 1 : i64, tpu.core_type = #tpu.core_type<tc>, window_params = [{transform_indices = @transform_0, window_bounds = array<i64: 2, 256>}, {transform_indices = @transform_1, window_bounds = array<i64: 256, 128>}, {transform_indices = @transform_2, window_bounds = array<i64: 1, 128>}, {transform_indices = @transform_3, window_bounds = array<i64: 2, 128>}]} {
    %c0_i32 = arith.constant 0 : i32
    %0 = arith.cmpi eq, %arg2, %c0_i32 : i32
    %1 = arith.extui %0 : i1 to i32
    %c0_i32_0 = arith.constant 0 : i32
    %2 = arith.cmpi ne, %1, %c0_i32_0 : i32
    scf.if %2 {
      %cst_10 = arith.constant 0.000000e+00 : f32
      %12 = vector.broadcast %cst_10 : f32 to vector<2x128xf32>
      %c0_11 = arith.constant 0 : index
      %c0_12 = arith.constant 0 : index
      %13 = vector.load %arg7[%c0_11, %c0_12] : memref<2x128xf32, #tpu.memory_space<vmem>>, vector<2x128xf32>
      tpu.vector_store %arg7[%c0_11, %c0_12], %12 {strides = array<i32>} : memref<2x128xf32, #tpu.memory_space<vmem>>, vector<2x128xf32>,
    } else {
    }
    %c0 = arith.constant 0 : index
    %c0_1 = arith.constant 0 : index
    %3 = vector.load %arg7[%c0, %c0_1] : memref<2x128xf32, #tpu.memory_space<vmem>>, vector<2x128xf32>
    %c0_2 = arith.constant 0 : index
    %c0_3 = arith.constant 0 : index
    %4 = vector.load %arg3[%c0_2, %c0_3] : memref<2x256xbf16, #tpu.memory_space<vmem>>, vector<2x256xbf16>
    %c0_4 = arith.constant 0 : index
    %c0_5 = arith.constant 0 : index
    %5 = vector.load %arg4[%c0_4, %c0_5] : memref<256x128xbf16, #tpu.memory_space<vmem>>, vector<256x128xbf16>
    %cst = arith.constant dense<0.000000e+00> : vector<2x128xf32>
    %6 = tpu.matmul %4, %5, %cst {dimension_numbers = #tpu.dot_dimension_numbers<[1], [0], [0], [1], [0, 0, 1, 1], [], []>} : vector<2x256xbf16>, vector<256x128xbf16>, vector<2x128xf32> -> vector<2x128xf32>
    %7 = arith.addf %3, %6 : vector<2x128xf32>
    %c0_6 = arith.constant 0 : index
    %c0_7 = arith.constant 0 : index
    %8 = vector.load %arg7[%c0_6, %c0_7] : memref<2x128xf32, #tpu.memory_space<vmem>>, vector<2x128xf32>
    tpu.vector_store %arg7[%c0_6, %c0_7], %7 {strides = array<i32>} : memref<2x128xf32, #tpu.memory_space<vmem>>, vector<2x128xf32>,
    %c0_i32_8 = arith.constant 0 : i32
    %9 = arith.cmpi eq, %arg2, %c0_i32_8 : i32
    %10 = arith.extui %9 : i1 to i32
    %c0_i32_9 = arith.constant 0 : i32
    %11 = arith.cmpi ne, %10, %c0_i32_9 : i32
    scf.if %11 {
      %c0_10 = arith.constant 0 : index
      %c0_11 = arith.constant 0 : index
      %12 = vector.load %arg7[%c0_10, %c0_11] : memref<2x128xf32, #tpu.memory_space<vmem>>, vector<2x128xf32>
      %c0_12 = arith.constant 0 : index
      %c0_13 = arith.constant 0 : index
      %13 = vector.load %arg5[%c0_12, %c0_13] : memref<1x128xf32, #tpu.memory_space<vmem>>, vector<1x128xf32>
      %14 = vector.broadcast %13 : vector<1x128xf32> to vector<2x128xf32>
      %15 = arith.addf %12, %14 : vector<2x128xf32>
      %16 = arith.truncf %15 : vector<2x128xf32> to vector<2x128xbf16>
      %c0_14 = arith.constant 0 : index
      %c0_15 = arith.constant 0 : index
      %17 = vector.load %arg6[%c0_14, %c0_15] : memref<2x128xbf16, #tpu.memory_space<vmem>>, vector<2x128xbf16>
      tpu.vector_store %arg6[%c0_14, %c0_15], %16 {strides = array<i32>} : memref<2x128xbf16, #tpu.memory_space<vmem>>, vector<2x128xbf16>,
    } else {
    }
    return
  }
  func.func @transform_0(%arg0: i32, %arg1: i32, %arg2: i32) -> (i32, i32) {
    %c0_i32 = arith.constant 0 : i32
    return %arg0, %arg2 : i32, i32
  }
  func.func @transform_1(%arg0: i32, %arg1: i32, %arg2: i32) -> (i32, i32) {
    %c0_i32 = arith.constant 0 : i32
    return %arg2, %arg1 : i32, i32
  }
  func.func @transform_2(%arg0: i32, %arg1: i32, %arg2: i32) -> (i32, i32) {
    %c0_i32 = arith.constant 0 : i32
    %c0_i32_0 = arith.constant 0 : i32
    return %c0_i32, %arg1 : i32, i32
  }
  func.func @transform_3(%arg0: i32, %arg1: i32, %arg2: i32) -> (i32, i32) {
    %c0_i32 = arith.constant 0 : i32
    return %arg0, %arg1 : i32, i32
  }
}

module attributes {stable_mosaic.version = 11 : i64} {
  func.func @_dense_kernel(%arg0: i32, %arg1: i32, %arg2: i32, %arg3: memref<2x1024xbf16, #tpu.memory_space<vmem>>, %arg4: memref<1024x128xbf16, #tpu.memory_space<vmem>>, %arg5: memref<1x128xf32, #tpu.memory_space<vmem>>, %arg6: memref<2x128xbf16, #tpu.memory_space<vmem>>, %arg7: memref<2x128xbf16, #tpu.memory_space<vmem>>, %arg8: memref<2x128xf32, #tpu.memory_space<vmem>>) attributes {dimension_semantics = [#tpu.dimension_semantics<parallel>, #tpu.dimension_semantics<parallel>, #tpu.dimension_semantics<arbitrary>], iteration_bounds = array<i64: 1, 2, 1>, scalar_prefetch = 0 : i64, scratch_operands = 1 : i64, tpu.core_type = #tpu.core_type<tc>, window_params = [{transform_indices = @transform_0, window_bounds = array<i64: 2, 1024>}, {transform_indices = @transform_1, window_bounds = array<i64: 1024, 128>}, {transform_indices = @transform_2, window_bounds = array<i64: 1, 128>}, {transform_indices = @transform_3, window_bounds = array<i64: 2, 128>}, {transform_indices = @transform_4, window_bounds = array<i64: 2, 128>}]} {
    %c0_i32 = arith.constant 0 : i32
    %0 = arith.cmpi eq, %arg2, %c0_i32 : i32
    %1 = arith.extui %0 : i1 to i32
    %c0_i32_0 = arith.constant 0 : i32
    %2 = arith.cmpi ne, %1, %c0_i32_0 : i32
    scf.if %2 {
      %cst_10 = arith.constant 0.000000e+00 : f32
      %12 = vector.broadcast %cst_10 : f32 to vector<2x128xf32>
      %c0_11 = arith.constant 0 : index
      %c0_12 = arith.constant 0 : index
      %13 = vector.load %arg8[%c0_11, %c0_12] : memref<2x128xf32, #tpu.memory_space<vmem>>, vector<2x128xf32>
      tpu.vector_store %arg8[%c0_11, %c0_12], %12 {strides = array<i32>} : memref<2x128xf32, #tpu.memory_space<vmem>>, vector<2x128xf32>,
    } else {
    }
    %c0 = arith.constant 0 : index
    %c0_1 = arith.constant 0 : index
    %3 = vector.load %arg8[%c0, %c0_1] : memref<2x128xf32, #tpu.memory_space<vmem>>, vector<2x128xf32>
    %c0_2 = arith.constant 0 : index
    %c0_3 = arith.constant 0 : index
    %4 = vector.load %arg3[%c0_2, %c0_3] : memref<2x1024xbf16, #tpu.memory_space<vmem>>, vector<2x1024xbf16>
    %c0_4 = arith.constant 0 : index
    %c0_5 = arith.constant 0 : index
    %5 = vector.load %arg4[%c0_4, %c0_5] : memref<1024x128xbf16, #tpu.memory_space<vmem>>, vector<1024x128xbf16>
    %cst = arith.constant dense<0.000000e+00> : vector<2x128xf32>
    %6 = tpu.matmul %4, %5, %cst {dimension_numbers = #tpu.dot_dimension_numbers<[1], [0], [0], [1], [0, 0, 1, 1], [], []>} : vector<2x1024xbf16>, vector<1024x128xbf16>, vector<2x128xf32> -> vector<2x128xf32>
    %7 = arith.addf %3, %6 : vector<2x128xf32>
    %c0_6 = arith.constant 0 : index
    %c0_7 = arith.constant 0 : index
    %8 = vector.load %arg8[%c0_6, %c0_7] : memref<2x128xf32, #tpu.memory_space<vmem>>, vector<2x128xf32>
    tpu.vector_store %arg8[%c0_6, %c0_7], %7 {strides = array<i32>} : memref<2x128xf32, #tpu.memory_space<vmem>>, vector<2x128xf32>,
    %c0_i32_8 = arith.constant 0 : i32
    %9 = arith.cmpi eq, %arg2, %c0_i32_8 : i32
    %10 = arith.extui %9 : i1 to i32
    %c0_i32_9 = arith.constant 0 : i32
    %11 = arith.cmpi ne, %10, %c0_i32_9 : i32
    scf.if %11 {
      %c0_10 = arith.constant 0 : index
      %c0_11 = arith.constant 0 : index
      %12 = vector.load %arg8[%c0_10, %c0_11] : memref<2x128xf32, #tpu.memory_space<vmem>>, vector<2x128xf32>
      %c0_12 = arith.constant 0 : index
      %c0_13 = arith.constant 0 : index
      %13 = vector.load %arg5[%c0_12, %c0_13] : memref<1x128xf32, #tpu.memory_space<vmem>>, vector<1x128xf32>
      %14 = vector.broadcast %13 : vector<1x128xf32> to vector<2x128xf32>
      %15 = arith.addf %12, %14 : vector<2x128xf32>
      %c0_14 = arith.constant 0 : index
      %c0_15 = arith.constant 0 : index
      %16 = vector.load %arg6[%c0_14, %c0_15] : memref<2x128xbf16, #tpu.memory_space<vmem>>, vector<2x128xbf16>
      %17 = arith.extf %16 : vector<2x128xbf16> to vector<2x128xf32>
      %18 = arith.addf %15, %17 : vector<2x128xf32>
      %19 = arith.truncf %18 : vector<2x128xf32> to vector<2x128xbf16>
      %c0_16 = arith.constant 0 : index
      %c0_17 = arith.constant 0 : index
      %20 = vector.load %arg7[%c0_16, %c0_17] : memref<2x128xbf16, #tpu.memory_space<vmem>>, vector<2x128xbf16>
      tpu.vector_store %arg7[%c0_16, %c0_17], %19 {strides = array<i32>} : memref<2x128xbf16, #tpu.memory_space<vmem>>, vector<2x128xbf16>,
    } else {
    }
    return
  }
  func.func @transform_0(%arg0: i32, %arg1: i32, %arg2: i32) -> (i32, i32) {
    %c0_i32 = arith.constant 0 : i32
    return %arg0, %arg2 : i32, i32
  }
  func.func @transform_1(%arg0: i32, %arg1: i32, %arg2: i32) -> (i32, i32) {
    %c0_i32 = arith.constant 0 : i32
    return %arg2, %arg1 : i32, i32
  }
  func.func @transform_2(%arg0: i32, %arg1: i32, %arg2: i32) -> (i32, i32) {
    %c0_i32 = arith.constant 0 : i32
    %c0_i32_0 = arith.constant 0 : i32
    return %c0_i32, %arg1 : i32, i32
  }
  func.func @transform_3(%arg0: i32, %arg1: i32, %arg2: i32) -> (i32, i32) {
    %c0_i32 = arith.constant 0 : i32
    return %arg0, %arg1 : i32, i32
  }
  func.func @transform_4(%arg0: i32, %arg1: i32, %arg2: i32) -> (i32, i32) {
    %c0_i32 = arith.constant 0 : i32
    return %arg0, %arg1 : i32, i32
  }
}

module attributes {stable_mosaic.version = 11 : i64} {
  func.func @_dense_kernel(%arg0: i32, %arg1: i32, %arg2: i32, %arg3: memref<2x256xbf16, #tpu.memory_space<vmem>>, %arg4: memref<256x128xbf16, #tpu.memory_space<vmem>>, %arg5: memref<1x128xf32, #tpu.memory_space<vmem>>, %arg6: memref<2x128xf32, #tpu.memory_space<vmem>>, %arg7: memref<2x128xf32, #tpu.memory_space<vmem>>) attributes {dimension_semantics = [#tpu.dimension_semantics<parallel>, #tpu.dimension_semantics<parallel>, #tpu.dimension_semantics<arbitrary>], iteration_bounds = array<i64: 1, 1, 1>, scalar_prefetch = 0 : i64, scratch_operands = 1 : i64, tpu.core_type = #tpu.core_type<tc>, window_params = [{transform_indices = @transform_0, window_bounds = array<i64: 2, 256>}, {transform_indices = @transform_1, window_bounds = array<i64: 256, 128>}, {transform_indices = @transform_2, window_bounds = array<i64: 1, 128>}, {transform_indices = @transform_3, window_bounds = array<i64: 2, 128>}]} {
    %c0_i32 = arith.constant 0 : i32
    %0 = arith.cmpi eq, %arg2, %c0_i32 : i32
    %1 = arith.extui %0 : i1 to i32
    %c0_i32_0 = arith.constant 0 : i32
    %2 = arith.cmpi ne, %1, %c0_i32_0 : i32
    scf.if %2 {
      %cst_10 = arith.constant 0.000000e+00 : f32
      %12 = vector.broadcast %cst_10 : f32 to vector<2x128xf32>
      %c0_11 = arith.constant 0 : index
      %c0_12 = arith.constant 0 : index
      %13 = vector.load %arg7[%c0_11, %c0_12] : memref<2x128xf32, #tpu.memory_space<vmem>>, vector<2x128xf32>
      tpu.vector_store %arg7[%c0_11, %c0_12], %12 {strides = array<i32>} : memref<2x128xf32, #tpu.memory_space<vmem>>, vector<2x128xf32>,
    } else {
    }
    %c0 = arith.constant 0 : index
    %c0_1 = arith.constant 0 : index
    %3 = vector.load %arg7[%c0, %c0_1] : memref<2x128xf32, #tpu.memory_space<vmem>>, vector<2x128xf32>
    %c0_2 = arith.constant 0 : index
    %c0_3 = arith.constant 0 : index
    %4 = vector.load %arg3[%c0_2, %c0_3] : memref<2x256xbf16, #tpu.memory_space<vmem>>, vector<2x256xbf16>
    %c0_4 = arith.constant 0 : index
    %c0_5 = arith.constant 0 : index
    %5 = vector.load %arg4[%c0_4, %c0_5] : memref<256x128xbf16, #tpu.memory_space<vmem>>, vector<256x128xbf16>
    %cst = arith.constant dense<0.000000e+00> : vector<2x128xf32>
    %6 = tpu.matmul %4, %5, %cst {dimension_numbers = #tpu.dot_dimension_numbers<[1], [0], [0], [1], [0, 0, 1, 1], [], []>} : vector<2x256xbf16>, vector<256x128xbf16>, vector<2x128xf32> -> vector<2x128xf32>
    %7 = arith.addf %3, %6 : vector<2x128xf32>
    %c0_6 = arith.constant 0 : index
    %c0_7 = arith.constant 0 : index
    %8 = vector.load %arg7[%c0_6, %c0_7] : memref<2x128xf32, #tpu.memory_space<vmem>>, vector<2x128xf32>
    tpu.vector_store %arg7[%c0_6, %c0_7], %7 {strides = array<i32>} : memref<2x128xf32, #tpu.memory_space<vmem>>, vector<2x128xf32>,
    %c0_i32_8 = arith.constant 0 : i32
    %9 = arith.cmpi eq, %arg2, %c0_i32_8 : i32
    %10 = arith.extui %9 : i1 to i32
    %c0_i32_9 = arith.constant 0 : i32
    %11 = arith.cmpi ne, %10, %c0_i32_9 : i32
    scf.if %11 {
      %c0_10 = arith.constant 0 : index
      %c0_11 = arith.constant 0 : index
      %12 = vector.load %arg7[%c0_10, %c0_11] : memref<2x128xf32, #tpu.memory_space<vmem>>, vector<2x128xf32>
      %c0_12 = arith.constant 0 : index
      %c0_13 = arith.constant 0 : index
      %13 = vector.load %arg5[%c0_12, %c0_13] : memref<1x128xf32, #tpu.memory_space<vmem>>, vector<1x128xf32>
      %14 = vector.broadcast %13 : vector<1x128xf32> to vector<2x128xf32>
      %15 = arith.addf %12, %14 : vector<2x128xf32>
      %cst_14 = arith.constant 0.000000e+00 : f32
      %16 = vector.broadcast %cst_14 : f32 to vector<2x128xf32>
      %17 = arith.maximumf %15, %16 : vector<2x128xf32>
      %c0_15 = arith.constant 0 : index
      %c0_16 = arith.constant 0 : index
      %18 = vector.load %arg6[%c0_15, %c0_16] : memref<2x128xf32, #tpu.memory_space<vmem>>, vector<2x128xf32>
      tpu.vector_store %arg6[%c0_15, %c0_16], %17 {strides = array<i32>} : memref<2x128xf32, #tpu.memory_space<vmem>>, vector<2x128xf32>,
    } else {
    }
    return
  }
  func.func @transform_0(%arg0: i32, %arg1: i32, %arg2: i32) -> (i32, i32) {
    %c0_i32 = arith.constant 0 : i32
    return %arg0, %arg2 : i32, i32
  }
  func.func @transform_1(%arg0: i32, %arg1: i32, %arg2: i32) -> (i32, i32) {
    %c0_i32 = arith.constant 0 : i32
    return %arg2, %arg1 : i32, i32
  }
  func.func @transform_2(%arg0: i32, %arg1: i32, %arg2: i32) -> (i32, i32) {
    %c0_i32 = arith.constant 0 : i32
    %c0_i32_0 = arith.constant 0 : i32
    return %c0_i32, %arg1 : i32, i32
  }
  func.func @transform_3(%arg0: i32, %arg1: i32, %arg2: i32) -> (i32, i32) {
    %c0_i32 = arith.constant 0 : i32
    return %arg0, %arg1 : i32, i32
  }
}

</mosaic_0001>

<bundles_post_ra>
// kernel: vanilla_regnet_v2_forward.17
= control target key start
LH: loop header
LB: loop body
LE: loop exit
PB: predicated region body
PF: predicated region fallthrough
CT: control target
= control target key end

     0   :  { %9 = vsyncpa [#allocation4], 0  ;;  %s1198_s0 = inlined_call_operand.vmem [shape: bf16[128,128], index: 0, kind: input, shape index: {}]   ;;  %s1199_s1 = inlined_call_operand.hbm [shape: bf16[128,128], index: 1, kind: input, shape index: {}]   ;;  %s1200_s2 = inlined_call_operand.hbm [shape: f32[1,128], index: 2, kind: input, shape index: {}]   ;;  %s1201_s3 = inlined_call_operand.hbm [shape: f32[1,128], index: 3, kind: input, shape index: {}]   ;;  %s1202_s4 = inlined_call_operand.vmem [shape: bf16[128,128], index: 4, kind: output, shape index: {}]  }
   0x1   :  { %10 = vsyncpa [#allocation6], 0  ;;  %s1049_s15 = smov 0   ;;  %s1051_s16 = smov 0  }
   0x2   :  { %s1053_s17 = smov 0  }
   0x3 LB: > { %s1019_s18 = smov [#allocation5]   ;;  %s712_s20 = sadd.s32 4294967295, %s1017_s17   ;;  %s1017_s17 = sphi %s1053_s17, %s16_s17   ;;  %s1013_s16 = sphi %s1051_s16, %s1215_s16   ;;  %s1009_s15 = sphi %s1049_s15, %s1214_s15  }
   0x4   : > { %s208_s19 = sshll.u32 %s1019_s18, 4  ;;  %p714_p0 = scmp.ge.s32.totalorder %s1017_s17, 1  ;;  %s209_s19 = int_to_ptr.vmem [resolvable:$true] %s208_s19 }
   0x5   : > { %p176_p1 = scmp.lt.s32.totalorder %s1017_s17, 3  ;;  %p1067_p2 = scmp.eq.s32.totalorder %s712_s20, 0 }
   0x6   : > { %s35_s23 = sadd.s32 1, %s1013_s16  ;;  %s1020_s26 = smov [#allocation3]  }
   0x7   : > { %s1206_s21 = scalar_select %p1067_p2, 1, 0 }
   0x8   : > { %p1071_p3 = pnand %p714_p0, %p176_p1  ;;  %p1084_p6 = scmp.ge.s32.totalorder %s35_s23, 2 }
   0x9   : > { %s192_s27 = sshll.u32 %s1020_s26, 4  ;;  %s903_s30 = scalar_lea.hbm %s1200_s2, 16  ;;  %s1088_s27 = int_to_ptr.vmem [resolvable:$true] %s192_s27 }
   0xa   : > { %s1207_s22 = scalar_select %p1071_p3, 1, 0 }
   0xb   : > { %p846_p4 = pneg %p1071_p3  ;;  %p904_p7 = scmp.ne.s32.totalorder %s1200_s2, %s903_s30 }
   0xc   : > { %s1209_s25 = scalar_select %p1084_p6, 1, 0 }
   0xd   : > { %p1080_p5 = pnand %p1067_p2, %p846_p4  ;;  %p910_p11 = scmp.lt.u32.totalorder %s903_s30, %s1200_s2 }
   0xf   : > { %p1098_p8 = pneg %p1080_p5 }
  0x11   : > { %p906_p9 = pnand %p1098_p8, %p904_p7 }
  0x13   : > { %p907_p10 = pneg %p906_p9 }
  0x15   : > { %p912_p12 = pnand %p910_p11, %p907_p10 }
  0x17   : > { %915 = shalt.err (!%p912_p12)
}
  0x18   : > { %s916_s10 = scalar_lea.vmem %s209_s19, 16  ;;  %s923_s11 = scalar_lea.vmem %s209_s19, 32 }
  0x19   : > { %p917_p13 = scmp.ne.s32.totalorder %s209_s19, %s916_s10  ;;  %p924_p4 = scmp.lt.s32.totalorder %s209_s19, %s209_s19 }
  0x1a   : > { %p925_p2 = scmp.lt.s32.totalorder %s923_s11, %s916_s10 }
  0x1b   : > { %p919_p0 = pnand %p917_p13, %p1098_p8 }
  0x1c   : > { %p926_p3 = por %p925_p2, %p924_p4 }
  0x1d   : > { %p920_p1 = pneg %p919_p0 }
  0x1f   : > { %p927_p6 = pnand %p926_p3, %p920_p1 }
  0x21   : > { %930 = shalt.err (!%p927_p6)
}
  0x22   : > { %852 = dma.hbm_to_vmem [thread:$0]  (!%p1080_p5), %s1200_s2, 16, %s209_s19, [#allocation6]  }
  0x23   : > { %p1211_p7 = scmp.ne.s32.totalorder %s1209_s25, 0  ;;  %s931_s20 = scalar_lea.hbm %s1199_s1, 1024 }
  0x24   : > { %p932_p2 = scmp.ne.s32.totalorder %s1199_s1, %s931_s20  ;;  %p938_p9 = scmp.lt.u32.totalorder %s931_s20, %s1199_s1 }
  0x25   : > { %s1217_s23 = smov (%p1211_p7, %s35_s23), 0 }
  0x26   : > { %p934_p3 = pnand %p932_p2, %p1098_p8 }
  0x28   : > { %p935_p6 = pneg %p934_p3 }
  0x2a   : > { %p940_p10 = pnand %p938_p9, %p935_p6 }
  0x2c   : > { %943 = shalt.err (!%p940_p10)
}
  0x2d   : > { %s944_s19 = scalar_lea.vmem %s1088_s27, 1024  ;;  %p952_p0 = scmp.lt.s32.totalorder %s1088_s27, %s1088_s27 }
  0x2e   : > { %p945_p11 = scmp.ne.s32.totalorder %s1088_s27, %s944_s19  ;;  %p953_p1 = scmp.lt.s32.totalorder %s944_s19, %s944_s19 }
  0x30   : > { %p947_p12 = pnand %p945_p11, %p1098_p8  ;;  %p954_p4 = por %p953_p1, %p952_p0 }
  0x32   : > { %p948_p13 = pneg %p947_p12 }
  0x34   : > { %p955_p7 = pnand %p954_p4, %p948_p13 }
  0x36   : > { %958 = shalt.err (!%p955_p7)
}
  0x37   : > { %s1021_s25 = smov 64   ;;  %s1022_s5 = smov 4  }
  0x38   : > { %849 = dma.hbm_to_vmem [thread:$0]  (!%p1080_p5), %s1199_s1, 1024, %s1088_s27, [#allocation4], %s1021_s25, %s1021_s25, %s1022_s5  }
  0x39   : > { %s1023_s9 = smov [#allocation7]   ;;  %s959_s13 = scalar_lea.hbm %s1201_s3, 16 }
  0x3a   : > { %s221_s10 = sshll.u32 %s1023_s9, 4  ;;  %p960_p2 = scmp.ne.s32.totalorder %s1201_s3, %s959_s13  ;;  %s222_s10 = int_to_ptr.vmem [resolvable:$true] %s221_s10 }
  0x3b   : > { %p966_p9 = scmp.lt.u32.totalorder %s959_s13, %s1201_s3 }
  0x3c   : > { %p962_p3 = pnand %p960_p2, %p1098_p8 }
  0x3e   : > { %p963_p6 = pneg %p962_p3 }
  0x40   : > { %p968_p10 = pnand %p966_p9, %p963_p6 }
  0x42   : > { %971 = shalt.err (!%p968_p10)
}
  0x43   : > { %s972_s27 = scalar_lea.vmem %s222_s10, 16  ;;  %s979_s28 = scalar_lea.vmem %s222_s10, 32 }
  0x44   : > { %p973_p11 = scmp.ne.s32.totalorder %s222_s10, %s972_s27  ;;  %p980_p0 = scmp.lt.s32.totalorder %s222_s10, %s222_s10 }
  0x45   : > { %p981_p1 = scmp.lt.s32.totalorder %s979_s28, %s972_s27 }
  0x46   : > { %p975_p12 = pnand %p973_p11, %p1098_p8 }
  0x47   : > { %p982_p4 = por %p981_p1, %p980_p0 }
  0x48   : > { %p976_p13 = pneg %p975_p12 }
  0x4a   : > { %p983_p7 = pnand %p982_p4, %p976_p13 }
  0x4c   : > { %986 = shalt.err (!%p983_p7)
}
  0x4d   : > { %855 = dma.hbm_to_vmem [thread:$0]  (!%p1080_p5), %s1201_s3, 16, %s222_s10, [#allocation6]  }
  0x4e   : > { %p1212_p2 = scmp.ne.s32.totalorder %s1207_s22, 0 }
  0x4f   : > { %p1213_p3 = scmp.ne.s32.totalorder (!%p1212_p2), %s1206_s21, 0 }
  0x50   : > { %246 = sbr.rel (%p1212_p2) target bundleno = 347 (0x15b), region = 36 }
  0x57   : > { %1000 = dma.done.wait (%p1213_p3), [#allocation4], 1024  }
  0x58   : > { %1002 = vsyncadd (%p1213_p3), [#allocation4], 4294966272 }
  0x59   : > { %1004 = dma.done.wait (%p1213_p3), [#allocation6], 32  }
  0x5a   : > { %1006 = vsyncadd (%p1213_p3), [#allocation6], 4294967264  ;;  %s723_s24 = sshll.u32 %s1009_s15, 3  ;;  %v891_v0 = vld [vmem:[#allocation3] sm:$0xff]   ;;  %v892_v1 = vld [vmem:[#allocation3 + $0x8] sm:$0xff]  }
  0x5b   : > { %p287_p8 = scmp.lt.s32.totalorder %s723_s24, 15  ;;  %794 = vmatprep.subr.bf16.mxu0 %v891_v0  ;;  %818 = vmatprep.subr.bf16.mxu1 %v891_v0  ;;  %v893_v2 = vld [vmem:[#allocation3 + $0x10] sm:$0xff]   ;;  %v894_v3 = vld [vmem:[#allocation3 + $0x18] sm:$0xff]   ;;  %v895_v6 = vld [vmem:[#allocation3 + $0x20] sm:$0xff]  }
  0x5c   : > { %795 = vmatpush3.bf16.msra.mxu0 %v891_v0  ;;  %826 = vmatpush3.bf16.msra.mxu1 %v891_v0  ;;  %v896_v7 = vld [vmem:[#allocation3 + $0x28] sm:$0xff]   ;;  %v897_v8 = vld [vmem:[#allocation3 + $0x30] sm:$0xff]   ;;  %v898_v9 = vld [vmem:[#allocation3 + $0x38] sm:$0xff]  }
  0x5d   : > { %s1219_s24 = smov (!%p287_p8, %s723_s24), 15  ;;  %796 = vmatprep.subr.bf16.mxu0 %v892_v1  ;;  %819 = vmatprep.subr.bf16.mxu1 %v892_v1  ;;  %v739_v12 = vld [vmem:[#allocation5] ss:$0 sm:$0xff]  ;;  %v740_v14 = vld [vmem:[#allocation7] ss:$0 sm:$0xff] }
  0x5e   : > { %s724_s22 = sshll.u32 %s1219_s24, 2 }
  0x5f   : > { %s1178_s15 = scalar_lea.vmem %s1198_s0, %s724_s22  ;;  %s303_s5 = scalar_lea.vmem %s1202_s4, %s724_s22 }
  0x60   : > { %797 = vmatpush3.bf16.msra.mxu0 %v892_v1  ;;  %827 = vmatpush3.bf16.msra.mxu1 %v892_v1  ;;  %v899_v4 = vld [vmem:[%s1178_s15] sm:$0xff]   ;;  %v900_v5 = vld [vmem:[%s1178_s15 + $0x10] sm:$0xff]   ;;  %v901_v10 = vld [vmem:[%s1178_s15 + $0x8] sm:$0xff]  }
  0x61   : > { %798 = vmatprep.subr.bf16.mxu0 %v893_v2  ;;  %820 = vmatprep.subr.bf16.mxu1 %v893_v2  ;;  %v902_v11 = vld [vmem:[%s1178_s15 + $0x18] sm:$0xff]  }
  0x62   : > { %810 = vmatprep.mubr.bf16.mxu0 %v899_v4  ;;  %814 = vmatprep.mubr.bf16.mxu1 %v900_v5 }
  0x64   : > { %799 = vmatpush3.bf16.msra.mxu0 %v893_v2  ;;  %828 = vmatpush3.bf16.msra.mxu1 %v893_v2 }
  0x65   : > { %800 = vmatprep.subr.bf16.mxu0 %v894_v3  ;;  %821 = vmatprep.subr.bf16.mxu1 %v894_v3 }
  0x68   : > { %801 = vmatpush3.bf16.msra.mxu0 %v894_v3  ;;  %829 = vmatpush3.bf16.msra.mxu1 %v894_v3 }
  0x69   : > { %802 = vmatprep.subr.bf16.mxu0 %v895_v6  ;;  %822 = vmatprep.subr.bf16.mxu1 %v895_v6 }
  0x6c   : > { %803 = vmatpush3.bf16.msra.mxu0 %v895_v6  ;;  %830 = vmatpush3.bf16.msra.mxu1 %v895_v6 }
  0x6d   : > { %804 = vmatprep.subr.bf16.mxu0 %v896_v7  ;;  %823 = vmatprep.subr.bf16.mxu1 %v896_v7 }
  0x70   : > { %805 = vmatpush3.bf16.msra.mxu0 %v896_v7  ;;  %831 = vmatpush3.bf16.msra.mxu1 %v896_v7 }
  0x71   : > { %806 = vmatprep.subr.bf16.mxu0 %v897_v8  ;;  %824 = vmatprep.subr.bf16.mxu1 %v897_v8 }
  0x74   : > { %807 = vmatpush3.bf16.msra.mxu0 %v897_v8  ;;  %832 = vmatpush3.bf16.msra.mxu1 %v897_v8 }
  0x75   : > { %808 = vmatprep.subr.bf16.mxu0 %v898_v9  ;;  %825 = vmatprep.subr.bf16.mxu1 %v898_v9 }
  0x78   : > { %809 = vmatpush3.bf16.msra.mxu0 %v898_v9  ;;  %833 = vmatpush3.bf16.msra.mxu1 %v898_v9 }
  0x7b   : > { %811 = vmatmul.mubr.bf16.vlgmr.msra.gmra.mrb[0].mxu0 %v901_v10  ;;  %815 = vmatmul.mubr.bf16.vlgmr.msra.gmra.mrb[0].mxu1 %v902_v11 }
 0x14e   : > { %v812_v13 = vpop.f32.mrb[0].mxu0  ;;  %v816_v15 = vpop.f32.mrb[0].mxu1 }
 0x14f   : > { %v523_v16 = vmul.f32 %v812_v13, %v739_v12  ;;  %v527_v17 = vmul.f32 %v816_v15, %v739_v12  ;;  %v456_v18 = vpop.f32.mrb[1].mxu0  ;;  %v472_v19 = vpop.f32.mrb[1].mxu1 }
 0x150   : > { %v521_v20 = vmul.f32 %v739_v12, %v456_v18  ;;  %v525_v21 = vmul.f32 %v739_v12, %v472_v19  ;;  %v813_v22 = vpop.f32.mrb[2].mxu0  ;;  %v817_v23 = vpop.f32.mrb[2].mxu1 }
 0x151   : > { %v538_v24 = vadd.f32 %v740_v14, %v523_v16  ;;  %v542_v25 = vadd.f32 %v740_v14, %v527_v17  ;;  %v524_v26 = vmul.f32 %v813_v22, %v739_v12  ;;  %v528_v27 = vmul.f32 %v817_v23, %v739_v12  ;;  %v459_v28 = vpop.f32.mrb[3].mxu0  ;;  %v475_v29 = vpop.f32.mrb[3].mxu1 }
 0x152   : > { %v536_v30 = vadd.f32 %v740_v14, %v521_v20  ;;  %v540_v31 = vadd.f32 %v740_v14, %v525_v21  ;;  %v522_v32 = vmul.f32 %v739_v12, %v459_v28  ;;  %v526_v33 = vmul.f32 %v739_v12, %v475_v29 }
 0x153   : > { %v539_v34 = vadd.f32 %v740_v14, %v524_v26  ;;  %v543_v35 = vadd.f32 %v740_v14, %v528_v27  ;;  %v546_v38 = vmax.f32 %v538_v24, 0.0  ;;  %v550_v39 = vmax.f32 %v542_v25, 0.0 }
 0x154   : > { %v537_v36 = vadd.f32 %v740_v14, %v522_v32  ;;  %v541_v37 = vadd.f32 %v740_v14, %v526_v33  ;;  %v544_v42 = vmax.f32 %v536_v30, 0.0  ;;  %v548_v43 = vmax.f32 %v540_v31, 0.0 }
 0x155   : > { %v547_v40 = vmax.f32 %v539_v34, 0.0  ;;  %v551_v41 = vmax.f32 %v543_v35, 0.0 }
 0x156   : > { %v545_v44 = vmax.f32 %v537_v36, 0.0  ;;  %v549_v45 = vmax.f32 %v541_v37, 0.0 }
 0x157   : > { %v767_v46 = vpack.c.bf16 %v547_v40, %v546_v38  ;;  %v777_v47 = vpack.c.bf16 %v551_v41, %v550_v39 }
 0x158   : > { %v762_v48 = vpack.c.bf16 %v545_v44, %v544_v42  ;;  %v772_v49 = vpack.c.bf16 %v549_v45, %v548_v43 }
 0x159   : > { %779 = vst [vmem:[%s303_s5 + $0x8] sm:$0xff] %v767_v46   ;;  %781 = vst [vmem:[%s303_s5 + $0x18] sm:$0xff] %v777_v47  }
 0x15a   : > { %763 = vst [vmem:[%s303_s5] sm:$0xff] %v762_v48   ;;  %780 = vst [vmem:[%s303_s5 + $0x10] sm:$0xff] %v772_v49  }
 0x15b PF: > { %s16_s17 = sadd.s32 1, %s1017_s17   ;;  %s1214_s15 = smov %s1013_s16 }
 0x15c   : > { %p13_p5 = scmp.ge.s32.totalorder %s16_s17, 4   ;;  %s1215_s16 = smov %s1217_s23 }
 0x15e   :  { %15 = sbr.rel (!%p13_p5) target bundleno = 3 (0x3), region = 90 }
 0x165   :  { %620 = vsyncpa [#allocation4], 1 }
 0x166   :  { %622 = vsyncpa [#allocation4 + $0x1], 1 }
 0x167   :  { %623 = vsyncpa [#allocation6], 1 }

// kernel: vanilla_regnet_v2_forward.21
= control target key start
LH: loop header
LB: loop body
LE: loop exit
PB: predicated region body
PF: predicated region fallthrough
CT: control target
= control target key end

     0   :  { %9 = vsyncpa [#allocation4], 0  ;;  %s1009_s0 = inlined_call_operand.vmem [shape: bf16[32,128], index: 0, kind: input, shape index: {}]   ;;  %s1010_s1 = inlined_call_operand.hbm [shape: bf16[128,128], index: 1, kind: input, shape index: {}]   ;;  %s1011_s2 = inlined_call_operand.hbm [shape: f32[1,128], index: 2, kind: input, shape index: {}]   ;;  %s1012_s3 = inlined_call_operand.hbm [shape: f32[1,128], index: 3, kind: input, shape index: {}]   ;;  %s1013_s4 = inlined_call_operand.vmem [shape: bf16[32,128], index: 4, kind: output, shape index: {}]  }
   0x1   :  { %10 = vsyncpa [#allocation6], 0  ;;  %s866_s15 = smov 0   ;;  %s868_s16 = smov 0  }
   0x2   :  { %s870_s17 = smov 0  }
   0x3 LB: > { %s834_s18 = smov [#allocation5]   ;;  %s584_s20 = sadd.s32 4294967295, %s832_s17   ;;  %s832_s17 = sphi %s870_s17, %s16_s17   ;;  %s828_s16 = sphi %s868_s16, %s1026_s16   ;;  %s824_s15 = sphi %s866_s15, %s1025_s15  }
   0x4   : > { %s208_s19 = sshll.u32 %s834_s18, 4  ;;  %p586_p0 = scmp.ge.s32.totalorder %s832_s17, 1  ;;  %s209_s19 = int_to_ptr.vmem [resolvable:$true] %s208_s19 }
   0x5   : > { %p176_p1 = scmp.lt.s32.totalorder %s832_s17, 3  ;;  %p884_p2 = scmp.eq.s32.totalorder %s584_s20, 0 }
   0x6   : > { %s35_s23 = sadd.s32 1, %s828_s16  ;;  %s835_s26 = smov [#allocation3]  }
   0x7   : > { %s1017_s21 = scalar_select %p884_p2, 1, 0 }
   0x8   : > { %p888_p3 = pnand %p586_p0, %p176_p1  ;;  %p901_p6 = scmp.ge.s32.totalorder %s35_s23, 2 }
   0x9   : > { %s192_s27 = sshll.u32 %s835_s26, 4  ;;  %s718_s30 = scalar_lea.hbm %s1011_s2, 16  ;;  %s905_s27 = int_to_ptr.vmem [resolvable:$true] %s192_s27 }
   0xa   : > { %s1018_s22 = scalar_select %p888_p3, 1, 0 }
   0xb   : > { %p662_p4 = pneg %p888_p3  ;;  %p719_p7 = scmp.ne.s32.totalorder %s1011_s2, %s718_s30 }
   0xc   : > { %s1020_s25 = scalar_select %p901_p6, 1, 0 }
   0xd   : > { %p897_p5 = pnand %p884_p2, %p662_p4  ;;  %p725_p11 = scmp.lt.u32.totalorder %s718_s30, %s1011_s2 }
   0xf   : > { %p915_p8 = pneg %p897_p5 }
  0x11   : > { %p721_p9 = pnand %p915_p8, %p719_p7 }
  0x13   : > { %p722_p10 = pneg %p721_p9 }
  0x15   : > { %p727_p12 = pnand %p725_p11, %p722_p10 }
  0x17   : > { %730 = shalt.err (!%p727_p12)
}
  0x18   : > { %s731_s10 = scalar_lea.vmem %s209_s19, 16  ;;  %s738_s11 = scalar_lea.vmem %s209_s19, 32 }
  0x19   : > { %p732_p13 = scmp.ne.s32.totalorder %s209_s19, %s731_s10  ;;  %p739_p4 = scmp.lt.s32.totalorder %s209_s19, %s209_s19 }
  0x1a   : > { %p740_p2 = scmp.lt.s32.totalorder %s738_s11, %s731_s10 }
  0x1b   : > { %p734_p0 = pnand %p732_p13, %p915_p8 }
  0x1c   : > { %p741_p3 = por %p740_p2, %p739_p4 }
  0x1d   : > { %p735_p1 = pneg %p734_p0 }
  0x1f   : > { %p742_p6 = pnand %p741_p3, %p735_p1 }
  0x21   : > { %745 = shalt.err (!%p742_p6)
}
  0x22   : > { %668 = dma.hbm_to_vmem [thread:$0]  (!%p897_p5), %s1011_s2, 16, %s209_s19, [#allocation6]  }
  0x23   : > { %p1022_p7 = scmp.ne.s32.totalorder %s1020_s25, 0  ;;  %s746_s20 = scalar_lea.hbm %s1010_s1, 1024 }
  0x24   : > { %p747_p2 = scmp.ne.s32.totalorder %s1010_s1, %s746_s20  ;;  %p753_p9 = scmp.lt.u32.totalorder %s746_s20, %s1010_s1 }
  0x25   : > { %s1028_s23 = smov (%p1022_p7, %s35_s23), 0 }
  0x26   : > { %p749_p3 = pnand %p747_p2, %p915_p8 }
  0x28   : > { %p750_p6 = pneg %p749_p3 }
  0x2a   : > { %p755_p10 = pnand %p753_p9, %p750_p6 }
  0x2c   : > { %758 = shalt.err (!%p755_p10)
}
  0x2d   : > { %s759_s19 = scalar_lea.vmem %s905_s27, 1024  ;;  %p767_p0 = scmp.lt.s32.totalorder %s905_s27, %s905_s27 }
  0x2e   : > { %p760_p11 = scmp.ne.s32.totalorder %s905_s27, %s759_s19  ;;  %p768_p1 = scmp.lt.s32.totalorder %s759_s19, %s759_s19 }
  0x30   : > { %p762_p12 = pnand %p760_p11, %p915_p8  ;;  %p769_p4 = por %p768_p1, %p767_p0 }
  0x32   : > { %p763_p13 = pneg %p762_p12 }
  0x34   : > { %p770_p7 = pnand %p769_p4, %p763_p13 }
  0x36   : > { %773 = shalt.err (!%p770_p7)
}
  0x37   : > { %s836_s25 = smov 64   ;;  %s837_s5 = smov 4  }
  0x38   : > { %665 = dma.hbm_to_vmem [thread:$0]  (!%p897_p5), %s1010_s1, 1024, %s905_s27, [#allocation4], %s836_s25, %s836_s25, %s837_s5  }
  0x39   : > { %s838_s9 = smov [#allocation7]   ;;  %s774_s13 = scalar_lea.hbm %s1012_s3, 16 }
  0x3a   : > { %s221_s10 = sshll.u32 %s838_s9, 4  ;;  %p775_p2 = scmp.ne.s32.totalorder %s1012_s3, %s774_s13  ;;  %s222_s10 = int_to_ptr.vmem [resolvable:$true] %s221_s10 }
  0x3b   : > { %p781_p9 = scmp.lt.u32.totalorder %s774_s13, %s1012_s3 }
  0x3c   : > { %p777_p3 = pnand %p775_p2, %p915_p8 }
  0x3e   : > { %p778_p6 = pneg %p777_p3 }
  0x40   : > { %p783_p10 = pnand %p781_p9, %p778_p6 }
  0x42   : > { %786 = shalt.err (!%p783_p10)
}
  0x43   : > { %s787_s27 = scalar_lea.vmem %s222_s10, 16  ;;  %s794_s28 = scalar_lea.vmem %s222_s10, 32 }
  0x44   : > { %p788_p11 = scmp.ne.s32.totalorder %s222_s10, %s787_s27  ;;  %p795_p0 = scmp.lt.s32.totalorder %s222_s10, %s222_s10 }
  0x45   : > { %p796_p1 = scmp.lt.s32.totalorder %s794_s28, %s787_s27 }
  0x46   : > { %p790_p12 = pnand %p788_p11, %p915_p8 }
  0x47   : > { %p797_p4 = por %p796_p1, %p795_p0 }
  0x48   : > { %p791_p13 = pneg %p790_p12 }
  0x4a   : > { %p798_p7 = pnand %p797_p4, %p791_p13 }
  0x4c   : > { %801 = shalt.err (!%p798_p7)
}
  0x4d   : > { %671 = dma.hbm_to_vmem [thread:$0]  (!%p897_p5), %s1012_s3, 16, %s222_s10, [#allocation6]  }
  0x4e   : > { %p1023_p2 = scmp.ne.s32.totalorder %s1018_s22, 0 }
  0x4f   : > { %p1024_p3 = scmp.ne.s32.totalorder (!%p1023_p2), %s1017_s21, 0 }
  0x50   : > { %246 = sbr.rel (%p1023_p2) target bundleno = 344 (0x158), region = 36 }
  0x57   : > { %815 = dma.done.wait (%p1024_p3), [#allocation4], 1024  }
  0x58   : > { %817 = vsyncadd (%p1024_p3), [#allocation4], 4294966272 }
  0x59   : > { %819 = dma.done.wait (%p1024_p3), [#allocation6], 32  }
  0x5a   : > { %821 = vsyncadd (%p1024_p3), [#allocation6], 4294967264  ;;  %s595_s24 = sshll.u32 %s824_s15, 1  ;;  %v839_v0 = vmov 0.0   ;;  %vm840_vm0 = vmmov 0   ;;  %v709_v1 = vld [vmem:[#allocation3] sm:$0xff]  }
  0x5b   : > { %630 = vmatprep.subr.bf16.mxu0 %v839_v0  ;;  %646 = vmatprep.mubr.msk.bf16.mxu0 %vm840_vm0, %v839_v0  ;;  %p287_p5 = scmp.lt.s32.totalorder %s595_s24, 3  ;;  %v710_v2 = vld [vmem:[#allocation3 + $0x8] sm:$0xff]   ;;  %v711_v3 = vld [vmem:[#allocation3 + $0x10] sm:$0xff]   ;;  %v712_v4 = vld [vmem:[#allocation3 + $0x18] sm:$0xff]  }
  0x5c   : > { %631 = vmatpush3.bf16.msra.mxu0 %v709_v1  ;;  %v713_v5 = vld [vmem:[#allocation3 + $0x20] sm:$0xff]   ;;  %v714_v6 = vld [vmem:[#allocation3 + $0x28] sm:$0xff]   ;;  %v715_v7 = vld [vmem:[#allocation3 + $0x30] sm:$0xff]  }
  0x5d   : > { %s1030_s24 = smov (!%p287_p5, %s595_s24), 3  ;;  %632 = vmatprep.subr.bf16.mxu0 %v839_v0  ;;  %v716_v8 = vld [vmem:[#allocation3 + $0x38] sm:$0xff]   ;;  %v608_v10 = vld [vmem:[#allocation5] ss:$0 sm:$0xff]  ;;  %v609_v14 = vld [vmem:[#allocation7] ss:$0 sm:$0xff] }
  0x5e   : > { %s596_s22 = sshll.u32 %s1030_s24, 2 }
  0x5f   : > { %s293_s7 = scalar_lea.vmem %s1009_s0, %s596_s22  ;;  %s303_s5 = scalar_lea.vmem %s1013_s4, %s596_s22 }
  0x60   : > { %633 = vmatpush3.bf16.msra.mxu0 %v710_v2  ;;  %v717_v9 = vld [vmem:[%s293_s7] sm:$0xff]  }
  0x61   : > { %634 = vmatprep.subr.bf16.mxu0 %v839_v0 }
  0x64   : > { %635 = vmatpush3.bf16.msra.mxu0 %v711_v3 }
  0x65   : > { %636 = vmatprep.subr.bf16.mxu0 %v839_v0 }
  0x68   : > { %637 = vmatpush3.bf16.msra.mxu0 %v712_v4 }
  0x69   : > { %638 = vmatprep.subr.bf16.mxu0 %v839_v0 }
  0x6c   : > { %639 = vmatpush3.bf16.msra.mxu0 %v713_v5 }
  0x6d   : > { %640 = vmatprep.subr.bf16.mxu0 %v839_v0 }
  0x70   : > { %641 = vmatpush3.bf16.msra.mxu0 %v714_v6 }
  0x71   : > { %642 = vmatprep.subr.bf16.mxu0 %v839_v0 }
  0x74   : > { %643 = vmatpush3.bf16.msra.mxu0 %v715_v7 }
  0x75   : > { %644 = vmatprep.subr.bf16.mxu0 %v839_v0 }
  0x78   : > { %645 = vmatpush3.bf16.msra.mxu0 %v716_v8 }
  0x7b   : > { %647 = vmatmul.mubr.bf16.vlgmr.msra.gmra.mrb[0].mxu0 %v717_v9 }
 0x14e   : > { %v420_v11 = vpop.f32.mrb[0].mxu0 }
 0x14f   : > { %v443_v12 = vmul.f32 %v608_v10, %v420_v11  ;;  %v648_v13 = vpop.f32.mrb[1].mxu0 }
 0x150   : > { %v423_v15 = vpop.f32.mrb[2].mxu0 }
 0x151   : > { %v444_v16 = vmul.f32 %v608_v10, %v423_v15  ;;  %v649_v17 = vpop.f32.mrb[3].mxu0  ;;  %v452_v18 = vadd.f32 %v609_v14, %v443_v12 }
 0x153   : > { %v453_v19 = vadd.f32 %v609_v14, %v444_v16 }
 0x155   : > { %v619_v20 = vpack.c.bf16 %v453_v19, %v452_v18 }
 0x157   : > { %620 = vst [vmem:[%s303_s5] sm:$0xff] %v619_v20  }
 0x158 PF: > { %s16_s17 = sadd.s32 1, %s832_s17   ;;  %s1025_s15 = smov %s828_s16 }
 0x159   : > { %p13_p8 = scmp.ge.s32.totalorder %s16_s17, 4   ;;  %s1026_s16 = smov %s1028_s23 }
 0x15b   :  { %15 = sbr.rel (!%p13_p8) target bundleno = 3 (0x3), region = 90 }
 0x162   :  { %492 = vsyncpa [#allocation4], 1 }
 0x163   :  { %494 = vsyncpa [#allocation4 + $0x1], 1 }
 0x164   :  { %495 = vsyncpa [#allocation6], 1 }

// kernel: vanilla_regnet_v2_forward.19
= control target key start
LH: loop header
LB: loop body
LE: loop exit
PB: predicated region body
PF: predicated region fallthrough
CT: control target
= control target key end

     0   :  { %s1062_s15 = smov 0   ;;  %s1064_s16 = smov 0   ;;  %s1204_s0 = inlined_call_operand.vmem [shape: bf16[32,512], index: 0, kind: input, shape index: {}]   ;;  %s1205_s1 = inlined_call_operand.vmem [shape: bf16[512,128], index: 1, kind: input, shape index: {}]   ;;  %s1206_s2 = inlined_call_operand.vmem [shape: f32[1,128], index: 2, kind: input, shape index: {}]   ;;  %s1207_s3 = inlined_call_operand.vmem [shape: f32[1,128], index: 3, kind: input, shape index: {}]   ;;  %s1208_s4 = inlined_call_operand.vmem [shape: bf16[32,128], index: 4, kind: output, shape index: {}]  }
   0x1   :  { %s1066_s17 = smov 0  }
   0x2 LB: > { %s33_s18 = sadd.s32 1, %s1031_s16  ;;  %p851_p0 = scmp.ge.s32.totalorder %s1035_s17, 1  ;;  %s1035_s17 = sphi %s1066_s17, %s14_s17   ;;  %s1031_s16 = sphi %s1064_s16, %s1210_s16   ;;  %s1027_s15 = sphi %s1062_s15, %s1209_s15  }
   0x3   : > { %p35_p1 = scmp.ge.s32.totalorder %s33_s18, 2  ;;  %p224_p2 = scmp.lt.s32.totalorder %s1035_s17, 3 }
   0x5   : > { %s1212_s18 = smov (%p35_p1, %s33_s18), 0  ;;  %p225_p3 = pnand %p851_p0, %p224_p2 }
   0x6   : > { %v975_v0 = vld [vmem:[%s1205_s1 + $0x40] sm:$0xff] (!%p225_p3)   ;;  %v979_v4 = vld [vmem:[%s1205_s1 + $0x48] sm:$0xff] (!%p225_p3)   ;;  %v983_v8 = vld [vmem:[%s1205_s1 + $0x50] sm:$0xff] (!%p225_p3)   ;;  %s852_s29 = sshll.u32 (!%p225_p3), %s1027_s15, 1 }
   0x7   : > { %228 = sbr.rel (%p225_p3) target bundleno = 269 (0x10d), region = 36  ;;  %v976_v1 = vld [vmem:[%s1205_s1 + $0xc0] sm:$0xff] (!%p225_p3)   ;;  %907 = vmatprep.subr.bf16.mxu0 (!%p225_p3), %v975_v0  ;;  %v980_v5 = vld [vmem:[%s1205_s1 + $0xc8] sm:$0xff] (!%p225_p3)   ;;  %v984_v9 = vld [vmem:[%s1205_s1 + $0xd0] sm:$0xff] (!%p225_p3)   ;;  %p274_p4 = scmp.lt.s32.totalorder (!%p225_p3), %s852_s29, 3 }
   0x8   : > { %v977_v2 = vld [vmem:[%s1205_s1] sm:$0xff] (!%p225_p3)   ;;  %929 = vmatprep.subr.bf16.mxu1 (!%p225_p3), %v976_v1  ;;  %v981_v6 = vld [vmem:[%s1205_s1 + $0x8] sm:$0xff] (!%p225_p3)   ;;  %v985_v10 = vld [vmem:[%s1205_s1 + $0x10] sm:$0xff] (!%p225_p3)  }
   0x9   : > { %v978_v3 = vld [vmem:[%s1205_s1 + $0x80] sm:$0xff] (!%p225_p3)   ;;  %908 = vmatpush3.bf16.msra.mxu0 (!%p225_p3), %v977_v2  ;;  %v982_v7 = vld [vmem:[%s1205_s1 + $0x88] sm:$0xff] (!%p225_p3)   ;;  %v986_v11 = vld [vmem:[%s1205_s1 + $0x90] sm:$0xff] (!%p225_p3)  }
   0xa   : > { %930 = vmatpush3.bf16.msra.mxu1 (!%p225_p3), %v978_v3  ;;  %909 = vmatprep.subr.bf16.mxu0 (!%p225_p3), %v979_v4  ;;  %v987_v12 = vld [vmem:[%s1205_s1 + $0x58] sm:$0xff] (!%p225_p3)   ;;  %v991_v16 = vld [vmem:[%s1205_s1 + $0x60] sm:$0xff] (!%p225_p3)   ;;  %v995_v20 = vld [vmem:[%s1205_s1 + $0x68] sm:$0xff] (!%p225_p3)  }
   0xb   : > { %931 = vmatprep.subr.bf16.mxu1 (!%p225_p3), %v980_v5  ;;  %v988_v13 = vld [vmem:[%s1205_s1 + $0xd8] sm:$0xff] (!%p225_p3)   ;;  %v992_v17 = vld [vmem:[%s1205_s1 + $0xe0] sm:$0xff] (!%p225_p3)   ;;  %v996_v21 = vld [vmem:[%s1205_s1 + $0xe8] sm:$0xff] (!%p225_p3)  }
   0xc   : > { %v989_v14 = vld [vmem:[%s1205_s1 + $0x18] sm:$0xff] (!%p225_p3)   ;;  %v993_v18 = vld [vmem:[%s1205_s1 + $0x20] sm:$0xff] (!%p225_p3)   ;;  %v997_v22 = vld [vmem:[%s1205_s1 + $0x28] sm:$0xff] (!%p225_p3)  }
   0xd   : > { %910 = vmatpush3.bf16.msra.mxu0 (!%p225_p3), %v981_v6  ;;  %v990_v15 = vld [vmem:[%s1205_s1 + $0x98] sm:$0xff] (!%p225_p3)   ;;  %v994_v19 = vld [vmem:[%s1205_s1 + $0xa0] sm:$0xff] (!%p225_p3)   ;;  %v998_v23 = vld [vmem:[%s1205_s1 + $0xa8] sm:$0xff] (!%p225_p3)  }
   0xe   : > { %932 = vmatpush3.bf16.msra.mxu1 %v982_v7  ;;  %911 = vmatprep.subr.bf16.mxu0 %v983_v8  ;;  %s1214_s29 = smov (!%p274_p4, %s852_s29), 3  ;;  %v999_v24 = vld [vmem:[%s1205_s1 + $0x70] sm:$0xff]   ;;  %v1003_v28 = vld [vmem:[%s1205_s1 + $0x78] sm:$0xff]   ;;  %v893_v45 = vld [vmem:[%s1206_s2] ss:$0 sm:$0xff] }
   0xf   : > { %933 = vmatprep.subr.bf16.mxu1 %v984_v9  ;;  %v1000_v25 = vld [vmem:[%s1205_s1 + $0xf0] sm:$0xff]   ;;  %s899_s30 = sshll.u32 %s1214_s29, 4  ;;  %v1004_v29 = vld [vmem:[%s1205_s1 + $0xf8] sm:$0xff]   ;;  %v894_v50 = vld [vmem:[%s1207_s3] ss:$0 sm:$0xff]  ;;  %s856_s25 = sshll.u32 %s1214_s29, 2 }
  0x10   : > { %v1001_v26 = vld [vmem:[%s1205_s1 + $0x30] sm:$0xff]   ;;  %s281_s12 = scalar_lea.vmem %s1204_s0, %s899_s30  ;;  %v1005_v30 = vld [vmem:[%s1205_s1 + $0x38] sm:$0xff]   ;;  %s306_s28 = scalar_lea.vmem %s1208_s4, %s856_s25 }
  0x11   : > { %912 = vmatpush3.bf16.msra.mxu0 %v985_v10  ;;  %v1002_v27 = vld [vmem:[%s1205_s1 + $0xb0] sm:$0xff]   ;;  %v1006_v31 = vld [vmem:[%s1205_s1 + $0xb8] sm:$0xff]  }
  0x12   : > { %934 = vmatpush3.bf16.msra.mxu1 %v986_v11  ;;  %913 = vmatprep.subr.bf16.mxu0 %v987_v12  ;;  %v1007_v32 = vld [vmem:[%s281_s12] ss:$16 sps:$4 sm:$0xff]   ;;  %v1009_v33 = vld [vmem:[%s281_s12 + $0x4] ss:$16 sps:$4 sm:$0xff]   ;;  %v1010_v34 = vld [vmem:[%s281_s12 + $0x8] ss:$16 sps:$4 sm:$0xff]  }
  0x13   : > { %935 = vmatprep.subr.bf16.mxu1 %v988_v13  ;;  %v1012_v35 = vld [vmem:[%s281_s12 + $0xc] ss:$16 sps:$4 sm:$0xff]   ;;  %629 = vmatprep.mubr.bf16.mxu0 %v1009_v33 }
  0x14   : > { %670 = vmatprep.mubr.bf16.mxu1 %v1012_v35 }
  0x15   : > { %914 = vmatpush3.bf16.msra.mxu0 %v989_v14 }
  0x16   : > { %936 = vmatpush3.bf16.msra.mxu1 %v990_v15  ;;  %915 = vmatprep.subr.bf16.mxu0 %v991_v16 }
  0x17   : > { %937 = vmatprep.subr.bf16.mxu1 %v992_v17 }
  0x19   : > { %916 = vmatpush3.bf16.msra.mxu0 %v993_v18 }
  0x1a   : > { %938 = vmatpush3.bf16.msra.mxu1 %v994_v19  ;;  %917 = vmatprep.subr.bf16.mxu0 %v995_v20 }
  0x1b   : > { %939 = vmatprep.subr.bf16.mxu1 %v996_v21 }
  0x1d   : > { %918 = vmatpush3.bf16.msra.mxu0 %v997_v22 }
  0x1e   : > { %940 = vmatpush3.bf16.msra.mxu1 %v998_v23  ;;  %919 = vmatprep.subr.bf16.mxu0 %v999_v24 }
  0x1f   : > { %941 = vmatprep.subr.bf16.mxu1 %v1000_v25 }
  0x21   : > { %920 = vmatpush3.bf16.msra.mxu0 %v1001_v26 }
  0x22   : > { %942 = vmatpush3.bf16.msra.mxu1 %v1002_v27  ;;  %921 = vmatprep.subr.bf16.mxu0 %v1003_v28 }
  0x23   : > { %943 = vmatprep.subr.bf16.mxu1 %v1004_v29 }
  0x25   : > { %922 = vmatpush3.bf16.msra.mxu0 %v1005_v30 }
  0x26   : > { %944 = vmatpush3.bf16.msra.mxu1 %v1006_v31 }
  0x28   : > { %630 = vmatmul.mubr.bf16.vlgmr.msra.gmra.mrb[0].mxu0 %v1007_v32 }
  0x29   : > { %671 = vmatmul.mubr.bf16.vlgmr.msra.gmra.mrb[0].mxu1 %v1010_v34 }
  0xfb   : > { %v923_v36 = vpop.f32.mrb[0].mxu0 }
  0xfc   : > { %v945_v37 = vpop.f32.mrb[0].mxu1  ;;  %v924_v38 = vpop.f32.mrb[1].mxu0 }
  0xfd   : > { %v925_v39 = vadd.f32 %v924_v38, %v923_v36  ;;  %v946_v40 = vpop.f32.mrb[1].mxu1  ;;  %v926_v41 = vpop.f32.mrb[2].mxu0 }
  0xfe   : > { %v947_v42 = vadd.f32 %v946_v40, %v945_v37  ;;  %v948_v43 = vpop.f32.mrb[2].mxu1  ;;  %v927_v44 = vpop.f32.mrb[3].mxu0 }
  0xff   : > { %v928_v46 = vadd.f32 %v927_v44, %v926_v41  ;;  %v949_v47 = vpop.f32.mrb[3].mxu1 }
 0x100   : > { %v673_v48 = vadd.f32 %v947_v42, %v925_v39  ;;  %v950_v49 = vadd.f32 %v949_v47, %v948_v43 }
 0x102   : > { %v695_v51 = vmul.f32 %v893_v45, %v673_v48  ;;  %v676_v52 = vadd.f32 %v950_v49, %v928_v46 }
 0x104   : > { %v704_v53 = vadd.f32 %v894_v50, %v695_v51  ;;  %v696_v54 = vmul.f32 %v893_v45, %v676_v52 }
 0x106   : > { %v705_v55 = vadd.f32 %v894_v50, %v696_v54  ;;  %v706_v56 = vmax.f32 %v704_v53, 0.0 }
 0x108   : > { %v707_v57 = vmax.f32 %v705_v55, 0.0 }
 0x10a   : > { %v905_v58 = vpack.c.bf16 %v707_v57, %v706_v56 }
 0x10c   : > { %906 = vst [vmem:[%s306_s28] sm:$0xff] %v905_v58  }
 0x10d PF: > { %s14_s17 = sadd.s32 1, %s1035_s17   ;;  %s1209_s15 = smov %s1031_s16 }
 0x10e   : > { %p11_p5 = scmp.ge.s32.totalorder %s14_s17, 4   ;;  %s1210_s16 = smov %s1212_s18 }
 0x110   :  { %13 = sbr.rel (!%p11_p5) target bundleno = 2 (0x2), region = 83 }

// kernel: vanilla_regnet_v2_forward.20
= control target key start
LH: loop header
LB: loop body
LE: loop exit
PB: predicated region body
PF: predicated region fallthrough
CT: control target
= control target key end

     0   :  { %v356_v0 = vmov 0.0   ;;  %vm357_vm0 = vmmov 0   ;;  %s448_s1 = inlined_call_operand.vmem [shape: bf16[128,128], index: 1, kind: input, shape index: {}]   ;;  %s449_s3 = inlined_call_operand.vmem [shape: bf16[128,128], index: 3, kind: input, shape index: {}]   ;;  %s450_s0 = inlined_call_operand.vmem [shape: bf16[2,128], index: 0, kind: input, shape index: {}]   ;;  %s451_s2 = inlined_call_operand.vmem [shape: f32[1,128], index: 2, kind: input, shape index: {}]   ;;  %s452_s4 = inlined_call_operand.vmem [shape: f32[1,128], index: 4, kind: input, shape index: {}]   ;;  %s453_s5 = inlined_call_operand.vmem [shape: f32[2,128], index: 5, kind: output, shape index: {}]  }
   0x1   :  { %294 = vmatprep.subr.bf16.mxu0 %v356_v0  ;;  %v336_v1 = vld [vmem:[%s448_s1] sm:$0xff]   ;;  %310 = vmatprep.mubr.msk.bf16.mxu0 %vm357_vm0, %v356_v0  ;;  %v337_v2 = vld [vmem:[%s448_s1 + $0x8] sm:$0xff]   ;;  %v338_v3 = vld [vmem:[%s448_s1 + $0x10] sm:$0xff]  }
   0x2   :  { %314 = vmatprep.subr.bf16.mxu1 %v356_v0  ;;  %330 = vmatprep.mubr.msk.bf16.mxu1 %vm357_vm0, %v356_v0  ;;  %v344_v4 = vld [vmem:[%s449_s3] sm:$0xff]   ;;  %v339_v5 = vld [vmem:[%s448_s1 + $0x18] sm:$0xff]   ;;  %v345_v6 = vld [vmem:[%s449_s3 + $0x8] sm:$0xff]  }
   0x3   :  { %295 = vmatpush3.bf16.msra.mxu0 %v336_v1  ;;  %315 = vmatpush3.bf16.msra.mxu1 %v344_v4  ;;  %v340_v7 = vld [vmem:[%s448_s1 + $0x20] sm:$0xff]   ;;  %v346_v8 = vld [vmem:[%s449_s3 + $0x10] sm:$0xff]   ;;  %v341_v9 = vld [vmem:[%s448_s1 + $0x28] sm:$0xff]  }
   0x4   :  { %296 = vmatprep.subr.bf16.mxu0 %v356_v0  ;;  %316 = vmatprep.subr.bf16.mxu1 %v356_v0  ;;  %v347_v10 = vld [vmem:[%s449_s3 + $0x18] sm:$0xff]   ;;  %v342_v11 = vld [vmem:[%s448_s1 + $0x30] sm:$0xff]   ;;  %v348_v12 = vld [vmem:[%s449_s3 + $0x20] sm:$0xff]  }
   0x5   :  { %v343_v13 = vld [vmem:[%s448_s1 + $0x38] sm:$0xff]   ;;  %v349_v14 = vld [vmem:[%s449_s3 + $0x28] sm:$0xff]   ;;  %v21_v15 = vld [vmem:[%s450_s0] sm:$0x1] }
   0x6   :  { %v350_v16 = vld [vmem:[%s449_s3 + $0x30] sm:$0xff]   ;;  %v351_v17 = vld [vmem:[%s449_s3 + $0x38] sm:$0xff]   ;;  %v257_v18 = vld [vmem:[%s451_s2] ss:$0 sm:$0xff] }
   0x7   :  { %297 = vmatpush3.bf16.msra.mxu0 %v337_v2  ;;  %317 = vmatpush3.bf16.msra.mxu1 %v345_v6  ;;  %v266_v26 = vld [vmem:[%s452_s4] ss:$0 sm:$0xff] }
   0x8   :  { %298 = vmatprep.subr.bf16.mxu0 %v356_v0  ;;  %318 = vmatprep.subr.bf16.mxu1 %v356_v0 }
   0xb   :  { %299 = vmatpush3.bf16.msra.mxu0 %v338_v3  ;;  %319 = vmatpush3.bf16.msra.mxu1 %v346_v8 }
   0xc   :  { %300 = vmatprep.subr.bf16.mxu0 %v356_v0  ;;  %320 = vmatprep.subr.bf16.mxu1 %v356_v0 }
   0xf   :  { %301 = vmatpush3.bf16.msra.mxu0 %v339_v5  ;;  %321 = vmatpush3.bf16.msra.mxu1 %v347_v10 }
  0x10   :  { %302 = vmatprep.subr.bf16.mxu0 %v356_v0  ;;  %322 = vmatprep.subr.bf16.mxu1 %v356_v0 }
  0x13   :  { %303 = vmatpush3.bf16.msra.mxu0 %v340_v7  ;;  %323 = vmatpush3.bf16.msra.mxu1 %v348_v12 }
  0x14   :  { %304 = vmatprep.subr.bf16.mxu0 %v356_v0  ;;  %324 = vmatprep.subr.bf16.mxu1 %v356_v0 }
  0x17   :  { %305 = vmatpush3.bf16.msra.mxu0 %v341_v9  ;;  %325 = vmatpush3.bf16.msra.mxu1 %v349_v14 }
  0x18   :  { %306 = vmatprep.subr.bf16.mxu0 %v356_v0  ;;  %326 = vmatprep.subr.bf16.mxu1 %v356_v0 }
  0x1b   :  { %307 = vmatpush3.bf16.msra.mxu0 %v342_v11  ;;  %327 = vmatpush3.bf16.msra.mxu1 %v350_v16 }
  0x1c   :  { %308 = vmatprep.subr.bf16.mxu0 %v356_v0  ;;  %328 = vmatprep.subr.bf16.mxu1 %v356_v0 }
  0x1f   :  { %309 = vmatpush3.bf16.msra.mxu0 %v343_v13  ;;  %329 = vmatpush3.bf16.msra.mxu1 %v351_v17 }
  0x22   :  { %311 = vmatmul.mubr.bf16.vlgmr.msra.gmra.mrb[0].mxu0 %v21_v15 }
  0xf5   :  { %v127_v19 = vpop.f32.mrb[0].mxu0 }
  0xf6   :  { %v128_v20 = vadd.f32 %v257_v18, %v127_v19  ;;  %v312_v21 = vpop.f32.mrb[1].mxu0 }
  0xf7   :  { %v130_v22 = vpop.f32.mrb[2].mxu0 }
  0xf8   :  { %v133_v23 = vmax.f32 %v128_v20, 0.0  ;;  %v313_v24 = vpop.f32.mrb[3].mxu0 }
  0xfa   :  { %v134_v25 = vpack.c.bf16 %v133_v23, %v133_v23 }
  0xfc   :  { %331 = vmatmul.mubr.bf16.vlgmr.msra.gmra.mrb[0].mxu1 %v134_v25 }
 0x1cf   :  { %v240_v27 = vpop.f32.mrb[0].mxu1 }
 0x1d0   :  { %v241_v28 = vadd.f32 %v266_v26, %v240_v27  ;;  %v332_v29 = vpop.f32.mrb[1].mxu1 }
 0x1d1   :  { %v243_v30 = vpop.f32.mrb[2].mxu1 }
 0x1d2   :  { %v275_v31 = vmul.f32 -1.442695, %v241_v28  ;;  %v333_v32 = vpop.f32.mrb[3].mxu1 }
 0x1d4   :  { %352 = vpow2.f32 %v275_v31 }
 0x1de   :  { %v353_v33 = vpop.eup %352 }
 0x1df   :  { %v249_v34 = vadd.f32 1.0, %v353_v33 }
 0x1e1   :  { %354 = vrcp.f32 %v249_v34 }
 0x1eb   :  { %v355_v35 = vpop.eup %354 }
 0x1ec   :  { %252 = vst [vmem:[%s453_s5] sm:$0x3] %v355_v35 }

// kernel: vanilla_regnet_v2_forward.22
= control target key start
LH: loop header
LB: loop body
LE: loop exit
PB: predicated region body
PF: predicated region fallthrough
CT: control target
= control target key end

     0   :  { %s825_s18 = smov 0   ;;  %s827_s19 = smov 0   ;;  %s896_s0 = inlined_call_operand.vmem [shape: bf16[32,128], index: 0, kind: input, shape index: {}]   ;;  %s897_s1 = inlined_call_operand.vmem [shape: bf16[128,128], index: 1, kind: input, shape index: {}]   ;;  %s898_s2 = inlined_call_operand.vmem [shape: f32[1,128], index: 2, kind: input, shape index: {}]   ;;  %s899_s3 = inlined_call_operand.vmem [shape: f32[1,128], index: 3, kind: input, shape index: {}]   ;;  %s900_s4 = inlined_call_operand.vmem [shape: bf16[32,128], index: 4, kind: input, shape index: {}]   ;;  %s901_s5 = inlined_call_operand.vmem [shape: bf16[32,128], index: 5, kind: output, shape index: {}]  }
   0x1   :  { %s829_s20 = smov 0  }
   0x2 LB: > { %s34_s21 = sadd.s32 1, %s787_s19  ;;  %p672_p0 = scmp.ge.s32.totalorder %s791_s20, 1  ;;  %s791_s20 = sphi %s829_s20, %s15_s20   ;;  %s787_s19 = sphi %s827_s19, %s903_s19   ;;  %s783_s18 = sphi %s825_s18, %s902_s18  }
   0x3   : > { %p36_p1 = scmp.ge.s32.totalorder %s34_s21, 2  ;;  %p262_p2 = scmp.lt.s32.totalorder %s791_s20, 3 }
   0x5   : > { %s905_s21 = smov (%p36_p1, %s34_s21), 0  ;;  %p263_p3 = pnand %p672_p0, %p262_p2 }
   0x6   : > { %v760_v0 = vld [vmem:[%s897_s1] sm:$0xff] (!%p263_p3)   ;;  %v793_v1 = vmov (!%p263_p3), 0.0   ;;  %v761_v2 = vld [vmem:[%s897_s1 + $0x8] sm:$0xff] (!%p263_p3)   ;;  %vm794_vm0 = vmmov (!%p263_p3), 0   ;;  %s673_s26 = sshll.u32 (!%p263_p3), %s783_s18, 1  ;;  %v762_v3 = vld [vmem:[%s897_s1 + $0x10] sm:$0xff] (!%p263_p3)  }
   0x7   : > { %266 = sbr.rel (%p263_p3) target bundleno = 264 (0x108), region = 40  ;;  %714 = vmatprep.subr.bf16.mxu0 (!%p263_p3), %v793_v1  ;;  %730 = vmatprep.mubr.msk.bf16.mxu0 (!%p263_p3), %vm794_vm0, %v793_v1  ;;  %p319_p4 = scmp.lt.s32.totalorder (!%p263_p3), %s673_s26, 3  ;;  %v763_v4 = vld [vmem:[%s897_s1 + $0x18] sm:$0xff] (!%p263_p3)   ;;  %v764_v5 = vld [vmem:[%s897_s1 + $0x20] sm:$0xff] (!%p263_p3)   ;;  %v765_v6 = vld [vmem:[%s897_s1 + $0x28] sm:$0xff] (!%p263_p3)  }
   0x8   : > { %715 = vmatpush3.bf16.msra.mxu0 (!%p263_p3), %v760_v0  ;;  %v766_v7 = vld [vmem:[%s897_s1 + $0x30] sm:$0xff] (!%p263_p3)   ;;  %v767_v8 = vld [vmem:[%s897_s1 + $0x38] sm:$0xff] (!%p263_p3)   ;;  %v688_v10 = vld [vmem:[%s898_s2] ss:$0 sm:$0xff] (!%p263_p3) }
   0x9   : > { %716 = vmatprep.subr.bf16.mxu0 (!%p263_p3), %v793_v1  ;;  %v689_v13 = vld [vmem:[%s899_s3] ss:$0 sm:$0xff] (!%p263_p3) }
   0xc   : > { %717 = vmatpush3.bf16.msra.mxu0 (!%p263_p3), %v761_v2 }
   0xd   : > { %718 = vmatprep.subr.bf16.mxu0 (!%p263_p3), %v793_v1 }
   0xe   : > { %s907_s26 = smov (!%p319_p4, %s673_s26), 3 }
   0xf   : > { %s852_s29 = sshll.u32 %s907_s26, 2 }
  0x10   : > { %s325_s7 = scalar_lea.vmem %s896_s0, %s852_s29  ;;  %719 = vmatpush3.bf16.msra.mxu0 %v762_v3  ;;  %s349_s23 = scalar_lea.vmem %s900_s4, %s852_s29 }
  0x11   : > { %720 = vmatprep.subr.bf16.mxu0 %v793_v1  ;;  %v768_v9 = vld [vmem:[%s325_s7] sm:$0xff]   ;;  %s358_s6 = scalar_lea.vmem %s901_s5, %s852_s29 }
  0x12   : > { %v697_v11 = vld [vmem:[%s349_s23] sm:$0xff]  }
  0x13   : > { %v698_v15 = vunpack.c.l.bf16 %v697_v11  ;;  %v699_v20 = vunpack.c.h.bf16 %v697_v11 }
  0x14   : > { %721 = vmatpush3.bf16.msra.mxu0 %v763_v4 }
  0x15   : > { %722 = vmatprep.subr.bf16.mxu0 %v793_v1 }
  0x18   : > { %723 = vmatpush3.bf16.msra.mxu0 %v764_v5 }
  0x19   : > { %724 = vmatprep.subr.bf16.mxu0 %v793_v1 }
  0x1c   : > { %725 = vmatpush3.bf16.msra.mxu0 %v765_v6 }
  0x1d   : > { %726 = vmatprep.subr.bf16.mxu0 %v793_v1 }
  0x20   : > { %727 = vmatpush3.bf16.msra.mxu0 %v766_v7 }
  0x21   : > { %728 = vmatprep.subr.bf16.mxu0 %v793_v1 }
  0x24   : > { %729 = vmatpush3.bf16.msra.mxu0 %v767_v8 }
  0x27   : > { %731 = vmatmul.mubr.bf16.vlgmr.msra.gmra.mrb[0].mxu0 %v768_v9 }
  0xfa   : > { %v475_v12 = vpop.f32.mrb[0].mxu0 }
  0xfb   : > { %v498_v14 = vmul.f32 %v688_v10, %v475_v12  ;;  %v732_v16 = vpop.f32.mrb[1].mxu0 }
  0xfc   : > { %v478_v17 = vpop.f32.mrb[2].mxu0 }
  0xfd   : > { %v507_v18 = vadd.f32 %v689_v13, %v498_v14  ;;  %v499_v19 = vmul.f32 %v688_v10, %v478_v17  ;;  %v733_v21 = vpop.f32.mrb[3].mxu0 }
  0xff   : > { %v513_v22 = vadd.f32 %v698_v15, %v507_v18  ;;  %v508_v23 = vadd.f32 %v689_v13, %v499_v19 }
 0x101   : > { %v514_v24 = vadd.f32 %v699_v20, %v508_v23  ;;  %v515_v25 = vmax.f32 %v513_v22, 0.0 }
 0x103   : > { %v516_v26 = vmax.f32 %v514_v24, 0.0 }
 0x105   : > { %v703_v27 = vpack.c.bf16 %v516_v26, %v515_v25 }
 0x107   : > { %704 = vst [vmem:[%s358_s6] sm:$0xff] %v703_v27  }
 0x108 PF: > { %s15_s20 = sadd.s32 1, %s791_s20   ;;  %s902_s18 = smov %s787_s19 }
 0x109   : > { %p12_p5 = scmp.ge.s32.totalorder %s15_s20, 4   ;;  %s903_s19 = smov %s905_s21 }
 0x10b   :  { %14 = sbr.rel (!%p12_p5) target bundleno = 2 (0x2), region = 90 }

// kernel: vanilla_regnet_v2_forward.23
= control target key start
LH: loop header
LB: loop body
LE: loop exit
PB: predicated region body
PF: predicated region fallthrough
CT: control target
= control target key end

     0   :  { %s733_s15 = smov 0   ;;  %s735_s16 = smov 0   ;;  %s803_s0 = inlined_call_operand.vmem [shape: bf16[32,128], index: 0, kind: input, shape index: {}]   ;;  %s804_s1 = inlined_call_operand.vmem [shape: bf16[128,128], index: 1, kind: input, shape index: {}]   ;;  %s805_s2 = inlined_call_operand.vmem [shape: f32[1,128], index: 2, kind: input, shape index: {}]   ;;  %s806_s3 = inlined_call_operand.vmem [shape: f32[1,128], index: 3, kind: input, shape index: {}]   ;;  %s807_s4 = inlined_call_operand.vmem [shape: bf16[32,128], index: 4, kind: output, shape index: {}]  }
   0x1   :  { %s737_s17 = smov 0  }
   0x2 LB: > { %s33_s18 = sadd.s32 1, %s700_s16  ;;  %p591_p0 = scmp.ge.s32.totalorder %s704_s17, 1  ;;  %s704_s17 = sphi %s737_s17, %s14_s17   ;;  %s700_s16 = sphi %s735_s16, %s809_s16   ;;  %s696_s15 = sphi %s733_s15, %s808_s15  }
   0x3   : > { %p35_p1 = scmp.ge.s32.totalorder %s33_s18, 2  ;;  %p221_p2 = scmp.lt.s32.totalorder %s704_s17, 3 }
   0x5   : > { %s811_s18 = smov (%p35_p1, %s33_s18), 0  ;;  %p222_p3 = pnand %p591_p0, %p221_p2 }
   0x6   : > { %v673_v0 = vld [vmem:[%s804_s1] sm:$0xff] (!%p222_p3)   ;;  %v706_v1 = vmov (!%p222_p3), 0.0   ;;  %v674_v2 = vld [vmem:[%s804_s1 + $0x8] sm:$0xff] (!%p222_p3)   ;;  %vm707_vm0 = vmmov (!%p222_p3), 0   ;;  %s592_s23 = sshll.u32 (!%p222_p3), %s696_s15, 1  ;;  %v675_v3 = vld [vmem:[%s804_s1 + $0x10] sm:$0xff] (!%p222_p3)  }
   0x7   : > { %225 = sbr.rel (%p222_p3) target bundleno = 262 (0x106), region = 36  ;;  %627 = vmatprep.subr.bf16.mxu0 (!%p222_p3), %v706_v1  ;;  %643 = vmatprep.mubr.msk.bf16.mxu0 (!%p222_p3), %vm707_vm0, %v706_v1  ;;  %p268_p4 = scmp.lt.s32.totalorder (!%p222_p3), %s592_s23, 3  ;;  %v676_v4 = vld [vmem:[%s804_s1 + $0x18] sm:$0xff] (!%p222_p3)   ;;  %v677_v5 = vld [vmem:[%s804_s1 + $0x20] sm:$0xff] (!%p222_p3)   ;;  %v678_v6 = vld [vmem:[%s804_s1 + $0x28] sm:$0xff] (!%p222_p3)  }
   0x8   : > { %628 = vmatpush3.bf16.msra.mxu0 (!%p222_p3), %v673_v0  ;;  %v679_v7 = vld [vmem:[%s804_s1 + $0x30] sm:$0xff] (!%p222_p3)   ;;  %v680_v8 = vld [vmem:[%s804_s1 + $0x38] sm:$0xff] (!%p222_p3)   ;;  %v605_v10 = vld [vmem:[%s805_s2] ss:$0 sm:$0xff] (!%p222_p3) }
   0x9   : > { %629 = vmatprep.subr.bf16.mxu0 (!%p222_p3), %v706_v1  ;;  %v606_v12 = vld [vmem:[%s806_s3] ss:$0 sm:$0xff] (!%p222_p3) }
   0xc   : > { %630 = vmatpush3.bf16.msra.mxu0 (!%p222_p3), %v674_v2 }
   0xd   : > { %631 = vmatprep.subr.bf16.mxu0 (!%p222_p3), %v706_v1 }
   0xe   : > { %s813_s23 = smov (!%p268_p4, %s592_s23), 3 }
   0xf   : > { %s593_s26 = sshll.u32 %s813_s23, 2 }
  0x10   : > { %s274_s29 = scalar_lea.vmem %s803_s0, %s593_s26  ;;  %632 = vmatpush3.bf16.msra.mxu0 %v675_v3  ;;  %s298_s24 = scalar_lea.vmem %s807_s4, %s593_s26 }
  0x11   : > { %633 = vmatprep.subr.bf16.mxu0 %v706_v1  ;;  %v681_v9 = vld [vmem:[%s274_s29] sm:$0xff]  }
  0x14   : > { %634 = vmatpush3.bf16.msra.mxu0 %v676_v4 }
  0x15   : > { %635 = vmatprep.subr.bf16.mxu0 %v706_v1 }
  0x18   : > { %636 = vmatpush3.bf16.msra.mxu0 %v677_v5 }
  0x19   : > { %637 = vmatprep.subr.bf16.mxu0 %v706_v1 }
  0x1c   : > { %638 = vmatpush3.bf16.msra.mxu0 %v678_v6 }
  0x1d   : > { %639 = vmatprep.subr.bf16.mxu0 %v706_v1 }
  0x20   : > { %640 = vmatpush3.bf16.msra.mxu0 %v679_v7 }
  0x21   : > { %641 = vmatprep.subr.bf16.mxu0 %v706_v1 }
  0x24   : > { %642 = vmatpush3.bf16.msra.mxu0 %v680_v8 }
  0x27   : > { %644 = vmatmul.mubr.bf16.vlgmr.msra.gmra.mrb[0].mxu0 %v681_v9 }
  0xfa   : > { %v415_v11 = vpop.f32.mrb[0].mxu0 }
  0xfb   : > { %v438_v13 = vmul.f32 %v605_v10, %v415_v11  ;;  %v645_v14 = vpop.f32.mrb[1].mxu0 }
  0xfc   : > { %v418_v15 = vpop.f32.mrb[2].mxu0 }
  0xfd   : > { %v447_v16 = vadd.f32 %v606_v12, %v438_v13  ;;  %v439_v17 = vmul.f32 %v605_v10, %v418_v15  ;;  %v646_v18 = vpop.f32.mrb[3].mxu0 }
  0xff   : > { %v448_v19 = vadd.f32 %v606_v12, %v439_v17  ;;  %v449_v20 = vmax.f32 %v447_v16, 0.0 }
 0x101   : > { %v450_v21 = vmax.f32 %v448_v19, 0.0 }
 0x103   : > { %v616_v22 = vpack.c.bf16 %v450_v21, %v449_v20 }
 0x105   : > { %617 = vst [vmem:[%s298_s24] sm:$0xff] %v616_v22  }
 0x106 PF: > { %s14_s17 = sadd.s32 1, %s704_s17   ;;  %s808_s15 = smov %s700_s16 }
 0x107   : > { %p11_p5 = scmp.ge.s32.totalorder %s14_s17, 4   ;;  %s809_s16 = smov %s811_s18 }
 0x109   :  { %13 = sbr.rel (!%p11_p5) target bundleno = 2 (0x2), region = 83 }

// kernel: vanilla_regnet_v2_forward.26
= control target key start
LH: loop header
LB: loop body
LE: loop exit
PB: predicated region body
PF: predicated region fallthrough
CT: control target
= control target key end

     0   :  { %v206_v0 = vmov 0.0   ;;  %vm207_vm0 = vmmov 0   ;;  %s269_s1 = inlined_call_operand.vmem [shape: bf16[128,128], index: 1, kind: input, shape index: {}]   ;;  %s270_s0 = inlined_call_operand.vmem [shape: bf16[8,128], index: 0, kind: input, shape index: {}]   ;;  %s271_s2 = inlined_call_operand.vmem [shape: f32[1,128], index: 2, kind: input, shape index: {}]   ;;  %s272_s3 = inlined_call_operand.vmem [shape: f32[1,128], index: 3, kind: input, shape index: {}]   ;;  %s273_s4 = inlined_call_operand.vmem [shape: bf16[8,128], index: 4, kind: output, shape index: {}]  }
   0x1   :  { %176 = vmatprep.subr.bf16.mxu0 %v206_v0  ;;  %v198_v1 = vld [vmem:[%s269_s1] sm:$0xff]   ;;  %192 = vmatprep.mubr.msk.bf16.mxu0 %vm207_vm0, %v206_v0  ;;  %v199_v2 = vld [vmem:[%s269_s1 + $0x8] sm:$0xff]   ;;  %v200_v3 = vld [vmem:[%s269_s1 + $0x10] sm:$0xff]  }
   0x2   :  { %177 = vmatpush3.bf16.msra.mxu0 %v198_v1  ;;  %v201_v4 = vld [vmem:[%s269_s1 + $0x18] sm:$0xff]   ;;  %v202_v5 = vld [vmem:[%s269_s1 + $0x20] sm:$0xff]   ;;  %v203_v6 = vld [vmem:[%s269_s1 + $0x28] sm:$0xff]  }
   0x3   :  { %178 = vmatprep.subr.bf16.mxu0 %v206_v0  ;;  %v204_v7 = vld [vmem:[%s269_s1 + $0x30] sm:$0xff]   ;;  %v205_v8 = vld [vmem:[%s269_s1 + $0x38] sm:$0xff]   ;;  %v24_v9 = vld [vmem:[%s270_s0] sm:$0xf] }
   0x4   :  { %v165_v10 = vld [vmem:[%s271_s2] ss:$0 sm:$0xff] }
   0x5   :  { %v166_v12 = vld [vmem:[%s272_s3] ss:$0 sm:$0xff] }
   0x6   :  { %179 = vmatpush3.bf16.msra.mxu0 %v199_v2 }
   0x7   :  { %180 = vmatprep.subr.bf16.mxu0 %v206_v0 }
   0xa   :  { %181 = vmatpush3.bf16.msra.mxu0 %v200_v3 }
   0xb   :  { %182 = vmatprep.subr.bf16.mxu0 %v206_v0 }
   0xe   :  { %183 = vmatpush3.bf16.msra.mxu0 %v201_v4 }
   0xf   :  { %184 = vmatprep.subr.bf16.mxu0 %v206_v0 }
  0x12   :  { %185 = vmatpush3.bf16.msra.mxu0 %v202_v5 }
  0x13   :  { %186 = vmatprep.subr.bf16.mxu0 %v206_v0 }
  0x16   :  { %187 = vmatpush3.bf16.msra.mxu0 %v203_v6 }
  0x17   :  { %188 = vmatprep.subr.bf16.mxu0 %v206_v0 }
  0x1a   :  { %189 = vmatpush3.bf16.msra.mxu0 %v204_v7 }
  0x1b   :  { %190 = vmatprep.subr.bf16.mxu0 %v206_v0 }
  0x1e   :  { %191 = vmatpush3.bf16.msra.mxu0 %v205_v8 }
  0x21   :  { %193 = vmatmul.mubr.bf16.vlgmr.msra.gmra.mrb[0].mxu0 %v24_v9 }
  0xf4   :  { %v123_v11 = vpop.f32.mrb[0].mxu0 }
  0xf5   :  { %v142_v13 = vmul.f32 %v165_v10, %v123_v11  ;;  %v194_v14 = vpop.f32.mrb[1].mxu0 }
  0xf6   :  { %v126_v15 = vpop.f32.mrb[2].mxu0 }
  0xf7   :  { %v150_v16 = vadd.f32 %v166_v12, %v142_v13  ;;  %v195_v17 = vpop.f32.mrb[3].mxu0 }
  0xf9   :  { %v151_v18 = vpack.c.bf16 %v150_v16, %v150_v16 }
  0xfb   :  { %152 = vst [vmem:[%s273_s4] sm:$0xf] %v151_v18 }

// kernel: vanilla_regnet_v2_forward.24
= control target key start
LH: loop header
LB: loop body
LE: loop exit
PB: predicated region body
PF: predicated region fallthrough
CT: control target
= control target key end

     0   :  { %v681_v36 = vmov 0.0   ;;  %vm682_vm0 = vmmov 0   ;;  %s846_s1 = inlined_call_operand.vmem [shape: bf16[640,128], index: 1, kind: input, shape index: {}]   ;;  %s847_s0 = inlined_call_operand.vmem [shape: bf16[8,640], index: 0, kind: input, shape index: {}]   ;;  %s848_s2 = inlined_call_operand.vmem [shape: f32[1,128], index: 2, kind: input, shape index: {}]   ;;  %s849_s3 = inlined_call_operand.vmem [shape: f32[1,128], index: 3, kind: input, shape index: {}]   ;;  %s850_s4 = inlined_call_operand.vmem [shape: bf16[8,128], index: 4, kind: output, shape index: {}]  }
   0x1   :  { %v636_v0 = vld [vmem:[%s846_s1 + $0x40] sm:$0xff]   ;;  %v640_v4 = vld [vmem:[%s846_s1 + $0x48] sm:$0xff]   ;;  %v644_v8 = vld [vmem:[%s846_s1 + $0x50] sm:$0xff]  }
   0x2   :  { %v637_v1 = vld [vmem:[%s846_s1 + $0xc0] sm:$0xff]   ;;  %561 = vmatprep.subr.bf16.mxu0 %v636_v0  ;;  %v641_v5 = vld [vmem:[%s846_s1 + $0xc8] sm:$0xff]   ;;  %v645_v9 = vld [vmem:[%s846_s1 + $0xd0] sm:$0xff]  }
   0x3   :  { %v638_v2 = vld [vmem:[%s846_s1] sm:$0xff]   ;;  %583 = vmatprep.subr.bf16.mxu1 %v637_v1  ;;  %v642_v6 = vld [vmem:[%s846_s1 + $0x8] sm:$0xff]   ;;  %v646_v10 = vld [vmem:[%s846_s1 + $0x10] sm:$0xff]  }
   0x4   :  { %v639_v3 = vld [vmem:[%s846_s1 + $0x80] sm:$0xff]   ;;  %562 = vmatpush3.bf16.msra.mxu0 %v638_v2  ;;  %v643_v7 = vld [vmem:[%s846_s1 + $0x88] sm:$0xff]   ;;  %v647_v11 = vld [vmem:[%s846_s1 + $0x90] sm:$0xff]  }
   0x5   :  { %584 = vmatpush3.bf16.msra.mxu1 %v639_v3  ;;  %563 = vmatprep.subr.bf16.mxu0 %v640_v4  ;;  %v648_v12 = vld [vmem:[%s846_s1 + $0x58] sm:$0xff]   ;;  %v652_v16 = vld [vmem:[%s846_s1 + $0x60] sm:$0xff]   ;;  %v656_v20 = vld [vmem:[%s846_s1 + $0x68] sm:$0xff]  }
   0x6   :  { %585 = vmatprep.subr.bf16.mxu1 %v641_v5  ;;  %v649_v13 = vld [vmem:[%s846_s1 + $0xd8] sm:$0xff]   ;;  %v653_v17 = vld [vmem:[%s846_s1 + $0xe0] sm:$0xff]   ;;  %v657_v21 = vld [vmem:[%s846_s1 + $0xe8] sm:$0xff]  }
   0x7   :  { %v650_v14 = vld [vmem:[%s846_s1 + $0x18] sm:$0xff]   ;;  %v654_v18 = vld [vmem:[%s846_s1 + $0x20] sm:$0xff]   ;;  %v658_v22 = vld [vmem:[%s846_s1 + $0x28] sm:$0xff]  }
   0x8   :  { %564 = vmatpush3.bf16.msra.mxu0 %v642_v6  ;;  %v651_v15 = vld [vmem:[%s846_s1 + $0x98] sm:$0xff]   ;;  %v655_v19 = vld [vmem:[%s846_s1 + $0xa0] sm:$0xff]   ;;  %v659_v23 = vld [vmem:[%s846_s1 + $0xa8] sm:$0xff]  }
   0x9   :  { %586 = vmatpush3.bf16.msra.mxu1 %v643_v7  ;;  %565 = vmatprep.subr.bf16.mxu0 %v644_v8  ;;  %v660_v24 = vld [vmem:[%s846_s1 + $0x70] sm:$0xff]   ;;  %v664_v28 = vld [vmem:[%s846_s1 + $0x78] sm:$0xff]   ;;  %v24_v32 = vld [vmem:[%s847_s0] sm:$0xff] }
   0xa   :  { %587 = vmatprep.subr.bf16.mxu1 %v645_v9  ;;  %v661_v25 = vld [vmem:[%s846_s1 + $0xf0] sm:$0xff]   ;;  %v665_v29 = vld [vmem:[%s846_s1 + $0xf8] sm:$0xff]   ;;  %v514_v33 = vcombine.low %v24_v32, %v24_v32  ;;  %v515_v34 = vcombine.high %v24_v32, %v24_v32  ;;  %v25_v35 = vld [vmem:[%s847_s0 + $0x8] sm:$0xff] }
   0xb   :  { %v662_v26 = vld [vmem:[%s846_s1 + $0x30] sm:$0xff]   ;;  %v666_v30 = vld [vmem:[%s846_s1 + $0x38] sm:$0xff]   ;;  %v516_v37 = vcombine.low %v25_v35, %v25_v35  ;;  %v517_v38 = vcombine.high %v25_v35, %v25_v35  ;;  %v673_v39 = vld [vmem:[%s846_s1 + $0x100] sm:$0xff]  }
   0xc   :  { %566 = vmatpush3.bf16.msra.mxu0 %v646_v10  ;;  %v663_v27 = vld [vmem:[%s846_s1 + $0xb0] sm:$0xff]   ;;  %v667_v31 = vld [vmem:[%s846_s1 + $0xb8] sm:$0xff]   ;;  %397 = vmatprep.mubr.bf16.mxu0 %v515_v34  ;;  %v674_v40 = vld [vmem:[%s846_s1 + $0x108] sm:$0xff]  }
   0xd   :  { %588 = vmatpush3.bf16.msra.mxu1 %v647_v11  ;;  %567 = vmatprep.subr.bf16.mxu0 %v648_v12  ;;  %v675_v41 = vld [vmem:[%s846_s1 + $0x110] sm:$0xff]   ;;  %v676_v42 = vld [vmem:[%s846_s1 + $0x118] sm:$0xff]   ;;  %v677_v43 = vld [vmem:[%s846_s1 + $0x120] sm:$0xff]  }
   0xe   :  { %589 = vmatprep.subr.bf16.mxu1 %v649_v13  ;;  %437 = vmatprep.mubr.bf16.mxu1 %v517_v38  ;;  %v678_v44 = vld [vmem:[%s846_s1 + $0x128] sm:$0xff]   ;;  %v679_v45 = vld [vmem:[%s846_s1 + $0x130] sm:$0xff]   ;;  %v680_v46 = vld [vmem:[%s846_s1 + $0x138] sm:$0xff]  }
   0xf   :  { %v670_v47 = vld [vmem:[%s847_s0 + $0x10] ss:$0 sps:$4 sm:$0xff]   ;;  %v559_v60 = vld [vmem:[%s848_s2] ss:$0 sm:$0xff] }
  0x10   :  { %568 = vmatpush3.bf16.msra.mxu0 %v650_v14  ;;  %v560_v63 = vld [vmem:[%s849_s3] ss:$0 sm:$0xff] }
  0x11   :  { %590 = vmatpush3.bf16.msra.mxu1 %v651_v15  ;;  %569 = vmatprep.subr.bf16.mxu0 %v652_v16 }
  0x12   :  { %591 = vmatprep.subr.bf16.mxu1 %v653_v17 }
  0x14   :  { %570 = vmatpush3.bf16.msra.mxu0 %v654_v18 }
  0x15   :  { %592 = vmatpush3.bf16.msra.mxu1 %v655_v19  ;;  %571 = vmatprep.subr.bf16.mxu0 %v656_v20 }
  0x16   :  { %593 = vmatprep.subr.bf16.mxu1 %v657_v21 }
  0x18   :  { %572 = vmatpush3.bf16.msra.mxu0 %v658_v22 }
  0x19   :  { %594 = vmatpush3.bf16.msra.mxu1 %v659_v23  ;;  %573 = vmatprep.subr.bf16.mxu0 %v660_v24 }
  0x1a   :  { %595 = vmatprep.subr.bf16.mxu1 %v661_v25 }
  0x1c   :  { %574 = vmatpush3.bf16.msra.mxu0 %v662_v26 }
  0x1d   :  { %596 = vmatpush3.bf16.msra.mxu1 %v663_v27  ;;  %575 = vmatprep.subr.bf16.mxu0 %v664_v28 }
  0x1e   :  { %597 = vmatprep.subr.bf16.mxu1 %v665_v29 }
  0x20   :  { %576 = vmatpush3.bf16.msra.mxu0 %v666_v30 }
  0x21   :  { %598 = vmatpush3.bf16.msra.mxu1 %v667_v31  ;;  %614 = vmatprep.subr.bf16.mxu0 %v681_v36 }
  0x23   :  { %398 = vmatmul.mubr.bf16.vlgmr.msra.gmra.mrb[0].mxu0 %v514_v33 }
  0x24   :  { %438 = vmatmul.mubr.bf16.vlgmr.msra.gmra.mrb[0].mxu1 %v516_v37  ;;  %615 = vmatpush3.bf16.msra.mxu0 %v673_v39 }
  0x25   :  { %616 = vmatprep.subr.bf16.mxu0 %v681_v36  ;;  %630 = vmatprep.mubr.msk.bf16.mxu0 %vm682_vm0, %v681_v36 }
  0x28   :  { %617 = vmatpush3.bf16.msra.mxu0 %v674_v40 }
  0x29   :  { %618 = vmatprep.subr.bf16.mxu0 %v681_v36 }
  0x2c   :  { %619 = vmatpush3.bf16.msra.mxu0 %v675_v41 }
  0x2d   :  { %620 = vmatprep.subr.bf16.mxu0 %v681_v36 }
  0x30   :  { %621 = vmatpush3.bf16.msra.mxu0 %v676_v42 }
  0x31   :  { %622 = vmatprep.subr.bf16.mxu0 %v681_v36 }
  0x34   :  { %623 = vmatpush3.bf16.msra.mxu0 %v677_v43 }
  0x35   :  { %624 = vmatprep.subr.bf16.mxu0 %v681_v36 }
  0x38   :  { %625 = vmatpush3.bf16.msra.mxu0 %v678_v44 }
  0x39   :  { %626 = vmatprep.subr.bf16.mxu0 %v681_v36 }
  0x3c   :  { %627 = vmatpush3.bf16.msra.mxu0 %v679_v45 }
  0x3d   :  { %628 = vmatprep.subr.bf16.mxu0 %v681_v36 }
  0x40   :  { %629 = vmatpush3.bf16.msra.mxu0 %v680_v46 }
  0x43   :  { %631 = vmatmul.mubr.bf16.vlgmr.msra.gmra.mrb[4].mxu0 %v670_v47 }
  0xf6   :  { %v577_v48 = vpop.f32.mrb[0].mxu0 }
  0xf7   :  { %v599_v49 = vpop.f32.mrb[0].mxu1  ;;  %v578_v50 = vpop.f32.mrb[1].mxu0 }
  0xf8   :  { %v579_v51 = vadd.f32 %v578_v50, %v577_v48  ;;  %v600_v52 = vpop.f32.mrb[1].mxu1  ;;  %v580_v53 = vpop.f32.mrb[2].mxu0 }
  0xf9   :  { %v601_v54 = vadd.f32 %v600_v52, %v599_v49  ;;  %v581_v55 = vpop.f32.mrb[3].mxu0  ;;  %v602_v56 = vpop.f32.mrb[2].mxu1 }
  0xfa   :  { %v603_v57 = vpop.f32.mrb[3].mxu1 }
  0xfb   :  { %v440_v58 = vadd.f32 %v601_v54, %v579_v51 }
 0x116   :  { %v479_v59 = vpop.f32.mrb[4].mxu0 }
 0x117   :  { %v480_v61 = vadd.f32 %v479_v59, %v440_v58  ;;  %v632_v62 = vpop.f32.mrb[5].mxu0 }
 0x118   :  { %v482_v0 = vpop.f32.mrb[6].mxu0 }
 0x119   :  { %v498_v1 = vmul.f32 %v559_v60, %v480_v61  ;;  %v633_v2 = vpop.f32.mrb[7].mxu0 }
 0x11b   :  { %v506_v3 = vadd.f32 %v560_v63, %v498_v1 }
 0x11d   :  { %v507_v4 = vmax.f32 %v506_v3, 0.0 }
 0x11f   :  { %v508_v5 = vpack.c.bf16 %v507_v4, %v507_v4 }
 0x121   :  { %509 = vst [vmem:[%s850_s4] sm:$0xf] %v508_v5 }

// kernel: vanilla_regnet_v2_forward.27
= control target key start
LH: loop header
LB: loop body
LE: loop exit
PB: predicated region body
PF: predicated region fallthrough
CT: control target
= control target key end

     0   :  { %v213_v0 = vmov 0.0   ;;  %vm214_vm0 = vmmov 0   ;;  %s284_s1 = inlined_call_operand.vmem [shape: bf16[128,128], index: 1, kind: input, shape index: {}]   ;;  %s285_s0 = inlined_call_operand.vmem [shape: bf16[8,128], index: 0, kind: input, shape index: {}]   ;;  %s286_s2 = inlined_call_operand.vmem [shape: f32[1,128], index: 2, kind: input, shape index: {}]   ;;  %s287_s4 = inlined_call_operand.vmem [shape: bf16[8,128], index: 4, kind: input, shape index: {}]   ;;  %s288_s3 = inlined_call_operand.vmem [shape: f32[1,128], index: 3, kind: input, shape index: {}]   ;;  %s289_s5 = inlined_call_operand.vmem [shape: bf16[8,128], index: 5, kind: output, shape index: {}]  }
   0x1   :  { %183 = vmatprep.subr.bf16.mxu0 %v213_v0  ;;  %v205_v1 = vld [vmem:[%s284_s1] sm:$0xff]   ;;  %199 = vmatprep.mubr.msk.bf16.mxu0 %vm214_vm0, %v213_v0  ;;  %v206_v2 = vld [vmem:[%s284_s1 + $0x8] sm:$0xff]   ;;  %v207_v3 = vld [vmem:[%s284_s1 + $0x10] sm:$0xff]  }
   0x2   :  { %184 = vmatpush3.bf16.msra.mxu0 %v205_v1  ;;  %v208_v4 = vld [vmem:[%s284_s1 + $0x18] sm:$0xff]   ;;  %v209_v5 = vld [vmem:[%s284_s1 + $0x20] sm:$0xff]   ;;  %v210_v6 = vld [vmem:[%s284_s1 + $0x28] sm:$0xff]  }
   0x3   :  { %185 = vmatprep.subr.bf16.mxu0 %v213_v0  ;;  %v211_v7 = vld [vmem:[%s284_s1 + $0x30] sm:$0xff]   ;;  %v212_v8 = vld [vmem:[%s284_s1 + $0x38] sm:$0xff]   ;;  %v27_v9 = vld [vmem:[%s285_s0] sm:$0xf] }
   0x4   :  { %v172_v10 = vld [vmem:[%s286_s2] ss:$0 sm:$0xff] }
   0x5   :  { %v154_v11 = vld [vmem:[%s287_s4] sm:$0xf] }
   0x6   :  { %186 = vmatpush3.bf16.msra.mxu0 %v206_v2  ;;  %v173_v13 = vld [vmem:[%s288_s3] ss:$0 sm:$0xff]  ;;  %v155_v15 = vunpack.c.l.bf16 %v154_v11 }
   0x7   :  { %187 = vmatprep.subr.bf16.mxu0 %v213_v0 }
   0xa   :  { %188 = vmatpush3.bf16.msra.mxu0 %v207_v3 }
   0xb   :  { %189 = vmatprep.subr.bf16.mxu0 %v213_v0 }
   0xe   :  { %190 = vmatpush3.bf16.msra.mxu0 %v208_v4 }
   0xf   :  { %191 = vmatprep.subr.bf16.mxu0 %v213_v0 }
  0x12   :  { %192 = vmatpush3.bf16.msra.mxu0 %v209_v5 }
  0x13   :  { %193 = vmatprep.subr.bf16.mxu0 %v213_v0 }
  0x16   :  { %194 = vmatpush3.bf16.msra.mxu0 %v210_v6 }
  0x17   :  { %195 = vmatprep.subr.bf16.mxu0 %v213_v0 }
  0x1a   :  { %196 = vmatpush3.bf16.msra.mxu0 %v211_v7 }
  0x1b   :  { %197 = vmatprep.subr.bf16.mxu0 %v213_v0 }
  0x1e   :  { %198 = vmatpush3.bf16.msra.mxu0 %v212_v8 }
  0x21   :  { %200 = vmatmul.mubr.bf16.vlgmr.msra.gmra.mrb[0].mxu0 %v27_v9 }
  0xf4   :  { %v126_v12 = vpop.f32.mrb[0].mxu0 }
  0xf5   :  { %v145_v14 = vmul.f32 %v172_v10, %v126_v12  ;;  %v201_v16 = vpop.f32.mrb[1].mxu0 }
  0xf6   :  { %v129_v17 = vpop.f32.mrb[2].mxu0 }
  0xf7   :  { %v153_v18 = vadd.f32 %v173_v13, %v145_v14  ;;  %v202_v19 = vpop.f32.mrb[3].mxu0 }
  0xf9   :  { %v156_v20 = vadd.f32 %v155_v15, %v153_v18 }
  0xfb   :  { %v157_v21 = vmax.f32 %v156_v20, 0.0 }
  0xfd   :  { %v158_v22 = vpack.c.bf16 %v157_v21, %v157_v21 }
  0xff   :  { %159 = vst [vmem:[%s289_s5] sm:$0xf] %v158_v22 }

// kernel: vanilla_regnet_v2_forward.28
= control target key start
LH: loop header
LB: loop body
LE: loop exit
PB: predicated region body
PF: predicated region fallthrough
CT: control target
= control target key end

     0   :  { %s916_s15 = smov 0   ;;  %s918_s16 = smov 0   ;;  %s1013_s0 = inlined_call_operand.vmem [shape: bf16[2,128], index: 0, kind: input, shape index: {}]   ;;  %s1014_s1 = inlined_call_operand.vmem [shape: bf16[128,1024], index: 1, kind: input, shape index: {}]   ;;  %s1015_s2 = inlined_call_operand.vmem [shape: f32[1,1024], index: 2, kind: input, shape index: {}]   ;;  %s1016_s3 = inlined_call_operand.vmem [shape: f32[1,1024], index: 3, kind: input, shape index: {}]   ;;  %s1017_s4 = inlined_call_operand.vmem [shape: bf16[2,1024], index: 4, kind: output, shape index: {}]  }
   0x1   :  { %s920_s17 = smov 0   ;;  %s922_s18 = smov 0  }
   0x2   :  { %s924_s19 = smov 0  }
   0x3 LB: > { %s29_s20 = sadd.s32 1, %s881_s18  ;;  %p77_p1 = scmp.ne.s32.totalorder %s873_s16, %s869_s15  ;;  %s885_s19 = sphi %s924_s19, %s14_s19   ;;  %s881_s18 = sphi %s922_s18, %s1021_s18   ;;  %s877_s17 = sphi %s920_s17, %s1020_s17   ;;  %s873_s16 = sphi %s918_s16, %s1019_s16   ;;  %s869_s15 = sphi %s916_s15, %s1018_s15  }
   0x4   : > { %p31_p0 = scmp.ge.s32.totalorder %s29_s20, 4  ;;  %p78_p2 = scmp.eq.s32.totalorder %s885_s19, 0 }
   0x5   : > { %s70_s22 = sadd.s32 1, %s873_s16  ;;  %p749_p5 = scmp.ge.s32.totalorder %s885_s19, 4 }
   0x6   : > { %s1023_s20 = smov (%p31_p0, %s29_s20), 0  ;;  %p79_p3 = por %p78_p2, %p77_p1 }
   0x7   : > { %s66_s21 = ssub.s32 %s881_s18, %s1023_s20  ;;  %192 = sbr.rel (%p749_p5) target bundleno = 34 (0x22), region = 20 }
   0x8   : > { %p68_p4 = scmp.eq.s32.totalorder %s66_s21, 0 }
   0xa   : > { %s951_s23 = scalar_select %p68_p4, %s873_s16, %s70_s22  }
   0xe   : > { %195 = sbr.rel (!%p79_p3) target bundleno = 34 (0x22), region = 24  ;;  %s197_s24 = sand.u32 (%p79_p3), 1, %s873_s16  }
   0xf   : > { %s778_s25 = sshll.u32 (%p79_p3), %s881_s18, 3  ;;  %s750_s26 = sshll.u32 (%p79_p3), %s197_s24, 7 }
  0x10   : > { %s959_s29 = scalar_lea.vmem (%p79_p3), %s1014_s1, %s778_s25  ;;  %s199_s30 = scalar_lea.vmem (%p79_p3), [#allocation3], %s750_s26 }
  0x11   : > { %v263_v0 = vld [vmem:[%s959_s29] sm:$0xff] (%p79_p3) }
  0x12   : > { %v265_v1 = vld [vmem:[%s959_s29 + $0x20] sm:$0xff] (%p79_p3)  ;;  %264 = vst [vmem:[%s199_s30] sm:$0xff] (%p79_p3), %v263_v0 }
  0x13   : > { %v267_v2 = vld [vmem:[%s959_s29 + $0x40] sm:$0xff] (%p79_p3)  ;;  %266 = vst [vmem:[%s199_s30 + $0x8] sm:$0xff] (%p79_p3), %v265_v1 }
  0x14   : > { %268 = vst [vmem:[%s199_s30 + $0x10] sm:$0xff] (%p79_p3), %v267_v2  ;;  %v269_v3 = vld [vmem:[%s959_s29 + $0x60] sm:$0xff] (%p79_p3) }
  0x15   : > { %v271_v4 = vld [vmem:[%s959_s29 + $0x80] sm:$0xff]  ;;  %270 = vst [vmem:[%s199_s30 + $0x18] sm:$0xff] %v269_v3 }
  0x16   : > { %v273_v5 = vld [vmem:[%s959_s29 + $0xa0] sm:$0xff]  ;;  %272 = vst [vmem:[%s199_s30 + $0x20] sm:$0xff] %v271_v4 }
  0x17   : > { %274 = vst [vmem:[%s199_s30 + $0x28] sm:$0xff] %v273_v5  ;;  %v275_v6 = vld [vmem:[%s959_s29 + $0xc0] sm:$0xff] }
  0x18   : > { %v277_v7 = vld [vmem:[%s959_s29 + $0xe0] sm:$0xff]  ;;  %276 = vst [vmem:[%s199_s30 + $0x30] sm:$0xff] %v275_v6 }
  0x19   : > { %v279_v8 = vld [vmem:[%s959_s29 + $0x100] sm:$0xff]  ;;  %278 = vst [vmem:[%s199_s30 + $0x38] sm:$0xff] %v277_v7 }
  0x1a   : > { %280 = vst [vmem:[%s199_s30 + $0x40] sm:$0xff] %v279_v8  ;;  %v281_v9 = vld [vmem:[%s959_s29 + $0x120] sm:$0xff] }
  0x1b   : > { %v283_v10 = vld [vmem:[%s959_s29 + $0x140] sm:$0xff]  ;;  %282 = vst [vmem:[%s199_s30 + $0x48] sm:$0xff] %v281_v9 }
  0x1c   : > { %v285_v11 = vld [vmem:[%s959_s29 + $0x160] sm:$0xff]  ;;  %284 = vst [vmem:[%s199_s30 + $0x50] sm:$0xff] %v283_v10 }
  0x1d   : > { %286 = vst [vmem:[%s199_s30 + $0x58] sm:$0xff] %v285_v11  ;;  %v287_v12 = vld [vmem:[%s959_s29 + $0x180] sm:$0xff] }
  0x1e   : > { %v289_v13 = vld [vmem:[%s959_s29 + $0x1a0] sm:$0xff]  ;;  %288 = vst [vmem:[%s199_s30 + $0x60] sm:$0xff] %v287_v12 }
  0x1f   : > { %v291_v14 = vld [vmem:[%s959_s29 + $0x1c0] sm:$0xff]  ;;  %290 = vst [vmem:[%s199_s30 + $0x68] sm:$0xff] %v289_v13 }
  0x20   : > { %292 = vst [vmem:[%s199_s30 + $0x70] sm:$0xff] %v291_v14  ;;  %v293_v15 = vld [vmem:[%s959_s29 + $0x1e0] sm:$0xff] }
  0x21   : > { %294 = vst [vmem:[%s199_s30 + $0x78] sm:$0xff] %v293_v15 }
  0x22 PF: > { %p753_p6 = scmp.ge.s32.totalorder %s885_s19, 1  ;;  %p315_p7 = scmp.lt.s32.totalorder %s885_s19, 5 }
  0x24   : > { %p316_p8 = pnand %p753_p6, %p315_p7 }
  0x25   : > { %s322_s5 = sand.u32 (!%p316_p8), 1, %s869_s15   ;;  %v887_v16 = vmov (!%p316_p8), 0   ;;  %v398_v33 = vld [vmem:[%s1013_s0] sm:$0x1] (!%p316_p8)  ;;  %v888_v34 = vmov (!%p316_p8), 0.0   ;;  %s755_s10 = sshll.u32 (!%p316_p8), %s877_s17, 1  ;;  %v542_v37 = vlaneseq (!%p316_p8) }
  0x26   : > { %319 = sbr.rel (%p316_p8) target bundleno = 313 (0x139), region = 70  ;;  %s754_s6 = sshll.u32 (!%p316_p8), %s322_s5, 7  ;;  %527 = vmatprep.mubr.bf16.mxu0 (!%p316_p8), %v887_v16  ;;  %396 = vst [vmem:[#allocation2] sm:$0xf] (!%p316_p8), %v888_v34  ;;  %v889_v35 = vmov (!%p316_p8), 1983009808  }
  0x27   : > { %s324_s7 = scalar_lea.vmem (!%p316_p8), [#allocation3], %s754_s6  ;;  %p373_p9 = scmp.lt.s32.totalorder (!%p316_p8), %s755_s10, 7  ;;  %v540_v36 = vunpack.c.l.s4 (!%p316_p8), %v889_v35  ;;  %v543_v39 = vshrl.u32 (!%p316_p8), %v542_v37, 7  ;;  %v890_v61 = vmov (!%p316_p8), 1966171168  }
  0x28   : > { %v823_v17 = vld [vmem:[%s324_s7 + $0x4] ss:$8 sps:$4 sm:$0xff] (!%p316_p8)   ;;  %v825_v18 = vld [vmem:[%s324_s7] ss:$8 sps:$4 sm:$0xff] (!%p316_p8)   ;;  %v826_v19 = vld [vmem:[%s324_s7 + $0x14] ss:$8 sps:$4 sm:$0xff] (!%p316_p8)   ;;  %v610_v62 = vunpack.c.l.s4 (!%p316_p8), %v890_v61 }
  0x29   : > { %495 = vmatprep.subr.bf16.mxu0 (!%p316_p8), %v823_v17  ;;  %v828_v20 = vld [vmem:[%s324_s7 + $0x10] ss:$8 sps:$4 sm:$0xff] (!%p316_p8)   ;;  %v829_v21 = vld [vmem:[%s324_s7 + $0x24] ss:$8 sps:$4 sm:$0xff] (!%p316_p8)   ;;  %v831_v22 = vld [vmem:[%s324_s7 + $0x20] ss:$8 sps:$4 sm:$0xff] (!%p316_p8)   ;;  %v541_v38 = vunpack.c.0.s8 (!%p316_p8), %v540_v36 }
  0x2a   : > { %496 = vmatpush1.bf16.msra.mxu0 (!%p316_p8), %v825_v18  ;;  %v832_v23 = vld [vmem:[%s324_s7 + $0x34] ss:$8 sps:$4 sm:$0xff] (!%p316_p8)   ;;  %v834_v24 = vld [vmem:[%s324_s7 + $0x30] ss:$8 sps:$4 sm:$0xff] (!%p316_p8)   ;;  %v835_v25 = vld [vmem:[%s324_s7 + $0x44] ss:$8 sps:$4 sm:$0xff] (!%p316_p8)   ;;  %v611_v2 = vunpack.c.0.s8 (!%p316_p8), %v610_v62 }
  0x2b   : > { %497 = vmatprep.subr.bf16.mxu0 (!%p316_p8), %v826_v19  ;;  %v837_v26 = vld [vmem:[%s324_s7 + $0x40] ss:$8 sps:$4 sm:$0xff] (!%p316_p8)   ;;  %v838_v27 = vld [vmem:[%s324_s7 + $0x54] ss:$8 sps:$4 sm:$0xff] (!%p316_p8)   ;;  %v840_v28 = vld [vmem:[%s324_s7 + $0x50] ss:$8 sps:$4 sm:$0xff] (!%p316_p8)   ;;  %v544_v41 = vsub.s32 (!%p316_p8), %v541_v38, %v543_v39 }
  0x2c   : > { %v841_v29 = vld [vmem:[%s324_s7 + $0x64] ss:$8 sps:$4 sm:$0xff] (!%p316_p8)   ;;  %v843_v30 = vld [vmem:[%s324_s7 + $0x60] ss:$8 sps:$4 sm:$0xff] (!%p316_p8)   ;;  %v844_v31 = vld [vmem:[%s324_s7 + $0x74] ss:$8 sps:$4 sm:$0xff] (!%p316_p8)   ;;  %v614_v5 = vsub.s32 (!%p316_p8), %v611_v2, %v543_v39 }
  0x2d   : > { %v846_v32 = vld [vmem:[%s324_s7 + $0x70] ss:$8 sps:$4 sm:$0xff]   ;;  %s1025_s10 = smov (!%p373_p9, %s755_s10), 7  ;;  %v557_v42 = vsub.s32 0, %v543_v39  ;;  %v561_v43 = vsub.s32 1, %v543_v39 }
  0x2e   : > { %498 = vmatpush1.bf16.msra.mxu0 %v828_v20  ;;  %s375_s13 = scalar_lea.vmem %s1015_s2, %s1025_s10  ;;  %s380_s21 = scalar_lea.vmem %s1016_s3, %s1025_s10  ;;  %v397_v48 = vld [vmem:[#allocation2] sm:$0xf] }
  0x2f   : > { %499 = vmatprep.subr.bf16.mxu0 %v829_v21  ;;  %v553_v45 = vld [vmem:[%s375_s13] sm:$0x3]  ;;  %s389_s24 = scalar_lea.vmem %s1017_s4, %s1025_s10 }
  0x30   : > { %v573_v49 = vld [vmem:[%s380_s21] sm:$0x3]  ;;  %v558_v52 = vrot.slane %v553_v45, %v557_v42  ;;  %v562_v53 = vrot.slane %v553_v45, %v561_v43 }
  0x31   : > { %v578_v55 = vrot.slane %v573_v49, %v557_v42  ;;  %v582_v56 = vrot.slane %v573_v49, %v561_v43 }
  0x32   : > { %500 = vmatpush1.bf16.msra.mxu0 %v831_v22  ;;  %v563_v57 = vcombine.low %v558_v52, %v562_v53 }
  0x33   : > { %501 = vmatprep.subr.bf16.mxu0 %v832_v23  ;;  %v583_v58 = vcombine.low %v578_v55, %v582_v56 }
  0x34   : > { %v570_v59 = vrot.slane %v563_v57, %v544_v41 }
  0x35   : > { %v590_v60 = vrot.slane %v583_v58, %v544_v41 }
  0x36   : > { %502 = vmatpush1.bf16.msra.mxu0 %v834_v24 }
  0x37   : > { %503 = vmatprep.subr.bf16.mxu0 %v835_v25 }
  0x3a   : > { %504 = vmatpush1.bf16.msra.mxu0 %v837_v26 }
  0x3b   : > { %505 = vmatprep.subr.bf16.mxu0 %v838_v27 }
  0x3e   : > { %506 = vmatpush1.bf16.msra.mxu0 %v840_v28 }
  0x3f   : > { %507 = vmatprep.subr.bf16.mxu0 %v841_v29 }
  0x42   : > { %508 = vmatpush1.bf16.msra.mxu0 %v843_v30 }
  0x43   : > { %509 = vmatprep.subr.bf16.mxu0 %v844_v31 }
  0x46   : > { %510 = vmatpush1.bf16.msra.mxu0 %v846_v32 }
  0x49   : > { %528 = vmatmul.mubr.bf16.vlgmr.msra.gmra.mrb[0].mxu0 %v398_v33 }
 0x11c   : > { %v529_v40 = vpop.f32.mrb[0].mxu0 }
 0x11d   : > { %v531_v44 = vpop.f32.mrb[1].mxu0 }
 0x11e   : > { %v538_v46 = vcombine.low %v529_v40, %v531_v44  ;;  %v533_v47 = vpop.f32.mrb[2].mxu0 }
 0x11f   : > { %v534_v50 = vpop.f32.mrb[3].mxu0 }
 0x120   : > { %v545_v51 = vrot.slane %v538_v46, %v544_v41 }
 0x122   : > { %v547_v54 = vadd.f32 %v545_v51, %v397_v48 }
 0x124   : > { %548 = vst [vmem:[#allocation2] sm:$0xf] %v547_v54 }
 0x12b   : > { %v552_v63 = vld [vmem:[#allocation2] sm:$0xf] }
 0x12c   : > { %v572_v0 = vmul.f32 %v570_v59, %v552_v63 }
 0x12e   : > { %v592_v1 = vadd.f32 %v590_v60, %v572_v0 }
 0x130   : > { %v600_v3 = vrot.slane %v592_v1, %v544_v41 }
 0x132   : > { %v601_v4 = vcombine.high %v600_v3, %v600_v3 }
 0x134   : > { %v774_v6 = vpack.c.bf16 %v601_v4, %v600_v3 }
 0x136   : > { %v615_v7 = vrot.slane %v774_v6, %v614_v5 }
 0x138   : > { %775 = vst.sshfl [vmem:[%s389_s24] sm:$0x5 pattern:$0x73625140] %v615_v7 }
 0x139 PF: > { %s14_s19 = sadd.s32 1, %s885_s19   ;;  %s1018_s15 = smov %s873_s16 }
 0x13a   : > { %p11_p10 = scmp.ge.s32.totalorder %s14_s19, 6   ;;  %s1019_s16 = smov %s951_s23 }
 0x13b   : > { %s1020_s17 = smov %s881_s18  ;;  %s1021_s18 = smov %s1023_s20 }
 0x13c   :  { %13 = sbr.rel (!%p11_p10) target bundleno = 3 (0x3), region = 126 }

// kernel: vanilla_regnet_v2_forward.31
= control target key start
LH: loop header
LB: loop body
LE: loop exit
PB: predicated region body
PF: predicated region fallthrough
CT: control target
= control target key end

     0   :  { %s912_s12 = smov 0   ;;  %s914_s13 = smov 0   ;;  %s1070_s0 = inlined_call_operand.vmem [shape: bf16[2,256], index: 0, kind: input, shape index: {}]   ;;  %s1071_s1 = inlined_call_operand.vmem [shape: bf16[256,256], index: 1, kind: input, shape index: {}]   ;;  %s1072_s2 = inlined_call_operand.vmem [shape: f32[1,256], index: 2, kind: input, shape index: {}]   ;;  %s1073_s3 = inlined_call_operand.vmem [shape: bf16[2,256], index: 3, kind: output, shape index: {}]  }
   0x1   :  { %s916_s14 = smov 0   ;;  %s918_s15 = smov 0  }
   0x2   :  { %s920_s16 = smov 0  }
   0x3 LB: > { %s28_s17 = sadd.s32 1, %s884_s15  ;;  %p76_p1 = scmp.ne.s32.totalorder %s876_s13, %s872_s12  ;;  %s888_s16 = sphi %s920_s16, %s13_s16   ;;  %s884_s15 = sphi %s918_s15, %s1077_s15   ;;  %s880_s14 = sphi %s916_s14, %s1076_s14   ;;  %s876_s13 = sphi %s914_s13, %s1075_s13   ;;  %s872_s12 = sphi %s912_s12, %s1074_s12  }
   0x4   : > { %p30_p0 = scmp.ge.s32.totalorder %s28_s17, 2  ;;  %p77_p2 = scmp.eq.s32.totalorder %s888_s16, 0 }
   0x5   : > { %s69_s19 = sadd.s32 1, %s876_s13  ;;  %p745_p5 = scmp.ge.s32.totalorder %s888_s16, 2 }
   0x6   : > { %s1079_s17 = smov (%p30_p0, %s28_s17), 0  ;;  %p78_p3 = por %p77_p2, %p76_p1 }
   0x7   : > { %s65_s18 = ssub.s32 %s884_s15, %s1079_s17  ;;  %168 = sbr.rel (%p745_p5) target bundleno = 39 (0x27), region = 20 }
   0x8   : > { %p67_p4 = scmp.eq.s32.totalorder %s65_s18, 0 }
   0xa   : > { %s947_s20 = scalar_select %p67_p4, %s876_s13, %s69_s19  }
   0xe   : > { %171 = sbr.rel (!%p78_p3) target bundleno = 39 (0x27), region = 24  ;;  %s173_s21 = sand.u32 (%p78_p3), 1, %s876_s13  }
   0xf   : > { %s747_s22 = sshll.u32 (%p78_p3), %s884_s15, 2  ;;  %s746_s23 = sshll.u32 (%p78_p3), %s173_s21, 7 }
  0x10   : > { %s955_s26 = scalar_lea.vmem (%p78_p3), %s1071_s1, %s747_s22  ;;  %s959_s27 = scalar_lea.vmem (%p78_p3), [#allocation3], %s746_s23 }
  0x11   : > { %v196_v0 = vld [vmem:[%s955_s26] sm:$0xf] (%p78_p3)  ;;  %v198_v1 = vld [vmem:[%s955_s26 + $0x8] sm:$0xf] (%p78_p3)  ;;  %v200_v2 = vld [vmem:[%s955_s26 + $0x10] sm:$0xf] (%p78_p3) }
  0x12   : > { %197 = vst [vmem:[%s959_s27] sm:$0xf] (%p78_p3), %v196_v0  ;;  %199 = vst [vmem:[%s959_s27 + $0x4] sm:$0xf] (%p78_p3), %v198_v1  ;;  %v202_v3 = vld [vmem:[%s955_s26 + $0x18] sm:$0xf] (%p78_p3) }
  0x13   : > { %v204_v4 = vld [vmem:[%s955_s26 + $0x20] sm:$0xf] (%p78_p3)  ;;  %201 = vst [vmem:[%s959_s27 + $0x8] sm:$0xf] (%p78_p3), %v200_v2  ;;  %203 = vst [vmem:[%s959_s27 + $0xc] sm:$0xf] (%p78_p3), %v202_v3 }
  0x14   : > { %205 = vst [vmem:[%s959_s27 + $0x10] sm:$0xf] (%p78_p3), %v204_v4  ;;  %v206_v5 = vld [vmem:[%s955_s26 + $0x28] sm:$0xf] (%p78_p3)  ;;  %v208_v6 = vld [vmem:[%s955_s26 + $0x30] sm:$0xf] (%p78_p3) }
  0x15   : > { %v210_v7 = vld [vmem:[%s955_s26 + $0x38] sm:$0xf]  ;;  %207 = vst [vmem:[%s959_s27 + $0x14] sm:$0xf] %v206_v5  ;;  %209 = vst [vmem:[%s959_s27 + $0x18] sm:$0xf] %v208_v6 }
  0x16   : > { %211 = vst [vmem:[%s959_s27 + $0x1c] sm:$0xf] %v210_v7  ;;  %v212_v8 = vld [vmem:[%s955_s26 + $0x40] sm:$0xf]  ;;  %v214_v9 = vld [vmem:[%s955_s26 + $0x48] sm:$0xf] }
  0x17   : > { %v216_v10 = vld [vmem:[%s955_s26 + $0x50] sm:$0xf]  ;;  %213 = vst [vmem:[%s959_s27 + $0x20] sm:$0xf] %v212_v8  ;;  %215 = vst [vmem:[%s959_s27 + $0x24] sm:$0xf] %v214_v9 }
  0x18   : > { %217 = vst [vmem:[%s959_s27 + $0x28] sm:$0xf] %v216_v10  ;;  %v218_v11 = vld [vmem:[%s955_s26 + $0x58] sm:$0xf]  ;;  %v220_v12 = vld [vmem:[%s955_s26 + $0x60] sm:$0xf] }
  0x19   : > { %v222_v13 = vld [vmem:[%s955_s26 + $0x68] sm:$0xf]  ;;  %219 = vst [vmem:[%s959_s27 + $0x2c] sm:$0xf] %v218_v11  ;;  %221 = vst [vmem:[%s959_s27 + $0x30] sm:$0xf] %v220_v12 }
  0x1a   : > { %223 = vst [vmem:[%s959_s27 + $0x34] sm:$0xf] %v222_v13  ;;  %v224_v14 = vld [vmem:[%s955_s26 + $0x70] sm:$0xf]  ;;  %v226_v15 = vld [vmem:[%s955_s26 + $0x78] sm:$0xf] }
  0x1b   : > { %v228_v16 = vld [vmem:[%s955_s26 + $0x80] sm:$0xf]  ;;  %225 = vst [vmem:[%s959_s27 + $0x38] sm:$0xf] %v224_v14  ;;  %227 = vst [vmem:[%s959_s27 + $0x3c] sm:$0xf] %v226_v15 }
  0x1c   : > { %229 = vst [vmem:[%s959_s27 + $0x40] sm:$0xf] %v228_v16  ;;  %v230_v17 = vld [vmem:[%s955_s26 + $0x88] sm:$0xf]  ;;  %v232_v18 = vld [vmem:[%s955_s26 + $0x90] sm:$0xf] }
  0x1d   : > { %v234_v19 = vld [vmem:[%s955_s26 + $0x98] sm:$0xf]  ;;  %231 = vst [vmem:[%s959_s27 + $0x44] sm:$0xf] %v230_v17  ;;  %233 = vst [vmem:[%s959_s27 + $0x48] sm:$0xf] %v232_v18 }
  0x1e   : > { %235 = vst [vmem:[%s959_s27 + $0x4c] sm:$0xf] %v234_v19  ;;  %v236_v20 = vld [vmem:[%s955_s26 + $0xa0] sm:$0xf]  ;;  %v238_v21 = vld [vmem:[%s955_s26 + $0xa8] sm:$0xf] }
  0x1f   : > { %v240_v22 = vld [vmem:[%s955_s26 + $0xb0] sm:$0xf]  ;;  %237 = vst [vmem:[%s959_s27 + $0x50] sm:$0xf] %v236_v20  ;;  %239 = vst [vmem:[%s959_s27 + $0x54] sm:$0xf] %v238_v21 }
  0x20   : > { %241 = vst [vmem:[%s959_s27 + $0x58] sm:$0xf] %v240_v22  ;;  %v242_v23 = vld [vmem:[%s955_s26 + $0xb8] sm:$0xf]  ;;  %v244_v24 = vld [vmem:[%s955_s26 + $0xc0] sm:$0xf] }
  0x21   : > { %v246_v25 = vld [vmem:[%s955_s26 + $0xc8] sm:$0xf]  ;;  %243 = vst [vmem:[%s959_s27 + $0x5c] sm:$0xf] %v242_v23  ;;  %245 = vst [vmem:[%s959_s27 + $0x60] sm:$0xf] %v244_v24 }
  0x22   : > { %247 = vst [vmem:[%s959_s27 + $0x64] sm:$0xf] %v246_v25  ;;  %v248_v26 = vld [vmem:[%s955_s26 + $0xd0] sm:$0xf]  ;;  %v250_v27 = vld [vmem:[%s955_s26 + $0xd8] sm:$0xf] }
  0x23   : > { %v252_v28 = vld [vmem:[%s955_s26 + $0xe0] sm:$0xf]  ;;  %249 = vst [vmem:[%s959_s27 + $0x68] sm:$0xf] %v248_v26  ;;  %251 = vst [vmem:[%s959_s27 + $0x6c] sm:$0xf] %v250_v27 }
  0x24   : > { %253 = vst [vmem:[%s959_s27 + $0x70] sm:$0xf] %v252_v28  ;;  %v254_v29 = vld [vmem:[%s955_s26 + $0xe8] sm:$0xf]  ;;  %v256_v30 = vld [vmem:[%s955_s26 + $0xf0] sm:$0xf] }
  0x25   : > { %v258_v31 = vld [vmem:[%s955_s26 + $0xf8] sm:$0xf]  ;;  %255 = vst [vmem:[%s959_s27 + $0x74] sm:$0xf] %v254_v29  ;;  %257 = vst [vmem:[%s959_s27 + $0x78] sm:$0xf] %v256_v30 }
  0x26   : > { %259 = vst [vmem:[%s959_s27 + $0x7c] sm:$0xf] %v258_v31 }
  0x27 PF: > { %p748_p6 = scmp.ge.s32.totalorder %s888_s16, 1  ;;  %p351_p7 = scmp.lt.s32.totalorder %s888_s16, 3 }
  0x29   : > { %p352_p8 = pnand %p748_p6, %p351_p7 }
  0x2a   : > { %s358_s28 = sand.u32 (!%p352_p8), 1, %s872_s12   ;;  %v750_v32 = vld.sshfl [vmem:[%s1070_s0] sm:$0x11 pattern:$0x75316420] (!%p352_p8)  ;;  %v466_v33 = vlaneseq (!%p352_p8)  ;;  %v891_v58 = vmov (!%p352_p8), 0.0  }
  0x2b   : > { %355 = sbr.rel (%p352_p8) target bundleno = 308 (0x134), region = 69  ;;  %s749_s4 = sshll.u32 (!%p352_p8), %s358_s28, 7  ;;  %v890_v34 = vmov (!%p352_p8), 1966171168   ;;  %v462_v39 = vcombine.high (!%p352_p8), %v750_v32, %v750_v32  ;;  %419 = vst [vmem:[#allocation2] sm:$0x3] (!%p352_p8), %v891_v58 }
  0x2c   : > { %v464_v35 = vunpack.c.l.s4 (!%p352_p8), %v890_v34  ;;  %v467_v36 = vshrl.u32 (!%p352_p8), %v466_v33, 7  ;;  %s1029_s5 = scalar_lea.vmem (!%p352_p8), [#allocation3], %s749_s4  ;;  %p404_p9 = scmp.lt.s32.totalorder (!%p352_p8), %s880_s14, 1 }
  0x2d   : > { %v834_v37 = vld [vmem:[%s1029_s5 + $0x40] sm:$0xff] (!%p352_p8)   ;;  %v836_v41 = vld [vmem:[%s1029_s5 + $0x48] sm:$0xff] (!%p352_p8)   ;;  %v838_v44 = vld [vmem:[%s1029_s5 + $0x50] sm:$0xff] (!%p352_p8)  }
  0x2e   : > { %v835_v38 = vld [vmem:[%s1029_s5] sm:$0xff] (!%p352_p8)   ;;  %v465_v40 = vunpack.c.0.s8 (!%p352_p8), %v464_v35  ;;  %770 = vmatprep.subr.bf16.mxu0 (!%p352_p8), %v834_v37  ;;  %v837_v42 = vld [vmem:[%s1029_s5 + $0x8] sm:$0xff] (!%p352_p8)   ;;  %v839_v46 = vld [vmem:[%s1029_s5 + $0x10] sm:$0xff] (!%p352_p8)  }
  0x2f   : > { %771 = vmatpush3.bf16.msra.mxu0 (!%p352_p8), %v835_v38  ;;  %v840_v47 = vld [vmem:[%s1029_s5 + $0x58] sm:$0xff] (!%p352_p8)   ;;  %v842_v49 = vld [vmem:[%s1029_s5 + $0x60] sm:$0xff] (!%p352_p8)   ;;  %v844_v51 = vld [vmem:[%s1029_s5 + $0x68] sm:$0xff] (!%p352_p8)  }
  0x30   : > { %v468_v43 = vsub.s32 (!%p352_p8), %v465_v40, %v467_v36  ;;  %772 = vmatprep.subr.bf16.mxu0 (!%p352_p8), %v836_v41  ;;  %v841_v48 = vld [vmem:[%s1029_s5 + $0x18] sm:$0xff] (!%p352_p8)   ;;  %v843_v50 = vld [vmem:[%s1029_s5 + $0x20] sm:$0xff] (!%p352_p8)   ;;  %v845_v52 = vld [vmem:[%s1029_s5 + $0x28] sm:$0xff] (!%p352_p8)  }
  0x31   : > { %v846_v53 = vld [vmem:[%s1029_s5 + $0x70] sm:$0xff] (!%p352_p8)   ;;  %v848_v55 = vld [vmem:[%s1029_s5 + $0x78] sm:$0xff] (!%p352_p8)  }
  0x32   : > { %v476_v45 = vrot.slane %v462_v39, %v468_v43  ;;  %v847_v54 = vld [vmem:[%s1029_s5 + $0x30] sm:$0xff]   ;;  %v849_v56 = vld [vmem:[%s1029_s5 + $0x38] sm:$0xff]   ;;  %v469_v57 = vrot.slane %v750_v32, %v468_v43  ;;  %s1081_s14 = smov (!%p404_p9, %s880_s14), 1 }
  0x33   : > { %773 = vmatpush3.bf16.msra.mxu0 %v837_v42  ;;  %v420_v60 = vld [vmem:[#allocation2] sm:$0x3]  ;;  %s406_s8 = scalar_lea.vmem %s1072_s2, %s1081_s14  ;;  %s413_s11 = scalar_lea.vmem %s1073_s3, %s1081_s14 }
  0x34   : > { %607 = vmatprep.mubr.bf16.mxu0 %v476_v45  ;;  %774 = vmatprep.subr.bf16.mxu0 %v838_v44  ;;  %v767_v2 = vld [vmem:[%s406_s8] ss:$0 sm:$0xff] }
  0x37   : > { %775 = vmatpush3.bf16.msra.mxu0 %v839_v46 }
  0x38   : > { %776 = vmatprep.subr.bf16.mxu0 %v840_v47 }
  0x3b   : > { %777 = vmatpush3.bf16.msra.mxu0 %v841_v48 }
  0x3c   : > { %778 = vmatprep.subr.bf16.mxu0 %v842_v49 }
  0x3f   : > { %779 = vmatpush3.bf16.msra.mxu0 %v843_v50 }
  0x40   : > { %780 = vmatprep.subr.bf16.mxu0 %v844_v51 }
  0x43   : > { %781 = vmatpush3.bf16.msra.mxu0 %v845_v52 }
  0x44   : > { %782 = vmatprep.subr.bf16.mxu0 %v846_v53 }
  0x47   : > { %783 = vmatpush3.bf16.msra.mxu0 %v847_v54 }
  0x48   : > { %784 = vmatprep.subr.bf16.mxu0 %v848_v55 }
  0x4b   : > { %785 = vmatpush3.bf16.msra.mxu0 %v849_v56 }
  0x4e   : > { %608 = vmatmul.mubr.bf16.vlgmr.msra.gmra.mrb[0].mxu0 %v469_v57 }
 0x121   : > { %v786_v59 = vpop.f32.mrb[0].mxu0 }
 0x122   : > { %v787_v61 = vpop.f32.mrb[1].mxu0 }
 0x123   : > { %v788_v62 = vadd.f32 %v787_v61, %v786_v59  ;;  %v789_v63 = vpop.f32.mrb[2].mxu0 }
 0x124   : > { %v790_v0 = vpop.f32.mrb[3].mxu0 }
 0x125   : > { %v615_v1 = vadd.f32 %v788_v62, %v420_v60 }
 0x127   : > { %616 = vst [vmem:[#allocation2] sm:$0x3] %v615_v1 }
 0x12e   : > { %v620_v3 = vld [vmem:[#allocation2] sm:$0x3] }
 0x12f   : > { %v628_v4 = vadd.f32 %v767_v2, %v620_v3 }
 0x131   : > { %v629_v5 = vpack.c.bf16 %v628_v4, %v628_v4 }
 0x133   : > { %630 = vst [vmem:[%s413_s11] sm:$0x1] %v629_v5 }
 0x134 PF: > { %s13_s16 = sadd.s32 1, %s888_s16   ;;  %s1074_s12 = smov %s876_s13 }
 0x135   : > { %p10_p10 = scmp.ge.s32.totalorder %s13_s16, 4   ;;  %s1075_s13 = smov %s947_s20 }
 0x136   : > { %s1076_s14 = smov %s884_s15  ;;  %s1077_s15 = smov %s1079_s17 }
 0x137   :  { %12 = sbr.rel (!%p10_p10) target bundleno = 3 (0x3), region = 122 }

// kernel: vanilla_regnet_v2_forward.30
= control target key start
LH: loop header
LB: loop body
LE: loop exit
PB: predicated region body
PF: predicated region fallthrough
CT: control target
= control target key end

     0   :  { %vm39_vm0 = vcmask 261120   ;;  %v1074_v0 = vmov 0.0   ;;  %vm1075_vm1 = vmmov 0   ;;  %vm408_vm2 = vcmask 9216   ;;  %s1337_s1 = inlined_call_operand.vmem [shape: bf16[8,2,32], index: 1, kind: input, shape index: {}]   ;;  %s1338_s0 = inlined_call_operand.vmem [shape: bf16[8,2,32], index: 0, kind: input, shape index: {}]   ;;  %s1339_s2 = inlined_call_operand.vmem [shape: bf16[8,2,32], index: 2, kind: input, shape index: {}]   ;;  %s1340_s3 = inlined_call_operand.vmem [shape: bf16[8,2,32], index: 3, kind: output, shape index: {}]  }
   0x1   :  { %944 = vmatprep.subr.bf16.mxu0 %v1074_v0  ;;  %950 = vmatprep.subr.bf16.mxu1 %v1074_v0  ;;  %v23_v1 = vld [vmem:[%s1337_s1] sm:$0x1]  ;;  %v24_v2 = vld [vmem:[%s1337_s1 + $0x1] sm:$0x1]  ;;  %v25_v5 = vld [vmem:[%s1337_s1 + $0x2] sm:$0x1] }
   0x2   :  { %v44_v3 = vsel %vm39_vm0, %v23_v1, 0  ;;  %v90_v4 = vsel %vm39_vm0, %v24_v2, 0  ;;  %946 = vmatprep.mubr.msk.bf16.mxu0 %vm1075_vm1, %v1074_v0  ;;  %952 = vmatprep.mubr.msk.bf16.mxu1 %vm1075_vm1, %v1074_v0  ;;  %v26_v6 = vld [vmem:[%s1337_s1 + $0x3] sm:$0x1]  ;;  %v15_v7 = vld [vmem:[%s1338_s0] sm:$0x1] }
   0x3   :  { %945 = vmatpush3.bf16.xpose.msra.mxu0 %v44_v3  ;;  %951 = vmatpush3.bf16.xpose.msra.mxu1 %v90_v4  ;;  %v16_v8 = vld [vmem:[%s1338_s0 + $0x1] sm:$0x1]  ;;  %v136_v9 = vsel %vm39_vm0, %v25_v5, 0  ;;  %v182_v10 = vsel %vm39_vm0, %v26_v6, 0  ;;  %v27_v11 = vld [vmem:[%s1337_s1 + $0x4] sm:$0x1] }
   0x4   :  { %956 = vmatprep.subr.bf16.mxu0 %v1074_v0  ;;  %962 = vmatprep.subr.bf16.mxu1 %v1074_v0  ;;  %v28_v12 = vld [vmem:[%s1337_s1 + $0x5] sm:$0x1]  ;;  %v17_v13 = vld [vmem:[%s1338_s0 + $0x2] sm:$0x1]  ;;  %v18_v14 = vld [vmem:[%s1338_s0 + $0x3] sm:$0x1] }
   0x5   :  { %v228_v15 = vsel %vm39_vm0, %v27_v11, 0  ;;  %v274_v16 = vsel %vm39_vm0, %v28_v12, 0  ;;  %v29_v17 = vld [vmem:[%s1337_s1 + $0x6] sm:$0x1]  ;;  %v30_v18 = vld [vmem:[%s1337_s1 + $0x7] sm:$0x1] }
   0x6   :  { %v19_v19 = vld [vmem:[%s1338_s0 + $0x4] sm:$0x1]  ;;  %v20_v20 = vld [vmem:[%s1338_s0 + $0x5] sm:$0x1]  ;;  %v320_v21 = vsel %vm39_vm0, %v29_v17, 0  ;;  %v366_v22 = vsel %vm39_vm0, %v30_v18, 0 }
   0x7   :  { %v21_v23 = vld [vmem:[%s1338_s0 + $0x6] sm:$0x1]  ;;  %v22_v24 = vld [vmem:[%s1338_s0 + $0x7] sm:$0x1]  ;;  %v31_v2 = vld [vmem:[%s1339_s2] sm:$0x1] }
   0x8   :  { %vm493_vm3 = vcmask 1040384   ;;  %v32_v4 = vld [vmem:[%s1339_s2 + $0x1] sm:$0x1]  ;;  %v33_v6 = vld [vmem:[%s1339_s2 + $0x2] sm:$0x1]  ;;  %vm489_vm4 = vcmask 15360  }
   0x9   :  { %v495_v3 = vsel %vm493_vm3, %v31_v2, 0  ;;  %v541_v5 = vsel %vm493_vm3, %v32_v4, 0  ;;  %v36_v11 = vld [vmem:[%s1339_s2 + $0x5] sm:$0x1]  ;;  %vm883_vm5 = vcmask 253952  }
   0xa   :  { %947 = vmatmul.mubr.msk.bf16.vlgmr.msra.gmra.mrb[0].mxu0 %vm39_vm0, %v15_v7  ;;  %953 = vmatmul.mubr.msk.bf16.vlgmr.msra.gmra.mrb[0].mxu1 %vm39_vm0, %v16_v8  ;;  %v34_v7 = vld [vmem:[%s1339_s2 + $0x3] sm:$0x1]  ;;  %v587_v8 = vsel %vm493_vm3, %v33_v6, 0 }
   0xb   :  { %957 = vmatpush3.bf16.xpose.msra.mxu0 %v136_v9  ;;  %963 = vmatpush3.bf16.xpose.msra.mxu1 %v182_v10  ;;  %v633_v9 = vsel %vm493_vm3, %v34_v7, 0  ;;  %v35_v10 = vld [vmem:[%s1339_s2 + $0x4] sm:$0x1] }
   0xc   :  { %958 = vmatprep.mubr.msk.bf16.mxu0 %vm1075_vm1, %v1074_v0  ;;  %964 = vmatprep.mubr.msk.bf16.mxu1 %vm1075_vm1, %v1074_v0  ;;  %v679_v12 = vsel %vm493_vm3, %v35_v10, 0 }
   0xd   :  { %968 = vmatprep.subr.bf16.mxu0 %v1074_v0  ;;  %974 = vmatprep.subr.bf16.mxu1 %v1074_v0 }
  0x12   :  { %959 = vmatmul.mubr.msk.bf16.vlgmr.msra.gmra.mrb[4].mxu0 %vm39_vm0, %v17_v13  ;;  %965 = vmatmul.mubr.msk.bf16.vlgmr.msra.gmra.mrb[4].mxu1 %vm39_vm0, %v18_v14  ;;  %v1248_v13 = vsel %vm493_vm3, %v36_v11, 0  ;;  %v37_v14 = vld [vmem:[%s1339_s2 + $0x6] sm:$0x1] }
  0x13   :  { %969 = vmatpush3.bf16.xpose.msra.mxu0 %v228_v15  ;;  %975 = vmatpush3.bf16.xpose.msra.mxu1 %v274_v16  ;;  %v38_v15 = vld [vmem:[%s1339_s2 + $0x7] sm:$0x1]  ;;  %v1257_v16 = vsel %vm493_vm3, %v37_v14, 0 }
  0x14   :  { %970 = vmatprep.mubr.msk.bf16.mxu0 %vm1075_vm1, %v1074_v0  ;;  %976 = vmatprep.mubr.msk.bf16.mxu1 %vm1075_vm1, %v1074_v0  ;;  %v1260_v17 = vsel %vm493_vm3, %v38_v15, 0 }
  0x15   :  { %980 = vmatprep.subr.bf16.mxu0 %v1074_v0  ;;  %986 = vmatprep.subr.bf16.mxu1 %v1074_v0 }
  0x1a   :  { %971 = vmatmul.mubr.msk.bf16.vlgmr.msra.gmra.mrb[8].mxu0 %vm39_vm0, %v19_v19  ;;  %977 = vmatmul.mubr.msk.bf16.vlgmr.msra.gmra.mrb[8].mxu1 %vm39_vm0, %v20_v20 }
  0x1b   :  { %981 = vmatpush3.bf16.xpose.msra.mxu0 %v320_v21  ;;  %987 = vmatpush3.bf16.xpose.msra.mxu1 %v366_v22 }
  0x1c   :  { %982 = vmatprep.mubr.msk.bf16.mxu0 %vm1075_vm1, %v1074_v0  ;;  %988 = vmatprep.mubr.msk.bf16.mxu1 %vm1075_vm1, %v1074_v0 }
  0x1d   :  { %992 = vmatprep.subr.bf16.mxu0 %v1074_v0  ;;  %998 = vmatprep.subr.bf16.mxu1 %v1074_v0 }
  0x22   :  { %983 = vmatmul.mubr.msk.bf16.vlgmr.msra.gmra.mrb[12].mxu0 %vm39_vm0, %v21_v23  ;;  %989 = vmatmul.mubr.msk.bf16.vlgmr.msra.gmra.mrb[12].mxu1 %vm39_vm0, %v22_v24 }
  0x23   :  { %994 = vmatprep.mubr.msk.bf16.mxu0 %vm1075_vm1, %v1074_v0  ;;  %1000 = vmatprep.mubr.msk.bf16.mxu1 %vm1075_vm1, %v1074_v0 }
  0x24   :  { %993 = vmatpush3.bf16.msra.mxu0 %v495_v3  ;;  %999 = vmatpush3.bf16.msra.mxu1 %v541_v5 }
  0x25   :  { %1004 = vmatprep.subr.bf16.mxu0 %v1074_v0  ;;  %1010 = vmatprep.subr.bf16.mxu1 %v1074_v0 }
  0xdd   :  { %v1190_v25 = vpop.f32.mrb[0].mxu0  ;;  %v1192_v26 = vpop.f32.mrb[0].mxu1 }
  0xde   :  { %v948_v27 = vpop.f32.mrb[1].mxu0  ;;  %v409_v28 = vsel %vm408_vm2, %v1190_v25, -inf  ;;  %v954_v29 = vpop.f32.mrb[1].mxu1  ;;  %v412_v34 = vsel %vm408_vm2, %v1192_v26, -inf }
  0xdf   :  { %410 = vmax.xlane.f32.xlu0 %v409_v28  ;;  %v83_v30 = vpop.f32.mrb[2].mxu0  ;;  %v129_v31 = vpop.f32.mrb[2].mxu1 }
  0xe0   :  { %v949_v32 = vpop.f32.mrb[3].mxu0  ;;  %v955_v33 = vpop.f32.mrb[3].mxu1 }
  0xe3   :  { %413 = vmax.xlane.f32.xlu0 %v412_v34 }
  0xe5   :  { %v1198_v35 = vpop.f32.mrb[4].mxu0  ;;  %v1200_v36 = vpop.f32.mrb[4].mxu1 }
  0xe6   :  { %v960_v37 = vpop.f32.mrb[5].mxu0  ;;  %v415_v38 = vsel %vm408_vm2, %v1198_v35, -inf  ;;  %v966_v39 = vpop.f32.mrb[5].mxu1  ;;  %v418_v44 = vsel %vm408_vm2, %v1200_v36, -inf }
  0xe7   :  { %416 = vmax.xlane.f32.xlu1 %v415_v38  ;;  %v175_v40 = vpop.f32.mrb[6].mxu0  ;;  %v221_v41 = vpop.f32.mrb[6].mxu1 }
  0xe8   :  { %v961_v42 = vpop.f32.mrb[7].mxu0  ;;  %v967_v43 = vpop.f32.mrb[7].mxu1 }
  0xeb   :  { %419 = vmax.xlane.f32.xlu1 %v418_v44 }
  0xed   :  { %v1206_v45 = vpop.f32.mrb[8].mxu0  ;;  %v1208_v46 = vpop.f32.mrb[8].mxu1 }
  0xee   :  { %v424_v47 = vsel %vm408_vm2, %v1208_v46, -inf  ;;  %v421_v48 = vsel %vm408_vm2, %v1206_v45, -inf  ;;  %v972_v49 = vpop.f32.mrb[9].mxu0  ;;  %v978_v50 = vpop.f32.mrb[9].mxu1 }
  0xef   :  { %425 = vmax.xlane.f32.xlu1 %v424_v47  ;;  %422 = vmax.xlane.f32.xlu0 %v421_v48  ;;  %v267_v51 = vpop.f32.mrb[10].mxu0  ;;  %v313_v52 = vpop.f32.mrb[10].mxu1 }
  0xf0   :  { %v973_v53 = vpop.f32.mrb[11].mxu0  ;;  %v979_v54 = vpop.f32.mrb[11].mxu1 }
  0xf5   :  { %v1214_v55 = vpop.f32.mrb[12].mxu0  ;;  %v1216_v56 = vpop.f32.mrb[12].mxu1 }
  0xf6   :  { %v430_v57 = vsel %vm408_vm2, %v1216_v56, -inf  ;;  %v427_v58 = vsel %vm408_vm2, %v1214_v55, -inf  ;;  %v984_v59 = vpop.f32.mrb[13].mxu0  ;;  %v990_v60 = vpop.f32.mrb[13].mxu1 }
  0xf7   :  { %431 = vmax.xlane.f32.xlu1 %v430_v57  ;;  %428 = vmax.xlane.f32.xlu0 %v427_v58  ;;  %v359_v61 = vpop.f32.mrb[14].mxu0  ;;  %v405_v62 = vpop.f32.mrb[14].mxu1 }
  0xf8   :  { %v985_v63 = vpop.f32.mrb[15].mxu0  ;;  %v991_v1 = vpop.f32.mrb[15].mxu1 }
 0x16c   :  { %v411_v18 = vpop.xlane.xlu0 %410 }
 0x16d   :  { %v433_v19 = vsub.f32 %v1190_v25, %v411_v18 }
 0x16f   :  { %v441_v20 = vmul.f32 1.442695, %v433_v19 }
 0x170   :  { %v414_v21 = vpop.xlane.xlu0 %413 }
 0x171   :  { %1042 = vpow2.f32 %v441_v20  ;;  %v434_v22 = vsub.f32 %v1192_v26, %v414_v21 }
 0x173   :  { %v443_v23 = vmul.f32 1.442695, %v434_v22 }
 0x174   :  { %v417_v24 = vpop.xlane.xlu1 %416 }
 0x175   :  { %1044 = vpow2.f32 %v443_v23  ;;  %v435_v27 = vsub.f32 %v1198_v35, %v417_v24 }
 0x177   :  { %v445_v28 = vmul.f32 1.442695, %v435_v27 }
 0x178   :  { %v420_v29 = vpop.xlane.xlu1 %419 }
 0x179   :  { %1046 = vpow2.f32 %v445_v28  ;;  %v436_v30 = vsub.f32 %v1200_v36, %v420_v29 }
 0x17b   :  { %v1043_v31 = vpop.eup %1042  ;;  %v447_v32 = vmul.f32 1.442695, %v436_v30 }
 0x17c   :  { %v426_v33 = vpop.xlane.xlu1 %425  ;;  %v423_v25 = vpop.xlane.xlu0 %422  ;;  %v457_v34 = vsel %vm408_vm2, %v1043_v31, 0.0  ;;  %v481_v37 = vpack.c.bf16 %v1043_v31, %v1043_v31 }
 0x17d   :  { %1048 = vpow2.f32 %v447_v32  ;;  %v438_v26 = vsub.f32 %v1208_v46, %v426_v33  ;;  %v437_v38 = vsub.f32 %v1206_v45, %v423_v25  ;;  %458 = vadd.xlane.f32.xlu0 %v457_v34 }
 0x17e   :  { %995 = vmatmul.mubr.msk.bf16.vlgmr.msra.gmra.mrb[16].mxu0 %vm489_vm4, %v481_v37 }
 0x17f   :  { %v1045_v35 = vpop.eup %1044  ;;  %v451_v39 = vmul.f32 1.442695, %v438_v26  ;;  %v449_v40 = vmul.f32 1.442695, %v437_v38  ;;  %1005 = vmatpush3.bf16.msra.mxu0 %v587_v8  ;;  %1006 = vmatprep.mubr.msk.bf16.mxu0 %vm1075_vm1, %v1074_v0 }
 0x180   :  { %v460_v36 = vsel %vm408_vm2, %v1045_v35, 0.0  ;;  %v482_v41 = vpack.c.bf16 %v1045_v35, %v1045_v35  ;;  %1016 = vmatprep.subr.bf16.mxu0 %v1074_v0 }
 0x181   :  { %1050 = vpow2.f32 %v451_v39  ;;  %461 = vadd.xlane.f32.xlu1 %v460_v36 }
 0x182   :  { %1052 = vpow2.f32 %v449_v40  ;;  %1001 = vmatmul.mubr.msk.bf16.vlgmr.msra.gmra.mrb[16].mxu1 %vm489_vm4, %v482_v41 }
 0x183   :  { %v1047_v42 = vpop.eup %1046  ;;  %1011 = vmatpush3.bf16.msra.mxu1 %v633_v9  ;;  %1012 = vmatprep.mubr.msk.bf16.mxu1 %vm1075_vm1, %v1074_v0 }
 0x184   :  { %v432_v43 = vpop.xlane.xlu1 %431  ;;  %v429_v44 = vpop.xlane.xlu0 %428  ;;  %v463_v45 = vsel %vm408_vm2, %v1047_v42, 0.0  ;;  %v483_v46 = vpack.c.bf16 %v1047_v42, %v1047_v42  ;;  %1022 = vmatprep.subr.bf16.mxu1 %v1074_v0 }
 0x185   :  { %v440_v47 = vsub.f32 %v1216_v56, %v432_v43  ;;  %v439_v48 = vsub.f32 %v1214_v55, %v429_v44  ;;  %464 = vadd.xlane.f32.xlu0 %v463_v45 }
 0x186   :  { %1007 = vmatmul.mubr.msk.bf16.vlgmr.msra.gmra.mrb[20].mxu0 %vm489_vm4, %v483_v46 }
 0x187   :  { %v1049_v49 = vpop.eup %1048  ;;  %v455_v50 = vmul.f32 1.442695, %v440_v47  ;;  %v453_v51 = vmul.f32 1.442695, %v439_v48  ;;  %1017 = vmatpush3.bf16.msra.mxu0 %v679_v12  ;;  %1018 = vmatprep.mubr.msk.bf16.mxu0 %vm1075_vm1, %v1074_v0 }
 0x188   :  { %v466_v52 = vsel %vm408_vm2, %v1049_v49, 0.0  ;;  %v484_v53 = vpack.c.bf16 %v1049_v49, %v1049_v49  ;;  %1028 = vmatprep.subr.bf16.mxu0 %v1074_v0 }
 0x189   :  { %1054 = vpow2.f32 %v455_v50  ;;  %467 = vadd.xlane.f32.xlu1 %v466_v52 }
 0x18a   :  { %1056 = vpow2.f32 %v453_v51  ;;  %1013 = vmatmul.mubr.msk.bf16.vlgmr.msra.gmra.mrb[20].mxu1 %vm489_vm4, %v484_v53 }
 0x18b   :  { %v1051_v54 = vpop.eup %1050  ;;  %1023 = vmatpush3.bf16.msra.mxu1 %v1248_v13  ;;  %1024 = vmatprep.mubr.msk.bf16.mxu1 %vm1075_vm1, %v1074_v0 }
 0x18c   :  { %v1053_v55 = vpop.eup %1052  ;;  %v472_v56 = vsel %vm408_vm2, %v1051_v54, 0.0  ;;  %1034 = vmatprep.subr.bf16.mxu1 %v1074_v0  ;;  %v486_v59 = vpack.c.bf16 %v1051_v54, %v1051_v54 }
 0x18d   :  { %473 = vadd.xlane.f32.xlu1 %v472_v56  ;;  %v469_v57 = vsel %vm408_vm2, %v1053_v55, 0.0  ;;  %v485_v58 = vpack.c.bf16 %v1053_v55, %v1053_v55 }
 0x18e   :  { %470 = vadd.xlane.f32.xlu0 %v469_v57 }
 0x18f   :  { %1019 = vmatmul.mubr.msk.bf16.vlgmr.msra.gmra.mrb[24].mxu0 %vm489_vm4, %v485_v58 }
 0x190   :  { %1029 = vmatpush3.bf16.msra.mxu0 %v1257_v16  ;;  %1030 = vmatprep.mubr.msk.bf16.mxu0 %vm1075_vm1, %v1074_v0 }
 0x192   :  { %1025 = vmatmul.mubr.msk.bf16.vlgmr.msra.gmra.mrb[24].mxu1 %vm489_vm4, %v486_v59 }
 0x193   :  { %v1055_v60 = vpop.eup %1054  ;;  %1035 = vmatpush3.bf16.msra.mxu1 %v1260_v17  ;;  %1036 = vmatprep.mubr.msk.bf16.mxu1 %vm1075_vm1, %v1074_v0 }
 0x194   :  { %v1057_v61 = vpop.eup %1056  ;;  %v478_v62 = vsel %vm408_vm2, %v1055_v60, 0.0  ;;  %v488_v2 = vpack.c.bf16 %v1055_v60, %v1055_v60 }
 0x195   :  { %479 = vadd.xlane.f32.xlu1 %v478_v62  ;;  %v475_v63 = vsel %vm408_vm2, %v1057_v61, 0.0  ;;  %v487_v1 = vpack.c.bf16 %v1057_v61, %v1057_v61 }
 0x196   :  { %476 = vadd.xlane.f32.xlu0 %v475_v63 }
 0x197   :  { %1031 = vmatmul.mubr.msk.bf16.vlgmr.msra.gmra.mrb[28].mxu0 %vm489_vm4, %v487_v1 }
 0x19a   :  { %1037 = vmatmul.mubr.msk.bf16.vlgmr.msra.gmra.mrb[28].mxu1 %vm489_vm4, %v488_v2 }
 0x20a   :  { %v459_v3 = vpop.xlane.xlu0 %458 }
 0x20b   :  { %1058 = vrcp.f32 %v459_v3 }
 0x20e   :  { %v462_v4 = vpop.xlane.xlu1 %461 }
 0x20f   :  { %1060 = vrcp.f32 %v462_v4 }
 0x212   :  { %v465_v5 = vpop.xlane.xlu0 %464 }
 0x213   :  { %1062 = vrcp.f32 %v465_v5 }
 0x215   :  { %v1059_v6 = vpop.eup %1058 }
 0x216   :  { %v468_v0 = vpop.xlane.xlu1 %467 }
 0x217   :  { %1064 = vrcp.f32 %v468_v0 }
 0x219   :  { %v1061_v13 = vpop.eup %1060 }
 0x21a   :  { %v474_v19 = vpop.xlane.xlu1 %473 }
 0x21b   :  { %v471_v14 = vpop.xlane.xlu0 %470 }
 0x21c   :  { %1066 = vrcp.f32 %v471_v14 }
 0x21d   :  { %v1063_v22 = vpop.eup %1062  ;;  %1068 = vrcp.f32 %v474_v19 }
 0x221   :  { %v1065_v31 = vpop.eup %1064 }
 0x222   :  { %v480_v26 = vpop.xlane.xlu1 %479 }
 0x223   :  { %v477_v32 = vpop.xlane.xlu0 %476 }
 0x224   :  { %1070 = vrcp.f32 %v477_v32 }
 0x225   :  { %1072 = vrcp.f32 %v480_v26 }
 0x226   :  { %v1067_v39 = vpop.eup %1066 }
 0x227   :  { %v1069_v43 = vpop.eup %1068 }
 0x22e   :  { %v1071_v52 = vpop.eup %1070 }
 0x22f   :  { %v1073_v57 = vpop.eup %1072 }
 0x251   :  { %v531_v7 = vpop.f32.mrb[16].mxu0 }
 0x252   :  { %v860_v8 = vmul.f32 %v1059_v6, %v531_v7  ;;  %v996_v9 = vpop.f32.mrb[17].mxu0 }
 0x253   :  { %v534_v10 = vpop.f32.mrb[18].mxu0 }
 0x254   :  { %v875_v11 = vpack.c.bf16 %v860_v8, %v860_v8  ;;  %v997_v12 = vpop.f32.mrb[19].mxu0 }
 0x255   :  { %v577_v15 = vpop.f32.mrb[16].mxu1 }
 0x256   :  { %884 = vst.msk [vmem:[%s1340_s3] sm:$0x1] %vm883_vm5, %v875_v11  ;;  %v862_v16 = vmul.f32 %v1061_v13, %v577_v15  ;;  %v1002_v17 = vpop.f32.mrb[17].mxu1 }
 0x257   :  { %v580_v18 = vpop.f32.mrb[18].mxu1 }
 0x258   :  { %v876_v20 = vpack.c.bf16 %v862_v16, %v862_v16  ;;  %v1003_v21 = vpop.f32.mrb[19].mxu1 }
 0x259   :  { %v623_v23 = vpop.f32.mrb[20].mxu0 }
 0x25a   :  { %885 = vst.msk [vmem:[%s1340_s3 + $0x1] sm:$0x1] %vm883_vm5, %v876_v20  ;;  %v864_v24 = vmul.f32 %v1063_v22, %v623_v23  ;;  %v1008_v27 = vpop.f32.mrb[21].mxu0 }
 0x25b   :  { %v626_v28 = vpop.f32.mrb[22].mxu0 }
 0x25c   :  { %v877_v29 = vpack.c.bf16 %v864_v24, %v864_v24  ;;  %v1009_v30 = vpop.f32.mrb[23].mxu0 }
 0x25d   :  { %v669_v33 = vpop.f32.mrb[20].mxu1 }
 0x25e   :  { %886 = vst.msk [vmem:[%s1340_s3 + $0x2] sm:$0x1] %vm883_vm5, %v877_v29  ;;  %v866_v25 = vmul.f32 %v1065_v31, %v669_v33  ;;  %v1014_v34 = vpop.f32.mrb[21].mxu1 }
 0x25f   :  { %v672_v37 = vpop.f32.mrb[22].mxu1 }
 0x260   :  { %v878_v38 = vpack.c.bf16 %v866_v25, %v866_v25  ;;  %v1015_v35 = vpop.f32.mrb[23].mxu1 }
 0x262   :  { %887 = vst.msk [vmem:[%s1340_s3 + $0x3] sm:$0x1] %vm883_vm5, %v878_v38  ;;  %v715_v40 = vpop.f32.mrb[24].mxu0 }
 0x263   :  { %v868_v36 = vmul.f32 %v1067_v39, %v715_v40  ;;  %v1020_v41 = vpop.f32.mrb[25].mxu0 }
 0x264   :  { %v718_v42 = vpop.f32.mrb[26].mxu0 }
 0x265   :  { %v879_v44 = vpack.c.bf16 %v868_v36, %v868_v36  ;;  %v1021_v45 = vpop.f32.mrb[27].mxu0  ;;  %v761_v46 = vpop.f32.mrb[24].mxu1 }
 0x266   :  { %v870_v47 = vmul.f32 %v1069_v43, %v761_v46  ;;  %v1026_v48 = vpop.f32.mrb[25].mxu1 }
 0x267   :  { %888 = vst.msk [vmem:[%s1340_s3 + $0x4] sm:$0x1] %vm883_vm5, %v879_v44  ;;  %v764_v49 = vpop.f32.mrb[26].mxu1 }
 0x268   :  { %v880_v50 = vpack.c.bf16 %v870_v47, %v870_v47  ;;  %v1027_v51 = vpop.f32.mrb[27].mxu1 }
 0x26a   :  { %889 = vst.msk [vmem:[%s1340_s3 + $0x5] sm:$0x1] %vm883_vm5, %v880_v50  ;;  %v807_v53 = vpop.f32.mrb[28].mxu0 }
 0x26b   :  { %v872_v54 = vmul.f32 %v1071_v52, %v807_v53  ;;  %v1032_v55 = vpop.f32.mrb[29].mxu0 }
 0x26c   :  { %v810_v56 = vpop.f32.mrb[30].mxu0 }
 0x26d   :  { %v881_v58 = vpack.c.bf16 %v872_v54, %v872_v54  ;;  %v1033_v59 = vpop.f32.mrb[31].mxu0  ;;  %v853_v60 = vpop.f32.mrb[28].mxu1 }
 0x26e   :  { %v874_v61 = vmul.f32 %v1073_v57, %v853_v60  ;;  %v1038_v62 = vpop.f32.mrb[29].mxu1 }
 0x26f   :  { %890 = vst.msk [vmem:[%s1340_s3 + $0x6] sm:$0x1] %vm883_vm5, %v881_v58  ;;  %v856_v63 = vpop.f32.mrb[30].mxu1 }
 0x270   :  { %v882_v1 = vpack.c.bf16 %v874_v61, %v874_v61  ;;  %v1039_v2 = vpop.f32.mrb[31].mxu1 }
 0x272   :  { %891 = vst.msk [vmem:[%s1340_s3 + $0x7] sm:$0x1] %vm883_vm5, %v882_v1 }

// kernel: vanilla_regnet_v2_forward.29
= control target key start
LH: loop header
LB: loop body
LE: loop exit
PB: predicated region body
PF: predicated region fallthrough
CT: control target
= control target key end

     0   :  { %s2435_s12 = smov 0   ;;  %s2437_s13 = smov 0   ;;  %s2945_s0 = inlined_call_operand.vmem [shape: bf16[2,1024], index: 0, kind: input, shape index: {}]   ;;  %s2946_s1 = inlined_call_operand.vmem [shape: bf16[1024,768], index: 1, kind: input, shape index: {}]   ;;  %s2947_s2 = inlined_call_operand.vmem [shape: f32[1,768], index: 2, kind: input, shape index: {}]   ;;  %s2948_s3 = inlined_call_operand.vmem [shape: bf16[2,768], index: 3, kind: output, shape index: {}]  }
   0x1   :  { %s2439_s14 = smov 0   ;;  %s2441_s15 = smov 0  }
   0x2   :  { %s2443_s16 = smov 0  }
   0x3 LB: > { %s28_s17 = sadd.s32 1, %s2406_s15  ;;  %p76_p1 = scmp.ne.s32.totalorder %s2398_s13, %s2394_s12  ;;  %s2410_s16 = sphi %s2443_s16, %s13_s16   ;;  %s2406_s15 = sphi %s2441_s15, %s2952_s15   ;;  %s2402_s14 = sphi %s2439_s14, %s2951_s14   ;;  %s2398_s13 = sphi %s2437_s13, %s2950_s13   ;;  %s2394_s12 = sphi %s2435_s12, %s2949_s12  }
   0x4   : > { %p30_p0 = scmp.ge.s32.totalorder %s28_s17, 3  ;;  %p77_p2 = scmp.eq.s32.totalorder %s2410_s16, 0 }
   0x5   : > { %s69_s19 = sadd.s32 1, %s2398_s13  ;;  %p1985_p5 = scmp.ge.s32.totalorder %s2410_s16, 3 }
   0x6   : > { %s2954_s17 = smov (%p30_p0, %s28_s17), 0  ;;  %p78_p3 = por %p77_p2, %p76_p1 }
   0x7   : > { %s65_s18 = ssub.s32 %s2406_s15, %s2954_s17  ;;  %168 = sbr.rel (%p1985_p5) target bundleno = 82 (0x52), region = 20 }
   0x8   : > { %p67_p4 = scmp.eq.s32.totalorder %s65_s18, 0 }
   0xa   : > { %s2470_s20 = scalar_select %p67_p4, %s2398_s13, %s69_s19  }
   0xe   : > { %171 = sbr.rel (!%p78_p3) target bundleno = 82 (0x52), region = 24  ;;  %s173_s21 = sand.u32 (%p78_p3), 1, %s2398_s13  }
   0xf   : > { %s2125_s22 = sshll.u32 (%p78_p3), %s2406_s15, 3  ;;  %s1986_s23 = sshll.u32 (%p78_p3), %s173_s21, 10 }
  0x10   : > { %s2478_s26 = scalar_lea.vmem (%p78_p3), %s2946_s1, %s2125_s22  ;;  %s2483_s27 = scalar_lea.vmem (%p78_p3), [#allocation3], %s1986_s23 }
  0x11   : > { %v463_v0 = vld [vmem:[%s2478_s26] sm:$0xff] (%p78_p3)  ;;  %v465_v1 = vld [vmem:[%s2478_s26 + $0x18] sm:$0xff] (%p78_p3)  ;;  %v467_v2 = vld [vmem:[%s2478_s26 + $0x30] sm:$0xff] (%p78_p3) }
  0x12   : > { %464 = vst [vmem:[%s2483_s27] sm:$0xff] (%p78_p3), %v463_v0  ;;  %466 = vst [vmem:[%s2483_s27 + $0x8] sm:$0xff] (%p78_p3), %v465_v1  ;;  %v469_v3 = vld [vmem:[%s2478_s26 + $0x48] sm:$0xff] (%p78_p3)  ;;  %v471_v4 = vld [vmem:[%s2478_s26 + $0x60] sm:$0xff] (%p78_p3) }
  0x13   : > { %468 = vst [vmem:[%s2483_s27 + $0x10] sm:$0xff] (%p78_p3), %v467_v2  ;;  %v473_v5 = vld [vmem:[%s2478_s26 + $0x78] sm:$0xff] (%p78_p3)  ;;  %470 = vst [vmem:[%s2483_s27 + $0x18] sm:$0xff] (%p78_p3), %v469_v3  ;;  %v475_v6 = vld [vmem:[%s2478_s26 + $0x90] sm:$0xff] (%p78_p3) }
  0x14   : > { %472 = vst [vmem:[%s2483_s27 + $0x20] sm:$0xff] (%p78_p3), %v471_v4  ;;  %474 = vst [vmem:[%s2483_s27 + $0x28] sm:$0xff] (%p78_p3), %v473_v5  ;;  %v477_v7 = vld [vmem:[%s2478_s26 + $0xa8] sm:$0xff] (%p78_p3)  ;;  %v479_v8 = vld [vmem:[%s2478_s26 + $0xc0] sm:$0xff] (%p78_p3) }
  0x15   : > { %476 = vst [vmem:[%s2483_s27 + $0x30] sm:$0xff] %v475_v6  ;;  %478 = vst [vmem:[%s2483_s27 + $0x38] sm:$0xff] %v477_v7  ;;  %v481_v9 = vld [vmem:[%s2478_s26 + $0xd8] sm:$0xff]  ;;  %v483_v10 = vld [vmem:[%s2478_s26 + $0xf0] sm:$0xff] }
  0x16   : > { %480 = vst [vmem:[%s2483_s27 + $0x40] sm:$0xff] %v479_v8  ;;  %v485_v11 = vld [vmem:[%s2478_s26 + $0x108] sm:$0xff]  ;;  %482 = vst [vmem:[%s2483_s27 + $0x48] sm:$0xff] %v481_v9  ;;  %v487_v12 = vld [vmem:[%s2478_s26 + $0x120] sm:$0xff] }
  0x17   : > { %484 = vst [vmem:[%s2483_s27 + $0x50] sm:$0xff] %v483_v10  ;;  %486 = vst [vmem:[%s2483_s27 + $0x58] sm:$0xff] %v485_v11  ;;  %v489_v13 = vld [vmem:[%s2478_s26 + $0x138] sm:$0xff]  ;;  %v491_v14 = vld [vmem:[%s2478_s26 + $0x150] sm:$0xff] }
  0x18   : > { %488 = vst [vmem:[%s2483_s27 + $0x60] sm:$0xff] %v487_v12  ;;  %490 = vst [vmem:[%s2483_s27 + $0x68] sm:$0xff] %v489_v13  ;;  %v493_v15 = vld [vmem:[%s2478_s26 + $0x168] sm:$0xff]  ;;  %v495_v16 = vld [vmem:[%s2478_s26 + $0x180] sm:$0xff] }
  0x19   : > { %492 = vst [vmem:[%s2483_s27 + $0x70] sm:$0xff] %v491_v14  ;;  %v497_v17 = vld [vmem:[%s2478_s26 + $0x198] sm:$0xff]  ;;  %494 = vst [vmem:[%s2483_s27 + $0x78] sm:$0xff] %v493_v15  ;;  %v499_v18 = vld [vmem:[%s2478_s26 + $0x1b0] sm:$0xff] }
  0x1a   : > { %496 = vst [vmem:[%s2483_s27 + $0x80] sm:$0xff] %v495_v16  ;;  %498 = vst [vmem:[%s2483_s27 + $0x88] sm:$0xff] %v497_v17  ;;  %v501_v19 = vld [vmem:[%s2478_s26 + $0x1c8] sm:$0xff]  ;;  %v503_v20 = vld [vmem:[%s2478_s26 + $0x1e0] sm:$0xff] }
  0x1b   : > { %500 = vst [vmem:[%s2483_s27 + $0x90] sm:$0xff] %v499_v18  ;;  %502 = vst [vmem:[%s2483_s27 + $0x98] sm:$0xff] %v501_v19  ;;  %v505_v21 = vld [vmem:[%s2478_s26 + $0x1f8] sm:$0xff]  ;;  %v507_v22 = vld [vmem:[%s2478_s26 + $0x210] sm:$0xff] }
  0x1c   : > { %504 = vst [vmem:[%s2483_s27 + $0xa0] sm:$0xff] %v503_v20  ;;  %v509_v23 = vld [vmem:[%s2478_s26 + $0x228] sm:$0xff]  ;;  %506 = vst [vmem:[%s2483_s27 + $0xa8] sm:$0xff] %v505_v21  ;;  %v511_v24 = vld [vmem:[%s2478_s26 + $0x240] sm:$0xff] }
  0x1d   : > { %508 = vst [vmem:[%s2483_s27 + $0xb0] sm:$0xff] %v507_v22  ;;  %510 = vst [vmem:[%s2483_s27 + $0xb8] sm:$0xff] %v509_v23  ;;  %v513_v25 = vld [vmem:[%s2478_s26 + $0x258] sm:$0xff]  ;;  %v515_v26 = vld [vmem:[%s2478_s26 + $0x270] sm:$0xff] }
  0x1e   : > { %512 = vst [vmem:[%s2483_s27 + $0xc0] sm:$0xff] %v511_v24  ;;  %514 = vst [vmem:[%s2483_s27 + $0xc8] sm:$0xff] %v513_v25  ;;  %v517_v27 = vld [vmem:[%s2478_s26 + $0x288] sm:$0xff]  ;;  %v519_v28 = vld [vmem:[%s2478_s26 + $0x2a0] sm:$0xff] }
  0x1f   : > { %516 = vst [vmem:[%s2483_s27 + $0xd0] sm:$0xff] %v515_v26  ;;  %v521_v29 = vld [vmem:[%s2478_s26 + $0x2b8] sm:$0xff]  ;;  %518 = vst [vmem:[%s2483_s27 + $0xd8] sm:$0xff] %v517_v27  ;;  %v523_v30 = vld [vmem:[%s2478_s26 + $0x2d0] sm:$0xff] }
  0x20   : > { %520 = vst [vmem:[%s2483_s27 + $0xe0] sm:$0xff] %v519_v28  ;;  %522 = vst [vmem:[%s2483_s27 + $0xe8] sm:$0xff] %v521_v29  ;;  %v525_v31 = vld [vmem:[%s2478_s26 + $0x2e8] sm:$0xff]  ;;  %v527_v32 = vld [vmem:[%s2478_s26 + $0x300] sm:$0xff] }
  0x21   : > { %524 = vst [vmem:[%s2483_s27 + $0xf0] sm:$0xff] %v523_v30  ;;  %526 = vst [vmem:[%s2483_s27 + $0xf8] sm:$0xff] %v525_v31  ;;  %v529_v33 = vld [vmem:[%s2478_s26 + $0x318] sm:$0xff]  ;;  %v531_v34 = vld [vmem:[%s2478_s26 + $0x330] sm:$0xff] }
  0x22   : > { %528 = vst [vmem:[%s2483_s27 + $0x100] sm:$0xff] %v527_v32  ;;  %v533_v35 = vld [vmem:[%s2478_s26 + $0x348] sm:$0xff]  ;;  %530 = vst [vmem:[%s2483_s27 + $0x108] sm:$0xff] %v529_v33  ;;  %v535_v36 = vld [vmem:[%s2478_s26 + $0x360] sm:$0xff] }
  0x23   : > { %532 = vst [vmem:[%s2483_s27 + $0x110] sm:$0xff] %v531_v34  ;;  %534 = vst [vmem:[%s2483_s27 + $0x118] sm:$0xff] %v533_v35  ;;  %v537_v37 = vld [vmem:[%s2478_s26 + $0x378] sm:$0xff]  ;;  %v539_v38 = vld [vmem:[%s2478_s26 + $0x390] sm:$0xff] }
  0x24   : > { %536 = vst [vmem:[%s2483_s27 + $0x120] sm:$0xff] %v535_v36  ;;  %538 = vst [vmem:[%s2483_s27 + $0x128] sm:$0xff] %v537_v37  ;;  %v541_v39 = vld [vmem:[%s2478_s26 + $0x3a8] sm:$0xff]  ;;  %v543_v40 = vld [vmem:[%s2478_s26 + $0x3c0] sm:$0xff] }
  0x25   : > { %540 = vst [vmem:[%s2483_s27 + $0x130] sm:$0xff] %v539_v38  ;;  %v545_v41 = vld [vmem:[%s2478_s26 + $0x3d8] sm:$0xff]  ;;  %542 = vst [vmem:[%s2483_s27 + $0x138] sm:$0xff] %v541_v39  ;;  %v547_v42 = vld [vmem:[%s2478_s26 + $0x3f0] sm:$0xff] }
  0x26   : > { %544 = vst [vmem:[%s2483_s27 + $0x140] sm:$0xff] %v543_v40  ;;  %546 = vst [vmem:[%s2483_s27 + $0x148] sm:$0xff] %v545_v41  ;;  %v549_v43 = vld [vmem:[%s2478_s26 + $0x408] sm:$0xff]  ;;  %v551_v44 = vld [vmem:[%s2478_s26 + $0x420] sm:$0xff] }
  0x27   : > { %548 = vst [vmem:[%s2483_s27 + $0x150] sm:$0xff] %v547_v42  ;;  %550 = vst [vmem:[%s2483_s27 + $0x158] sm:$0xff] %v549_v43  ;;  %v553_v45 = vld [vmem:[%s2478_s26 + $0x438] sm:$0xff]  ;;  %v555_v46 = vld [vmem:[%s2478_s26 + $0x450] sm:$0xff] }
  0x28   : > { %552 = vst [vmem:[%s2483_s27 + $0x160] sm:$0xff] %v551_v44  ;;  %v557_v47 = vld [vmem:[%s2478_s26 + $0x468] sm:$0xff]  ;;  %554 = vst [vmem:[%s2483_s27 + $0x168] sm:$0xff] %v553_v45  ;;  %v559_v48 = vld [vmem:[%s2478_s26 + $0x480] sm:$0xff] }
  0x29   : > { %556 = vst [vmem:[%s2483_s27 + $0x170] sm:$0xff] %v555_v46  ;;  %558 = vst [vmem:[%s2483_s27 + $0x178] sm:$0xff] %v557_v47  ;;  %v561_v49 = vld [vmem:[%s2478_s26 + $0x498] sm:$0xff]  ;;  %v563_v50 = vld [vmem:[%s2478_s26 + $0x4b0] sm:$0xff] }
  0x2a   : > { %560 = vst [vmem:[%s2483_s27 + $0x180] sm:$0xff] %v559_v48  ;;  %562 = vst [vmem:[%s2483_s27 + $0x188] sm:$0xff] %v561_v49  ;;  %v565_v51 = vld [vmem:[%s2478_s26 + $0x4c8] sm:$0xff]  ;;  %v567_v52 = vld [vmem:[%s2478_s26 + $0x4e0] sm:$0xff] }
  0x2b   : > { %564 = vst [vmem:[%s2483_s27 + $0x190] sm:$0xff] %v563_v50  ;;  %v569_v53 = vld [vmem:[%s2478_s26 + $0x4f8] sm:$0xff]  ;;  %566 = vst [vmem:[%s2483_s27 + $0x198] sm:$0xff] %v565_v51  ;;  %v571_v54 = vld [vmem:[%s2478_s26 + $0x510] sm:$0xff] }
  0x2c   : > { %568 = vst [vmem:[%s2483_s27 + $0x1a0] sm:$0xff] %v567_v52  ;;  %570 = vst [vmem:[%s2483_s27 + $0x1a8] sm:$0xff] %v569_v53  ;;  %v573_v55 = vld [vmem:[%s2478_s26 + $0x528] sm:$0xff]  ;;  %v575_v56 = vld [vmem:[%s2478_s26 + $0x540] sm:$0xff] }
  0x2d   : > { %572 = vst [vmem:[%s2483_s27 + $0x1b0] sm:$0xff] %v571_v54  ;;  %574 = vst [vmem:[%s2483_s27 + $0x1b8] sm:$0xff] %v573_v55  ;;  %v577_v57 = vld [vmem:[%s2478_s26 + $0x558] sm:$0xff]  ;;  %v579_v58 = vld [vmem:[%s2478_s26 + $0x570] sm:$0xff] }
  0x2e   : > { %576 = vst [vmem:[%s2483_s27 + $0x1c0] sm:$0xff] %v575_v56  ;;  %v581_v59 = vld [vmem:[%s2478_s26 + $0x588] sm:$0xff]  ;;  %578 = vst [vmem:[%s2483_s27 + $0x1c8] sm:$0xff] %v577_v57  ;;  %v583_v60 = vld [vmem:[%s2478_s26 + $0x5a0] sm:$0xff] }
  0x2f   : > { %580 = vst [vmem:[%s2483_s27 + $0x1d0] sm:$0xff] %v579_v58  ;;  %582 = vst [vmem:[%s2483_s27 + $0x1d8] sm:$0xff] %v581_v59  ;;  %v585_v61 = vld [vmem:[%s2478_s26 + $0x5b8] sm:$0xff]  ;;  %v587_v62 = vld [vmem:[%s2478_s26 + $0x5d0] sm:$0xff] }
  0x30   : > { %584 = vst [vmem:[%s2483_s27 + $0x1e0] sm:$0xff] %v583_v60  ;;  %586 = vst [vmem:[%s2483_s27 + $0x1e8] sm:$0xff] %v585_v61  ;;  %v589_v63 = vld [vmem:[%s2478_s26 + $0x5e8] sm:$0xff]  ;;  %v591_v0 = vld [vmem:[%s2478_s26 + $0x600] sm:$0xff] }
  0x31   : > { %588 = vst [vmem:[%s2483_s27 + $0x1f0] sm:$0xff] %v587_v62  ;;  %v593_v1 = vld [vmem:[%s2478_s26 + $0x618] sm:$0xff]  ;;  %590 = vst [vmem:[%s2483_s27 + $0x1f8] sm:$0xff] %v589_v63  ;;  %v595_v2 = vld [vmem:[%s2478_s26 + $0x630] sm:$0xff] }
  0x32   : > { %592 = vst [vmem:[%s2483_s27 + $0x200] sm:$0xff] %v591_v0  ;;  %594 = vst [vmem:[%s2483_s27 + $0x208] sm:$0xff] %v593_v1  ;;  %v597_v3 = vld [vmem:[%s2478_s26 + $0x648] sm:$0xff]  ;;  %v599_v4 = vld [vmem:[%s2478_s26 + $0x660] sm:$0xff] }
  0x33   : > { %596 = vst [vmem:[%s2483_s27 + $0x210] sm:$0xff] %v595_v2  ;;  %598 = vst [vmem:[%s2483_s27 + $0x218] sm:$0xff] %v597_v3  ;;  %v601_v5 = vld [vmem:[%s2478_s26 + $0x678] sm:$0xff]  ;;  %v603_v6 = vld [vmem:[%s2478_s26 + $0x690] sm:$0xff] }
  0x34   : > { %600 = vst [vmem:[%s2483_s27 + $0x220] sm:$0xff] %v599_v4  ;;  %v605_v7 = vld [vmem:[%s2478_s26 + $0x6a8] sm:$0xff]  ;;  %602 = vst [vmem:[%s2483_s27 + $0x228] sm:$0xff] %v601_v5  ;;  %v607_v8 = vld [vmem:[%s2478_s26 + $0x6c0] sm:$0xff] }
  0x35   : > { %604 = vst [vmem:[%s2483_s27 + $0x230] sm:$0xff] %v603_v6  ;;  %606 = vst [vmem:[%s2483_s27 + $0x238] sm:$0xff] %v605_v7  ;;  %v609_v9 = vld [vmem:[%s2478_s26 + $0x6d8] sm:$0xff]  ;;  %v611_v10 = vld [vmem:[%s2478_s26 + $0x6f0] sm:$0xff] }
  0x36   : > { %608 = vst [vmem:[%s2483_s27 + $0x240] sm:$0xff] %v607_v8  ;;  %610 = vst [vmem:[%s2483_s27 + $0x248] sm:$0xff] %v609_v9  ;;  %v613_v11 = vld [vmem:[%s2478_s26 + $0x708] sm:$0xff]  ;;  %v615_v12 = vld [vmem:[%s2478_s26 + $0x720] sm:$0xff] }
  0x37   : > { %612 = vst [vmem:[%s2483_s27 + $0x250] sm:$0xff] %v611_v10  ;;  %v617_v13 = vld [vmem:[%s2478_s26 + $0x738] sm:$0xff]  ;;  %614 = vst [vmem:[%s2483_s27 + $0x258] sm:$0xff] %v613_v11  ;;  %v619_v14 = vld [vmem:[%s2478_s26 + $0x750] sm:$0xff] }
  0x38   : > { %616 = vst [vmem:[%s2483_s27 + $0x260] sm:$0xff] %v615_v12  ;;  %618 = vst [vmem:[%s2483_s27 + $0x268] sm:$0xff] %v617_v13  ;;  %v621_v15 = vld [vmem:[%s2478_s26 + $0x768] sm:$0xff]  ;;  %v623_v16 = vld [vmem:[%s2478_s26 + $0x780] sm:$0xff] }
  0x39   : > { %620 = vst [vmem:[%s2483_s27 + $0x270] sm:$0xff] %v619_v14  ;;  %622 = vst [vmem:[%s2483_s27 + $0x278] sm:$0xff] %v621_v15  ;;  %v625_v17 = vld [vmem:[%s2478_s26 + $0x798] sm:$0xff]  ;;  %v627_v18 = vld [vmem:[%s2478_s26 + $0x7b0] sm:$0xff] }
  0x3a   : > { %624 = vst [vmem:[%s2483_s27 + $0x280] sm:$0xff] %v623_v16  ;;  %v629_v19 = vld [vmem:[%s2478_s26 + $0x7c8] sm:$0xff]  ;;  %626 = vst [vmem:[%s2483_s27 + $0x288] sm:$0xff] %v625_v17  ;;  %v631_v20 = vld [vmem:[%s2478_s26 + $0x7e0] sm:$0xff] }
  0x3b   : > { %628 = vst [vmem:[%s2483_s27 + $0x290] sm:$0xff] %v627_v18  ;;  %630 = vst [vmem:[%s2483_s27 + $0x298] sm:$0xff] %v629_v19  ;;  %v633_v21 = vld [vmem:[%s2478_s26 + $0x7f8] sm:$0xff]  ;;  %v635_v22 = vld [vmem:[%s2478_s26 + $0x810] sm:$0xff] }
  0x3c   : > { %632 = vst [vmem:[%s2483_s27 + $0x2a0] sm:$0xff] %v631_v20  ;;  %634 = vst [vmem:[%s2483_s27 + $0x2a8] sm:$0xff] %v633_v21  ;;  %v637_v23 = vld [vmem:[%s2478_s26 + $0x828] sm:$0xff]  ;;  %v639_v24 = vld [vmem:[%s2478_s26 + $0x840] sm:$0xff] }
  0x3d   : > { %636 = vst [vmem:[%s2483_s27 + $0x2b0] sm:$0xff] %v635_v22  ;;  %v641_v25 = vld [vmem:[%s2478_s26 + $0x858] sm:$0xff]  ;;  %638 = vst [vmem:[%s2483_s27 + $0x2b8] sm:$0xff] %v637_v23  ;;  %v643_v26 = vld [vmem:[%s2478_s26 + $0x870] sm:$0xff] }
  0x3e   : > { %640 = vst [vmem:[%s2483_s27 + $0x2c0] sm:$0xff] %v639_v24  ;;  %642 = vst [vmem:[%s2483_s27 + $0x2c8] sm:$0xff] %v641_v25  ;;  %v645_v27 = vld [vmem:[%s2478_s26 + $0x888] sm:$0xff]  ;;  %v647_v28 = vld [vmem:[%s2478_s26 + $0x8a0] sm:$0xff] }
  0x3f   : > { %644 = vst [vmem:[%s2483_s27 + $0x2d0] sm:$0xff] %v643_v26  ;;  %646 = vst [vmem:[%s2483_s27 + $0x2d8] sm:$0xff] %v645_v27  ;;  %v649_v29 = vld [vmem:[%s2478_s26 + $0x8b8] sm:$0xff]  ;;  %v651_v30 = vld [vmem:[%s2478_s26 + $0x8d0] sm:$0xff] }
  0x40   : > { %648 = vst [vmem:[%s2483_s27 + $0x2e0] sm:$0xff] %v647_v28  ;;  %v653_v31 = vld [vmem:[%s2478_s26 + $0x8e8] sm:$0xff]  ;;  %650 = vst [vmem:[%s2483_s27 + $0x2e8] sm:$0xff] %v649_v29  ;;  %v655_v32 = vld [vmem:[%s2478_s26 + $0x900] sm:$0xff] }
  0x41   : > { %652 = vst [vmem:[%s2483_s27 + $0x2f0] sm:$0xff] %v651_v30  ;;  %654 = vst [vmem:[%s2483_s27 + $0x2f8] sm:$0xff] %v653_v31  ;;  %v657_v33 = vld [vmem:[%s2478_s26 + $0x918] sm:$0xff]  ;;  %v659_v34 = vld [vmem:[%s2478_s26 + $0x930] sm:$0xff] }
  0x42   : > { %656 = vst [vmem:[%s2483_s27 + $0x300] sm:$0xff] %v655_v32  ;;  %658 = vst [vmem:[%s2483_s27 + $0x308] sm:$0xff] %v657_v33  ;;  %v661_v35 = vld [vmem:[%s2478_s26 + $0x948] sm:$0xff]  ;;  %v663_v36 = vld [vmem:[%s2478_s26 + $0x960] sm:$0xff] }
  0x43   : > { %660 = vst [vmem:[%s2483_s27 + $0x310] sm:$0xff] %v659_v34  ;;  %v665_v37 = vld [vmem:[%s2478_s26 + $0x978] sm:$0xff]  ;;  %662 = vst [vmem:[%s2483_s27 + $0x318] sm:$0xff] %v661_v35  ;;  %v667_v38 = vld [vmem:[%s2478_s26 + $0x990] sm:$0xff] }
  0x44   : > { %664 = vst [vmem:[%s2483_s27 + $0x320] sm:$0xff] %v663_v36  ;;  %666 = vst [vmem:[%s2483_s27 + $0x328] sm:$0xff] %v665_v37  ;;  %v669_v39 = vld [vmem:[%s2478_s26 + $0x9a8] sm:$0xff]  ;;  %v671_v40 = vld [vmem:[%s2478_s26 + $0x9c0] sm:$0xff] }
  0x45   : > { %668 = vst [vmem:[%s2483_s27 + $0x330] sm:$0xff] %v667_v38  ;;  %670 = vst [vmem:[%s2483_s27 + $0x338] sm:$0xff] %v669_v39  ;;  %v673_v41 = vld [vmem:[%s2478_s26 + $0x9d8] sm:$0xff]  ;;  %v675_v42 = vld [vmem:[%s2478_s26 + $0x9f0] sm:$0xff] }
  0x46   : > { %672 = vst [vmem:[%s2483_s27 + $0x340] sm:$0xff] %v671_v40  ;;  %v677_v43 = vld [vmem:[%s2478_s26 + $0xa08] sm:$0xff]  ;;  %674 = vst [vmem:[%s2483_s27 + $0x348] sm:$0xff] %v673_v41  ;;  %v679_v44 = vld [vmem:[%s2478_s26 + $0xa20] sm:$0xff] }
  0x47   : > { %676 = vst [vmem:[%s2483_s27 + $0x350] sm:$0xff] %v675_v42  ;;  %678 = vst [vmem:[%s2483_s27 + $0x358] sm:$0xff] %v677_v43  ;;  %v681_v45 = vld [vmem:[%s2478_s26 + $0xa38] sm:$0xff]  ;;  %v683_v46 = vld [vmem:[%s2478_s26 + $0xa50] sm:$0xff] }
  0x48   : > { %680 = vst [vmem:[%s2483_s27 + $0x360] sm:$0xff] %v679_v44  ;;  %682 = vst [vmem:[%s2483_s27 + $0x368] sm:$0xff] %v681_v45  ;;  %v685_v47 = vld [vmem:[%s2478_s26 + $0xa68] sm:$0xff]  ;;  %v687_v48 = vld [vmem:[%s2478_s26 + $0xa80] sm:$0xff] }
  0x49   : > { %684 = vst [vmem:[%s2483_s27 + $0x370] sm:$0xff] %v683_v46  ;;  %v689_v49 = vld [vmem:[%s2478_s26 + $0xa98] sm:$0xff]  ;;  %686 = vst [vmem:[%s2483_s27 + $0x378] sm:$0xff] %v685_v47  ;;  %v691_v50 = vld [vmem:[%s2478_s26 + $0xab0] sm:$0xff] }
  0x4a   : > { %688 = vst [vmem:[%s2483_s27 + $0x380] sm:$0xff] %v687_v48  ;;  %690 = vst [vmem:[%s2483_s27 + $0x388] sm:$0xff] %v689_v49  ;;  %v693_v51 = vld [vmem:[%s2478_s26 + $0xac8] sm:$0xff]  ;;  %v695_v52 = vld [vmem:[%s2478_s26 + $0xae0] sm:$0xff] }
  0x4b   : > { %692 = vst [vmem:[%s2483_s27 + $0x390] sm:$0xff] %v691_v50  ;;  %694 = vst [vmem:[%s2483_s27 + $0x398] sm:$0xff] %v693_v51  ;;  %v697_v53 = vld [vmem:[%s2478_s26 + $0xaf8] sm:$0xff]  ;;  %v699_v54 = vld [vmem:[%s2478_s26 + $0xb10] sm:$0xff] }
  0x4c   : > { %696 = vst [vmem:[%s2483_s27 + $0x3a0] sm:$0xff] %v695_v52  ;;  %v701_v55 = vld [vmem:[%s2478_s26 + $0xb28] sm:$0xff]  ;;  %698 = vst [vmem:[%s2483_s27 + $0x3a8] sm:$0xff] %v697_v53  ;;  %v703_v56 = vld [vmem:[%s2478_s26 + $0xb40] sm:$0xff] }
  0x4d   : > { %700 = vst [vmem:[%s2483_s27 + $0x3b0] sm:$0xff] %v699_v54  ;;  %702 = vst [vmem:[%s2483_s27 + $0x3b8] sm:$0xff] %v701_v55  ;;  %v705_v57 = vld [vmem:[%s2478_s26 + $0xb58] sm:$0xff]  ;;  %v707_v58 = vld [vmem:[%s2478_s26 + $0xb70] sm:$0xff] }
  0x4e   : > { %704 = vst [vmem:[%s2483_s27 + $0x3c0] sm:$0xff] %v703_v56  ;;  %706 = vst [vmem:[%s2483_s27 + $0x3c8] sm:$0xff] %v705_v57  ;;  %v709_v59 = vld [vmem:[%s2478_s26 + $0xb88] sm:$0xff]  ;;  %v711_v60 = vld [vmem:[%s2478_s26 + $0xba0] sm:$0xff] }
  0x4f   : > { %708 = vst [vmem:[%s2483_s27 + $0x3d0] sm:$0xff] %v707_v58  ;;  %v713_v61 = vld [vmem:[%s2478_s26 + $0xbb8] sm:$0xff]  ;;  %710 = vst [vmem:[%s2483_s27 + $0x3d8] sm:$0xff] %v709_v59  ;;  %v715_v62 = vld [vmem:[%s2478_s26 + $0xbd0] sm:$0xff] }
  0x50   : > { %712 = vst [vmem:[%s2483_s27 + $0x3e0] sm:$0xff] %v711_v60  ;;  %714 = vst [vmem:[%s2483_s27 + $0x3e8] sm:$0xff] %v713_v61  ;;  %v717_v63 = vld [vmem:[%s2478_s26 + $0xbe8] sm:$0xff] }
  0x51   : > { %716 = vst [vmem:[%s2483_s27 + $0x3f0] sm:$0xff] %v715_v62  ;;  %718 = vst [vmem:[%s2483_s27 + $0x3f8] sm:$0xff] %v717_v63 }
  0x52 PF: > { %p1989_p6 = scmp.ge.s32.totalorder %s2410_s16, 1  ;;  %p731_p7 = scmp.lt.s32.totalorder %s2410_s16, 4 }
  0x54   : > { %p732_p8 = pnand %p1989_p6, %p731_p7 }
  0x55   : > { %s738_s28 = sand.u32 (!%p732_p8), 1, %s2394_s12   ;;  %v807_v0 = vld [vmem:[%s2945_s0] sm:$0xff] (!%p732_p8)  ;;  %v941_v1 = vlaneseq (!%p732_p8)  ;;  %v2412_v2 = vmov (!%p732_p8), 1966171168   ;;  %s1991_s6 = sshll.u32 (!%p732_p8), %s2402_s14, 1 }
  0x56   : > { %735 = sbr.rel (%p732_p8) target bundleno = 458 (0x1ca), region = 66  ;;  %s1990_s4 = sshll.u32 (!%p732_p8), %s738_s28, 10  ;;  %v939_v3 = vunpack.c.l.s4 (!%p732_p8), %v2412_v2  ;;  %v937_v7 = vcombine.high (!%p732_p8), %v807_v0, %v807_v0 }
  0x57   : > { %v2744_v4 = vshrl.u32 (!%p732_p8), %v941_v1, 7  ;;  %s2746_s5 = scalar_lea.vmem (!%p732_p8), [#allocation3], %s1990_s4  ;;  %p788_p9 = scmp.lt.s32.totalorder (!%p732_p8), %s1991_s6, 5 }
  0x58   : > { %v2179_v5 = vld [vmem:[%s2746_s5 + $0x4] ss:$8 sps:$4 sm:$0xff] (!%p732_p8)   ;;  %v940_v6 = vunpack.c.0.s8 (!%p732_p8), %v939_v3  ;;  %v2183_v9 = vld [vmem:[%s2746_s5] ss:$8 sps:$4 sm:$0xff] (!%p732_p8)   ;;  %v2185_v12 = vld [vmem:[%s2746_s5 + $0x14] ss:$8 sps:$4 sm:$0xff] (!%p732_p8)  }
  0x59   : > { %v2181_v8 = vld [vmem:[%s2746_s5 + $0x204] ss:$8 sps:$4 sm:$0xff] (!%p732_p8)   ;;  %1634 = vmatprep.subr.bf16.mxu1 (!%p732_p8), %v2179_v5  ;;  %v2184_v10 = vld [vmem:[%s2746_s5 + $0x200] ss:$8 sps:$4 sm:$0xff] (!%p732_p8)   ;;  %v2187_v13 = vld [vmem:[%s2746_s5 + $0x214] ss:$8 sps:$4 sm:$0xff] (!%p732_p8)  }
  0x5a   : > { %v2753_v11 = vsub.s32 (!%p732_p8), %v940_v6, %v2744_v4  ;;  %1716 = vmatprep.subr.bf16.mxu0 (!%p732_p8), %v2181_v8  ;;  %1635 = vmatpush1.bf16.msra.mxu1 (!%p732_p8), %v2183_v9  ;;  %v2189_v14 = vld [vmem:[%s2746_s5 + $0x10] ss:$8 sps:$4 sm:$0xff] (!%p732_p8)   ;;  %v2191_v18 = vld [vmem:[%s2746_s5 + $0x24] ss:$8 sps:$4 sm:$0xff] (!%p732_p8)   ;;  %v2195_v22 = vld [vmem:[%s2746_s5 + $0x20] ss:$8 sps:$4 sm:$0xff] (!%p732_p8)  }
  0x5b   : > { %1717 = vmatpush1.bf16.msra.mxu0 (!%p732_p8), %v2184_v10  ;;  %1636 = vmatprep.subr.bf16.mxu1 (!%p732_p8), %v2185_v12  ;;  %v2190_v17 = vld [vmem:[%s2746_s5 + $0x210] ss:$8 sps:$4 sm:$0xff] (!%p732_p8)   ;;  %v2193_v21 = vld [vmem:[%s2746_s5 + $0x224] ss:$8 sps:$4 sm:$0xff] (!%p732_p8)   ;;  %v2196_v23 = vld [vmem:[%s2746_s5 + $0x220] ss:$8 sps:$4 sm:$0xff] (!%p732_p8)  }
  0x5c   : > { %v2759_v15 = vrot.slane (!%p732_p8), %v807_v0, %v2753_v11  ;;  %v2762_v16 = vrot.slane (!%p732_p8), %v937_v7, %v2753_v11  ;;  %1718 = vmatprep.subr.bf16.mxu0 (!%p732_p8), %v2187_v13  ;;  %v2197_v24 = vld [vmem:[%s2746_s5 + $0x34] ss:$8 sps:$4 sm:$0xff] (!%p732_p8)   ;;  %v2201_v28 = vld [vmem:[%s2746_s5 + $0x30] ss:$8 sps:$4 sm:$0xff] (!%p732_p8)   ;;  %v2203_v30 = vld [vmem:[%s2746_s5 + $0x44] ss:$8 sps:$4 sm:$0xff] (!%p732_p8)  }
  0x5d   : > { %v2199_v27 = vld [vmem:[%s2746_s5 + $0x234] ss:$8 sps:$4 sm:$0xff]   ;;  %v2202_v29 = vld [vmem:[%s2746_s5 + $0x230] ss:$8 sps:$4 sm:$0xff]   ;;  %v2205_v31 = vld [vmem:[%s2746_s5 + $0x244] ss:$8 sps:$4 sm:$0xff]  }
  0x5e   : > { %v952_v19 = vcombine.high %v2759_v15, %v2759_v15  ;;  %v953_v20 = vcombine.high %v2762_v16, %v2762_v16  ;;  %1637 = vmatpush1.bf16.msra.mxu1 %v2189_v14  ;;  %v2207_v32 = vld [vmem:[%s2746_s5 + $0x40] ss:$8 sps:$4 sm:$0xff]   ;;  %v2209_v34 = vld [vmem:[%s2746_s5 + $0x54] ss:$8 sps:$4 sm:$0xff]   ;;  %v2213_v36 = vld [vmem:[%s2746_s5 + $0x50] ss:$8 sps:$4 sm:$0xff]  }
  0x5f   : > { %1719 = vmatpush1.bf16.msra.mxu0 %v2190_v17  ;;  %1638 = vmatprep.subr.bf16.mxu1 %v2191_v18  ;;  %v2208_v33 = vld [vmem:[%s2746_s5 + $0x240] ss:$8 sps:$4 sm:$0xff]   ;;  %v2211_v35 = vld [vmem:[%s2746_s5 + $0x254] ss:$8 sps:$4 sm:$0xff]   ;;  %v2214_v37 = vld [vmem:[%s2746_s5 + $0x250] ss:$8 sps:$4 sm:$0xff]  }
  0x60   : > { %v2775_v25 = vrot.slane %v952_v19, %v2753_v11  ;;  %v2778_v26 = vrot.slane %v953_v20, %v2753_v11  ;;  %1720 = vmatprep.subr.bf16.mxu0 %v2193_v21  ;;  %v2215_v38 = vld [vmem:[%s2746_s5 + $0x64] ss:$8 sps:$4 sm:$0xff]   ;;  %v2219_v40 = vld [vmem:[%s2746_s5 + $0x60] ss:$8 sps:$4 sm:$0xff]   ;;  %v2221_v42 = vld [vmem:[%s2746_s5 + $0x74] ss:$8 sps:$4 sm:$0xff]  }
  0x61   : > { %v2217_v39 = vld [vmem:[%s2746_s5 + $0x264] ss:$8 sps:$4 sm:$0xff]   ;;  %v2220_v41 = vld [vmem:[%s2746_s5 + $0x260] ss:$8 sps:$4 sm:$0xff]   ;;  %v2223_v43 = vld [vmem:[%s2746_s5 + $0x274] ss:$8 sps:$4 sm:$0xff]  }
  0x62   : > { %1666 = vmatprep.mubr.bf16.mxu1 %v2775_v25  ;;  %1748 = vmatprep.mubr.bf16.mxu0 %v2778_v26  ;;  %v2225_v44 = vld [vmem:[%s2746_s5 + $0x70] ss:$8 sps:$4 sm:$0xff]   ;;  %v2227_v46 = vld [vmem:[%s2746_s5 + $0x84] ss:$8 sps:$4 sm:$0xff]   ;;  %v2231_v48 = vld [vmem:[%s2746_s5 + $0x80] ss:$8 sps:$4 sm:$0xff]  }
  0x63   : > { %1639 = vmatpush1.bf16.msra.mxu1 %v2195_v22  ;;  %1721 = vmatpush1.bf16.msra.mxu0 %v2196_v23  ;;  %v2226_v45 = vld [vmem:[%s2746_s5 + $0x270] ss:$8 sps:$4 sm:$0xff]   ;;  %v2229_v47 = vld [vmem:[%s2746_s5 + $0x284] ss:$8 sps:$4 sm:$0xff]   ;;  %v2232_v49 = vld [vmem:[%s2746_s5 + $0x280] ss:$8 sps:$4 sm:$0xff]   ;;  %v2839_v22 = vrot.slane %v2759_v15, %v2753_v11  ;;  %v2843_v23 = vrot.slane %v2762_v16, %v2753_v11  ;;  %v985_v15 = vcombine.high %v2778_v26, %v2778_v26 }
  0x64   : > { %1640 = vmatprep.subr.bf16.mxu1 %v2197_v24  ;;  %1722 = vmatprep.subr.bf16.mxu0 %v2199_v27  ;;  %v2233_v50 = vld [vmem:[%s2746_s5 + $0x94] ss:$8 sps:$4 sm:$0xff]   ;;  %v2237_v52 = vld [vmem:[%s2746_s5 + $0x90] ss:$8 sps:$4 sm:$0xff]   ;;  %v2239_v54 = vld [vmem:[%s2746_s5 + $0xa4] ss:$8 sps:$4 sm:$0xff]  }
  0x65   : > { %v2235_v51 = vld [vmem:[%s2746_s5 + $0x294] ss:$8 sps:$4 sm:$0xff]   ;;  %v2238_v53 = vld [vmem:[%s2746_s5 + $0x290] ss:$8 sps:$4 sm:$0xff]   ;;  %v2241_v55 = vld [vmem:[%s2746_s5 + $0x2a4] ss:$8 sps:$4 sm:$0xff]  }
  0x66   : > { %v2243_v56 = vld [vmem:[%s2746_s5 + $0xa0] ss:$8 sps:$4 sm:$0xff]   ;;  %v2245_v58 = vld [vmem:[%s2746_s5 + $0xb4] ss:$8 sps:$4 sm:$0xff]   ;;  %v2249_v60 = vld [vmem:[%s2746_s5 + $0xb0] ss:$8 sps:$4 sm:$0xff]  }
  0x67   : > { %1641 = vmatpush1.bf16.msra.mxu1 %v2201_v28  ;;  %1723 = vmatpush1.bf16.msra.mxu0 %v2202_v29  ;;  %v2244_v57 = vld [vmem:[%s2746_s5 + $0x2a0] ss:$8 sps:$4 sm:$0xff]   ;;  %v2247_v59 = vld [vmem:[%s2746_s5 + $0x2b4] ss:$8 sps:$4 sm:$0xff]   ;;  %v2250_v61 = vld [vmem:[%s2746_s5 + $0x2b0] ss:$8 sps:$4 sm:$0xff]   ;;  %v984_v28 = vcombine.high %v2775_v25, %v2775_v25 }
  0x68   : > { %1642 = vmatprep.subr.bf16.mxu1 %v2203_v30  ;;  %1724 = vmatprep.subr.bf16.mxu0 %v2205_v31  ;;  %v2251_v62 = vld [vmem:[%s2746_s5 + $0xc4] ss:$8 sps:$4 sm:$0xff]   ;;  %v2255_v0 = vld [vmem:[%s2746_s5 + $0xc0] ss:$8 sps:$4 sm:$0xff]   ;;  %v2257_v2 = vld [vmem:[%s2746_s5 + $0xd4] ss:$8 sps:$4 sm:$0xff]  }
  0x69   : > { %v2253_v63 = vld [vmem:[%s2746_s5 + $0x2c4] ss:$8 sps:$4 sm:$0xff]   ;;  %v2256_v1 = vld [vmem:[%s2746_s5 + $0x2c0] ss:$8 sps:$4 sm:$0xff]   ;;  %v2259_v3 = vld [vmem:[%s2746_s5 + $0x2d4] ss:$8 sps:$4 sm:$0xff]  }
  0x6a   : > { %v2261_v5 = vld [vmem:[%s2746_s5 + $0xd0] ss:$8 sps:$4 sm:$0xff]   ;;  %v2263_v7 = vld [vmem:[%s2746_s5 + $0xe4] ss:$8 sps:$4 sm:$0xff]   ;;  %v2267_v9 = vld [vmem:[%s2746_s5 + $0xe0] ss:$8 sps:$4 sm:$0xff]  }
  0x6b   : > { %1643 = vmatpush1.bf16.msra.mxu1 %v2207_v32  ;;  %1725 = vmatpush1.bf16.msra.mxu0 %v2208_v33  ;;  %v2262_v6 = vld [vmem:[%s2746_s5 + $0x2d0] ss:$8 sps:$4 sm:$0xff]   ;;  %v2265_v8 = vld [vmem:[%s2746_s5 + $0x2e4] ss:$8 sps:$4 sm:$0xff]   ;;  %v2268_v10 = vld [vmem:[%s2746_s5 + $0x2e0] ss:$8 sps:$4 sm:$0xff]  }
  0x6c   : > { %1644 = vmatprep.subr.bf16.mxu1 %v2209_v34  ;;  %1726 = vmatprep.subr.bf16.mxu0 %v2211_v35  ;;  %v2269_v12 = vld [vmem:[%s2746_s5 + $0xf4] ss:$8 sps:$4 sm:$0xff]   ;;  %v2273_v14 = vld [vmem:[%s2746_s5 + $0xf0] ss:$8 sps:$4 sm:$0xff]   ;;  %v2277_v18 = vld [vmem:[%s2746_s5 + $0x104] ss:$8 sps:$4 sm:$0xff]  }
  0x6d   : > { %v2271_v13 = vld [vmem:[%s2746_s5 + $0x2f4] ss:$8 sps:$4 sm:$0xff]   ;;  %v2274_v17 = vld [vmem:[%s2746_s5 + $0x2f0] ss:$8 sps:$4 sm:$0xff]   ;;  %v2281_v19 = vld [vmem:[%s2746_s5 + $0x304] ss:$8 sps:$4 sm:$0xff]  }
  0x6e   : > { %v2275_v20 = vld [vmem:[%s2746_s5 + $0x100] ss:$8 sps:$4 sm:$0xff]   ;;  %v2284_v24 = vld [vmem:[%s2746_s5 + $0x114] ss:$8 sps:$4 sm:$0xff]   ;;  %v2282_v16 = vld [vmem:[%s2746_s5 + $0x110] ss:$8 sps:$4 sm:$0xff]  }
  0x6f   : > { %1645 = vmatpush1.bf16.msra.mxu1 %v2213_v36  ;;  %1727 = vmatpush1.bf16.msra.mxu0 %v2214_v37  ;;  %v2279_v21 = vld [vmem:[%s2746_s5 + $0x300] ss:$8 sps:$4 sm:$0xff]   ;;  %v2287_v27 = vld [vmem:[%s2746_s5 + $0x314] ss:$8 sps:$4 sm:$0xff]   ;;  %v2285_v29 = vld [vmem:[%s2746_s5 + $0x310] ss:$8 sps:$4 sm:$0xff]  }
  0x70   : > { %1646 = vmatprep.subr.bf16.mxu1 %v2215_v38  ;;  %1728 = vmatprep.subr.bf16.mxu0 %v2217_v39  ;;  %v2290_v30 = vld [vmem:[%s2746_s5 + $0x124] ss:$8 sps:$4 sm:$0xff]   ;;  %v2288_v26 = vld [vmem:[%s2746_s5 + $0x120] ss:$8 sps:$4 sm:$0xff]   ;;  %v2296_v32 = vld [vmem:[%s2746_s5 + $0x134] ss:$8 sps:$4 sm:$0xff]  }
  0x71   : > { %v2293_v25 = vld [vmem:[%s2746_s5 + $0x324] ss:$8 sps:$4 sm:$0xff]   ;;  %v2291_v31 = vld [vmem:[%s2746_s5 + $0x320] ss:$8 sps:$4 sm:$0xff]   ;;  %v2299_v33 = vld [vmem:[%s2746_s5 + $0x334] ss:$8 sps:$4 sm:$0xff]  }
  0x72   : > { %v2294_v34 = vld [vmem:[%s2746_s5 + $0x130] ss:$8 sps:$4 sm:$0xff]   ;;  %v2302_v36 = vld [vmem:[%s2746_s5 + $0x144] ss:$8 sps:$4 sm:$0xff]   ;;  %v2300_v38 = vld [vmem:[%s2746_s5 + $0x140] ss:$8 sps:$4 sm:$0xff]  }
  0x73   : > { %1647 = vmatpush1.bf16.msra.mxu1 %v2219_v40  ;;  %1729 = vmatpush1.bf16.msra.mxu0 %v2220_v41  ;;  %v2297_v35 = vld [vmem:[%s2746_s5 + $0x330] ss:$8 sps:$4 sm:$0xff]   ;;  %v2305_v37 = vld [vmem:[%s2746_s5 + $0x344] ss:$8 sps:$4 sm:$0xff]   ;;  %v2303_v39 = vld [vmem:[%s2746_s5 + $0x340] ss:$8 sps:$4 sm:$0xff]  }
  0x74   : > { %1648 = vmatprep.subr.bf16.mxu1 %v2221_v42  ;;  %1730 = vmatprep.subr.bf16.mxu0 %v2223_v43  ;;  %v2308_v40 = vld [vmem:[%s2746_s5 + $0x154] ss:$8 sps:$4 sm:$0xff]   ;;  %v2306_v42 = vld [vmem:[%s2746_s5 + $0x150] ss:$8 sps:$4 sm:$0xff]   ;;  %s2956_s6 = smov (!%p788_p9, %s1991_s6), 5 }
  0x75   : > { %v2311_v41 = vld [vmem:[%s2746_s5 + $0x354] ss:$8 sps:$4 sm:$0xff]   ;;  %v2309_v43 = vld [vmem:[%s2746_s5 + $0x350] ss:$8 sps:$4 sm:$0xff]   ;;  %s790_s9 = scalar_lea.vmem %s2947_s2, %s2956_s6  ;;  %s799_s12 = scalar_lea.vmem %s2948_s3, %s2956_s6 }
  0x77   : > { %1649 = vmatpush1.bf16.msra.mxu1 %v2225_v44  ;;  %1731 = vmatpush1.bf16.msra.mxu0 %v2226_v45  ;;  %v2314_v44 = vld [vmem:[%s2746_s5 + $0x164] ss:$8 sps:$4 sm:$0xff]  }
  0x78   : > { %1650 = vmatprep.subr.bf16.mxu1 %v2227_v46  ;;  %1732 = vmatprep.subr.bf16.mxu0 %v2229_v47  ;;  %v2317_v45 = vld [vmem:[%s2746_s5 + $0x364] ss:$8 sps:$4 sm:$0xff]   ;;  %v2312_v46 = vld [vmem:[%s2746_s5 + $0x160] ss:$8 sps:$4 sm:$0xff]  }
  0x79   : > { %v2315_v47 = vld [vmem:[%s2746_s5 + $0x360] ss:$8 sps:$4 sm:$0xff]  }
  0x7b   : > { %1651 = vmatpush1.bf16.msra.mxu1 %v2231_v48  ;;  %1733 = vmatpush1.bf16.msra.mxu0 %v2232_v49  ;;  %v2320_v48 = vld [vmem:[%s2746_s5 + $0x174] ss:$8 sps:$4 sm:$0xff]  }
  0x7c   : > { %1652 = vmatprep.subr.bf16.mxu1 %v2233_v50  ;;  %1734 = vmatprep.subr.bf16.mxu0 %v2235_v51  ;;  %v2323_v49 = vld [vmem:[%s2746_s5 + $0x374] ss:$8 sps:$4 sm:$0xff]   ;;  %v2318_v50 = vld [vmem:[%s2746_s5 + $0x170] ss:$8 sps:$4 sm:$0xff]  }
  0x7d   : > { %v2321_v51 = vld [vmem:[%s2746_s5 + $0x370] ss:$8 sps:$4 sm:$0xff]  }
  0x7f   : > { %1653 = vmatpush1.bf16.msra.mxu1 %v2237_v52  ;;  %1735 = vmatpush1.bf16.msra.mxu0 %v2238_v53  ;;  %v2326_v52 = vld [vmem:[%s2746_s5 + $0x184] ss:$8 sps:$4 sm:$0xff]  }
  0x80   : > { %1654 = vmatprep.subr.bf16.mxu1 %v2239_v54  ;;  %1736 = vmatprep.subr.bf16.mxu0 %v2241_v55  ;;  %v2329_v53 = vld [vmem:[%s2746_s5 + $0x384] ss:$8 sps:$4 sm:$0xff]   ;;  %v2324_v54 = vld [vmem:[%s2746_s5 + $0x180] ss:$8 sps:$4 sm:$0xff]  }
  0x81   : > { %v2327_v55 = vld [vmem:[%s2746_s5 + $0x380] ss:$8 sps:$4 sm:$0xff]  }
  0x83   : > { %1655 = vmatpush1.bf16.msra.mxu1 %v2243_v56  ;;  %1737 = vmatpush1.bf16.msra.mxu0 %v2244_v57  ;;  %v2332_v56 = vld [vmem:[%s2746_s5 + $0x194] ss:$8 sps:$4 sm:$0xff]  }
  0x84   : > { %1656 = vmatprep.subr.bf16.mxu1 %v2245_v58  ;;  %1738 = vmatprep.subr.bf16.mxu0 %v2247_v59  ;;  %v2335_v57 = vld [vmem:[%s2746_s5 + $0x394] ss:$8 sps:$4 sm:$0xff]   ;;  %v2330_v58 = vld [vmem:[%s2746_s5 + $0x190] ss:$8 sps:$4 sm:$0xff]  }
  0x85   : > { %v2333_v59 = vld [vmem:[%s2746_s5 + $0x390] ss:$8 sps:$4 sm:$0xff]  }
  0x87   : > { %1657 = vmatpush1.bf16.msra.mxu1 %v2249_v60  ;;  %1739 = vmatpush1.bf16.msra.mxu0 %v2250_v61  ;;  %v2338_v60 = vld [vmem:[%s2746_s5 + $0x1a4] ss:$8 sps:$4 sm:$0xff]  }
  0x88   : > { %1658 = vmatprep.subr.bf16.mxu1 %v2251_v62  ;;  %1740 = vmatprep.subr.bf16.mxu0 %v2253_v63  ;;  %v2341_v61 = vld [vmem:[%s2746_s5 + $0x3a4] ss:$8 sps:$4 sm:$0xff]   ;;  %v2336_v62 = vld [vmem:[%s2746_s5 + $0x1a0] ss:$8 sps:$4 sm:$0xff]  }
  0x89   : > { %v2339_v63 = vld [vmem:[%s2746_s5 + $0x3a0] ss:$8 sps:$4 sm:$0xff]  }
  0x8b   : > { %1659 = vmatpush1.bf16.msra.mxu1 %v2255_v0  ;;  %1741 = vmatpush1.bf16.msra.mxu0 %v2256_v1  ;;  %v2344_v0 = vld [vmem:[%s2746_s5 + $0x1b4] ss:$8 sps:$4 sm:$0xff]  }
  0x8c   : > { %1660 = vmatprep.subr.bf16.mxu1 %v2257_v2  ;;  %1742 = vmatprep.subr.bf16.mxu0 %v2259_v3  ;;  %v2347_v1 = vld [vmem:[%s2746_s5 + $0x3b4] ss:$8 sps:$4 sm:$0xff]   ;;  %v2342_v2 = vld [vmem:[%s2746_s5 + $0x1b0] ss:$8 sps:$4 sm:$0xff]  }
  0x8d   : > { %v2345_v3 = vld [vmem:[%s2746_s5 + $0x3b0] ss:$8 sps:$4 sm:$0xff]  }
  0x8f   : > { %1661 = vmatpush1.bf16.msra.mxu1 %v2261_v5  ;;  %1743 = vmatpush1.bf16.msra.mxu0 %v2262_v6  ;;  %v2350_v5 = vld [vmem:[%s2746_s5 + $0x1c4] ss:$8 sps:$4 sm:$0xff]  }
  0x90   : > { %1662 = vmatprep.subr.bf16.mxu1 %v2263_v7  ;;  %1744 = vmatprep.subr.bf16.mxu0 %v2265_v8  ;;  %v2353_v6 = vld [vmem:[%s2746_s5 + $0x3c4] ss:$8 sps:$4 sm:$0xff]   ;;  %v2348_v7 = vld [vmem:[%s2746_s5 + $0x1c0] ss:$8 sps:$4 sm:$0xff]  }
  0x91   : > { %v2351_v8 = vld [vmem:[%s2746_s5 + $0x3c0] ss:$8 sps:$4 sm:$0xff]  }
  0x93   : > { %1663 = vmatpush1.bf16.msra.mxu1 %v2267_v9  ;;  %1745 = vmatpush1.bf16.msra.mxu0 %v2268_v10  ;;  %v2356_v9 = vld [vmem:[%s2746_s5 + $0x1d4] ss:$8 sps:$4 sm:$0xff]  }
  0x94   : > { %1664 = vmatprep.subr.bf16.mxu1 %v2269_v12  ;;  %1746 = vmatprep.subr.bf16.mxu0 %v2271_v13  ;;  %v2359_v10 = vld [vmem:[%s2746_s5 + $0x3d4] ss:$8 sps:$4 sm:$0xff]   ;;  %v2354_v12 = vld [vmem:[%s2746_s5 + $0x1d0] ss:$8 sps:$4 sm:$0xff]  }
  0x95   : > { %v2357_v13 = vld [vmem:[%s2746_s5 + $0x3d0] ss:$8 sps:$4 sm:$0xff]  }
  0x97   : > { %1665 = vmatpush1.bf16.msra.mxu1 %v2273_v14  ;;  %1747 = vmatpush1.bf16.msra.mxu0 %v2274_v17  ;;  %v2362_v14 = vld [vmem:[%s2746_s5 + $0x1e4] ss:$8 sps:$4 sm:$0xff]  }
  0x98   : > { %1675 = vmatprep.subr.bf16.mxu1 %v2277_v18  ;;  %1757 = vmatprep.subr.bf16.mxu0 %v2281_v19  ;;  %v2365_v17 = vld [vmem:[%s2746_s5 + $0x3e4] ss:$8 sps:$4 sm:$0xff]   ;;  %v2360_v18 = vld [vmem:[%s2746_s5 + $0x1e0] ss:$8 sps:$4 sm:$0xff]  }
  0x99   : > { %v2363_v19 = vld [vmem:[%s2746_s5 + $0x3e0] ss:$8 sps:$4 sm:$0xff]  }
  0x9a   : > { %1667 = vmatmul.mubr.bf16.vlgmr.msra.gmra.mrb[0].mxu1 %v2839_v22  ;;  %1749 = vmatmul.mubr.bf16.vlgmr.msra.gmra.mrb[0].mxu0 %v2843_v23 }
  0x9b   : > { %1676 = vmatpush1.bf16.msra.mxu1 %v2275_v20  ;;  %1758 = vmatpush1.bf16.msra.mxu0 %v2279_v21  ;;  %v2368_v20 = vld [vmem:[%s2746_s5 + $0x1f4] ss:$8 sps:$4 sm:$0xff]  }
  0x9c   : > { %1677 = vmatprep.subr.bf16.mxu1 %v2284_v24  ;;  %1759 = vmatprep.subr.bf16.mxu0 %v2287_v27  ;;  %v2371_v21 = vld [vmem:[%s2746_s5 + $0x3f4] ss:$8 sps:$4 sm:$0xff]   ;;  %v2366_v24 = vld [vmem:[%s2746_s5 + $0x1f0] ss:$8 sps:$4 sm:$0xff]  }
  0x9d   : > { %1707 = vmatprep.mubr.bf16.mxu1 %v984_v28  ;;  %1789 = vmatprep.mubr.bf16.mxu0 %v985_v15  ;;  %v2369_v27 = vld [vmem:[%s2746_s5 + $0x3f0] ss:$8 sps:$4 sm:$0xff]   ;;  %v982_v28 = vcombine.high %v2839_v22, %v2839_v22  ;;  %v983_v15 = vcombine.high %v2843_v23, %v2843_v23 }
  0x9f   : > { %1678 = vmatpush1.bf16.msra.mxu1 %v2282_v16  ;;  %1760 = vmatpush1.bf16.msra.mxu0 %v2285_v29  ;;  %v2413_v16 = vmov 0.0   ;;  %v2414_v29 = vmov 1983009808  }
  0xa0   : > { %1679 = vmatprep.subr.bf16.mxu1 %v2290_v30  ;;  %1761 = vmatprep.subr.bf16.mxu0 %v2293_v25  ;;  %805 = vst [vmem:[#allocation2] sm:$0xf] %v2413_v16  ;;  %v1802_v30 = vunpack.c.l.s4 %v2414_v29 }
  0xa2   : > { %v1803_v25 = vunpack.c.0.s8 %v1802_v30 }
  0xa3   : > { %1680 = vmatpush1.bf16.msra.mxu1 %v2288_v26  ;;  %1762 = vmatpush1.bf16.msra.mxu0 %v2291_v31 }
  0xa4   : > { %1681 = vmatprep.subr.bf16.mxu1 %v2296_v32  ;;  %1763 = vmatprep.subr.bf16.mxu0 %v2299_v33 }
  0xa7   : > { %1682 = vmatpush1.bf16.msra.mxu1 %v2294_v34  ;;  %1764 = vmatpush1.bf16.msra.mxu0 %v2297_v35  ;;  %v1806_v34 = vsub.s32 %v1803_v25, %v2744_v4  ;;  %v1819_v35 = vsub.s32 0, %v2744_v4 }
  0xa8   : > { %1683 = vmatprep.subr.bf16.mxu1 %v2302_v36  ;;  %1765 = vmatprep.subr.bf16.mxu0 %v2305_v37  ;;  %v1823_v36 = vsub.s32 1, %v2744_v4 }
  0xab   : > { %1684 = vmatpush1.bf16.msra.mxu1 %v2300_v38  ;;  %1766 = vmatpush1.bf16.msra.mxu0 %v2303_v39  ;;  %v1815_v39 = vld [vmem:[%s790_s9] sm:$0x3] }
  0xac   : > { %1685 = vmatprep.subr.bf16.mxu1 %v2308_v40  ;;  %1767 = vmatprep.subr.bf16.mxu0 %v2311_v41 }
  0xaf   : > { %1686 = vmatpush1.bf16.msra.mxu1 %v2306_v42  ;;  %1768 = vmatpush1.bf16.msra.mxu0 %v2309_v43  ;;  %v806_v43 = vld [vmem:[#allocation2] sm:$0xf] }
  0xb0   : > { %1687 = vmatprep.subr.bf16.mxu1 %v2314_v44  ;;  %1769 = vmatprep.subr.bf16.mxu0 %v2317_v45  ;;  %v1820_v45 = vrot.slane %v1815_v39, %v1819_v35 }
  0xb3   : > { %1688 = vmatpush1.bf16.msra.mxu1 %v2312_v46  ;;  %1770 = vmatpush1.bf16.msra.mxu0 %v2315_v47  ;;  %v1824_v46 = vrot.slane %v1815_v39, %v1823_v36 }
  0xb4   : > { %1689 = vmatprep.subr.bf16.mxu1 %v2320_v48  ;;  %1771 = vmatprep.subr.bf16.mxu0 %v2323_v49 }
  0xb5   : > { %v1825_v48 = vcombine.low %v1820_v45, %v1824_v46 }
  0xb7   : > { %1690 = vmatpush1.bf16.msra.mxu1 %v2318_v50  ;;  %1772 = vmatpush1.bf16.msra.mxu0 %v2321_v51  ;;  %v1832_v49 = vrot.slane %v1825_v48, %v1806_v34 }
  0xb8   : > { %1691 = vmatprep.subr.bf16.mxu1 %v2326_v52  ;;  %1773 = vmatprep.subr.bf16.mxu0 %v2329_v53 }
  0xbb   : > { %1692 = vmatpush1.bf16.msra.mxu1 %v2324_v54  ;;  %1774 = vmatpush1.bf16.msra.mxu0 %v2327_v55 }
  0xbc   : > { %1693 = vmatprep.subr.bf16.mxu1 %v2332_v56  ;;  %1775 = vmatprep.subr.bf16.mxu0 %v2335_v57 }
  0xbf   : > { %1694 = vmatpush1.bf16.msra.mxu1 %v2330_v58  ;;  %1776 = vmatpush1.bf16.msra.mxu0 %v2333_v59 }
  0xc0   : > { %1695 = vmatprep.subr.bf16.mxu1 %v2338_v60  ;;  %1777 = vmatprep.subr.bf16.mxu0 %v2341_v61 }
  0xc3   : > { %1696 = vmatpush1.bf16.msra.mxu1 %v2336_v62  ;;  %1778 = vmatpush1.bf16.msra.mxu0 %v2339_v63 }
  0xc4   : > { %1697 = vmatprep.subr.bf16.mxu1 %v2344_v0  ;;  %1779 = vmatprep.subr.bf16.mxu0 %v2347_v1 }
  0xc7   : > { %1698 = vmatpush1.bf16.msra.mxu1 %v2342_v2  ;;  %1780 = vmatpush1.bf16.msra.mxu0 %v2345_v3 }
  0xc8   : > { %1699 = vmatprep.subr.bf16.mxu1 %v2350_v5  ;;  %1781 = vmatprep.subr.bf16.mxu0 %v2353_v6 }
  0xcb   : > { %1700 = vmatpush1.bf16.msra.mxu1 %v2348_v7  ;;  %1782 = vmatpush1.bf16.msra.mxu0 %v2351_v8 }
  0xcc   : > { %1701 = vmatprep.subr.bf16.mxu1 %v2356_v9  ;;  %1783 = vmatprep.subr.bf16.mxu0 %v2359_v10 }
  0xcf   : > { %1702 = vmatpush1.bf16.msra.mxu1 %v2354_v12  ;;  %1784 = vmatpush1.bf16.msra.mxu0 %v2357_v13 }
  0xd0   : > { %1703 = vmatprep.subr.bf16.mxu1 %v2362_v14  ;;  %1785 = vmatprep.subr.bf16.mxu0 %v2365_v17 }
  0xd3   : > { %1704 = vmatpush1.bf16.msra.mxu1 %v2360_v18  ;;  %1786 = vmatpush1.bf16.msra.mxu0 %v2363_v19 }
  0xd4   : > { %1705 = vmatprep.subr.bf16.mxu1 %v2368_v20  ;;  %1787 = vmatprep.subr.bf16.mxu0 %v2371_v21 }
  0xd7   : > { %1706 = vmatpush1.bf16.msra.mxu1 %v2366_v24  ;;  %1788 = vmatpush1.bf16.msra.mxu0 %v2369_v27 }
  0xda   : > { %1708 = vmatmul.mubr.bf16.vlgmr.msra.gmra.mrb[0].mxu1 %v982_v28  ;;  %1790 = vmatmul.mubr.bf16.vlgmr.msra.gmra.mrb[0].mxu0 %v983_v15 }
 0x1ad   : > { %v1709_v26 = vpop.f32.mrb[0].mxu1  ;;  %v1791_v31 = vpop.f32.mrb[0].mxu0 }
 0x1ae   : > { %v2126_v22 = vadd.f32 %v1791_v31, %v1709_v26  ;;  %v1711_v23 = vpop.f32.mrb[1].mxu1  ;;  %v1793_v32 = vpop.f32.mrb[1].mxu0 }
 0x1af   : > { %v2127_v33 = vadd.f32 %v1793_v32, %v1711_v23  ;;  %v1713_v37 = vpop.f32.mrb[2].mxu1  ;;  %v1795_v38 = vpop.f32.mrb[2].mxu0 }
 0x1b0   : > { %v1714_v40 = vpop.f32.mrb[3].mxu1  ;;  %v1796_v41 = vpop.f32.mrb[3].mxu0 }
 0x1b1   : > { %v1800_v42 = vcombine.low %v2126_v22, %v2127_v33 }
 0x1b3   : > { %v1807_v44 = vrot.slane %v1800_v42, %v1806_v34 }
 0x1b5   : > { %v1809_v47 = vadd.f32 %v1807_v44, %v806_v43 }
 0x1b7   : > { %1810 = vst [vmem:[#allocation2] sm:$0xf] %v1809_v47 }
 0x1be   : > { %v1814_v50 = vld [vmem:[#allocation2] sm:$0xf] }
 0x1bf   : > { %v1834_v51 = vadd.f32 %v1832_v49, %v1814_v50 }
 0x1c1   : > { %v1842_v52 = vrot.slane %v1834_v51, %v1806_v34 }
 0x1c3   : > { %v1843_v53 = vcombine.high %v1842_v52, %v1842_v52 }
 0x1c5   : > { %v2121_v4 = vpack.c.bf16 %v1843_v53, %v1842_v52 }
 0x1c7   : > { %v1857_v54 = vrot.slane %v2121_v4, %v2753_v11 }
 0x1c9   : > { %2122 = vst.sshfl [vmem:[%s799_s12] sm:$0x5 pattern:$0x73625140] %v1857_v54 }
 0x1ca PF: > { %s13_s16 = sadd.s32 1, %s2410_s16   ;;  %s2949_s12 = smov %s2398_s13 }
 0x1cb   : > { %p10_p10 = scmp.ge.s32.totalorder %s13_s16, 5   ;;  %s2950_s13 = smov %s2470_s20 }
 0x1cc   : > { %s2951_s14 = smov %s2406_s15  ;;  %s2952_s15 = smov %s2954_s17 }
 0x1cd   :  { %12 = sbr.rel (!%p10_p10) target bundleno = 3 (0x3), region = 119 }

// kernel: vanilla_regnet_v2_forward.33
= control target key start
LH: loop header
LB: loop body
LE: loop exit
PB: predicated region body
PF: predicated region fallthrough
CT: control target
= control target key end

     0   :  { %v67_v9 = vlaneseq  ;;  %v329_v13 = vmov 1966171168   ;;  %s418_s0 = inlined_call_operand.vmem [shape: bf16[2,256], index: 0, kind: input, shape index: {}]   ;;  %s419_s1 = inlined_call_operand.vmem [shape: bf16[256,128], index: 1, kind: input, shape index: {}]   ;;  %s420_s2 = inlined_call_operand.vmem [shape: f32[1,128], index: 2, kind: input, shape index: {}]   ;;  %s421_s3 = inlined_call_operand.hbm [shape: f32[2,128], index: 3, kind: output, shape index: {}]  }
   0x1   :  { %v289_v0 = vld [vmem:[%s419_s1 + $0x40] sm:$0xff]   ;;  %v291_v2 = vld [vmem:[%s419_s1 + $0x48] sm:$0xff]   ;;  %v293_v4 = vld [vmem:[%s419_s1 + $0x50] sm:$0xff]   ;;  %v65_v14 = vunpack.c.l.s4 %v329_v13 }
   0x2   :  { %v290_v1 = vld [vmem:[%s419_s1] sm:$0xff]   ;;  %264 = vmatprep.subr.bf16.mxu0 %v289_v0  ;;  %v292_v3 = vld [vmem:[%s419_s1 + $0x8] sm:$0xff]   ;;  %v294_v5 = vld [vmem:[%s419_s1 + $0x10] sm:$0xff]   ;;  %v68_v15 = vshrl.u32 %v67_v9, 7 }
   0x3   :  { %265 = vmatpush3.bf16.msra.mxu0 %v290_v1  ;;  %v295_v6 = vld [vmem:[%s419_s1 + $0x58] sm:$0xff]   ;;  %v297_v8 = vld [vmem:[%s419_s1 + $0x60] sm:$0xff]   ;;  %v299_v11 = vld [vmem:[%s419_s1 + $0x68] sm:$0xff]  }
   0x4   :  { %266 = vmatprep.subr.bf16.mxu0 %v291_v2  ;;  %v296_v7 = vld [vmem:[%s419_s1 + $0x18] sm:$0xff]   ;;  %v298_v10 = vld [vmem:[%s419_s1 + $0x20] sm:$0xff]  }
   0x5   :  { %v246_v12 = vld.sshfl [vmem:[%s418_s0] sm:$0x11 pattern:$0x75316420] }
   0x7   :  { %267 = vmatpush3.bf16.msra.mxu0 %v292_v3 }
   0x8   :  { %268 = vmatprep.subr.bf16.mxu0 %v293_v4 }
   0xb   :  { %269 = vmatpush3.bf16.msra.mxu0 %v294_v5 }
   0xc   :  { %270 = vmatprep.subr.bf16.mxu0 %v295_v6 }
   0xf   :  { %271 = vmatpush3.bf16.msra.mxu0 %v296_v7 }
  0x10   :  { %272 = vmatprep.subr.bf16.mxu0 %v297_v8 }
  0x11   :  { %8 = vsyncpa [#allocation4], 0  ;;  %v300_v16 = vld [vmem:[%s419_s1 + $0x28] sm:$0xff]   ;;  %v63_v17 = vcombine.high %v246_v12, %v246_v12  ;;  %v66_v18 = vunpack.c.0.s8 %v65_v14  ;;  %v301_v19 = vld [vmem:[%s419_s1 + $0x70] sm:$0xff]   ;;  %v330_v26 = vmov 0.0  }
  0x12   :  { %v302_v21 = vld [vmem:[%s419_s1 + $0x30] sm:$0xff]   ;;  %v303_v23 = vld [vmem:[%s419_s1 + $0x78] sm:$0xff]   ;;  %20 = vst [vmem:[#allocation2] sm:$0x3] %v330_v26  ;;  %v263_v34 = vld [vmem:[%s420_s2] ss:$0 sm:$0xff] }
  0x13   :  { %273 = vmatpush3.bf16.msra.mxu0 %v298_v10  ;;  %v69_v20 = vsub.s32 %v66_v18, %v68_v15  ;;  %v304_v24 = vld [vmem:[%s419_s1 + $0x38] sm:$0xff]   ;;  %s331_s1 = smov [#allocation3]  }
  0x14   :  { %274 = vmatprep.subr.bf16.mxu0 %v299_v11  ;;  %s238_s20 = sshll.u32 %s331_s1, 4  ;;  %s239_s20 = int_to_ptr.vmem [resolvable:$true] %s238_s20 }
  0x15   :  { %v77_v22 = vrot.slane %v63_v17, %v69_v20  ;;  %v70_v25 = vrot.slane %v246_v12, %v69_v20  ;;  %s305_s21 = scalar_lea.vmem %s239_s20, 32  ;;  %p310_p1 = scmp.lt.s32.totalorder %s239_s20, %s239_s20 }
  0x16   :  { %p306_p0 = scmp.ne.s32.totalorder %s239_s20, %s305_s21  ;;  %p311_p2 = scmp.lt.s32.totalorder %s305_s21, %s305_s21 }
  0x17   :  { %275 = vmatpush3.bf16.msra.mxu0 %v300_v16  ;;  %208 = vmatprep.mubr.bf16.mxu0 %v77_v22 }
  0x18   :  { %276 = vmatprep.subr.bf16.mxu0 %v301_v19  ;;  %p312_p3 = por %p311_p2, %p310_p1 }
  0x19   :  { %v21_v28 = vld [vmem:[#allocation2] sm:$0x3] }
  0x1a   :  { %p313_p4 = pnand %p312_p3, %p306_p0 }
  0x1b   :  { %277 = vmatpush3.bf16.msra.mxu0 %v302_v21 }
  0x1c   :  { %278 = vmatprep.subr.bf16.mxu0 %v303_v23 }
  0x1f   :  { %279 = vmatpush3.bf16.msra.mxu0 %v304_v24 }
  0x22   :  { %209 = vmatmul.mubr.bf16.vlgmr.msra.gmra.mrb[0].mxu0 %v70_v25 }
  0xf5   :  { %v280_v27 = vpop.f32.mrb[0].mxu0 }
  0xf6   :  { %v281_v29 = vpop.f32.mrb[1].mxu0 }
  0xf7   :  { %v282_v30 = vadd.f32 %v281_v29, %v280_v27  ;;  %v283_v31 = vpop.f32.mrb[2].mxu0 }
  0xf8   :  { %v284_v32 = vpop.f32.mrb[3].mxu0 }
  0xf9   :  { %v216_v33 = vadd.f32 %v282_v30, %v21_v28 }
  0xfb   :  { %217 = vst [vmem:[#allocation2] sm:$0x3] %v216_v33 }
 0x102   :  { %v221_v35 = vld [vmem:[#allocation2] sm:$0x3] }
 0x103   :  { %v229_v36 = vadd.f32 %v263_v34, %v221_v35 }
 0x105   :  { %v230_v37 = vmax.f32 %v229_v36, 0.0 }
 0x107   :  { %231 = vst [vmem:[#allocation3] sm:$0x3] %v230_v37 }
 0x108   :  { %316 = shalt.err (!%p313_p4)
}
 0x109   :  { %s317_s24 = scalar_lea.hbm %s421_s3, 32 }
 0x10a   :  { %p318_p5 = scmp.ne.s32.totalorder %s421_s3, %s317_s24  ;;  %p321_p6 = scmp.lt.u32.totalorder %s317_s24, %s421_s3 }
 0x10c   :  { %p323_p7 = pnand %p321_p6, %p318_p5 }
 0x10e   :  { %326 = shalt.err (!%p323_p7)
}
 0x10f   :  { %241 = dma.vmem_to_hbm [thread:$0]  %s239_s20, 32, %s421_s3, [#allocation4]  }
 0x110   :  { %327 = dma.done.wait [#allocation4], 32  }
 0x111   :  { %328 = vsyncadd [#allocation4], 4294967264 }
 0x112   :  { %245 = vsyncpa [#allocation4], 1 }

// kernel: vanilla_regnet_v2_forward.32
= control target key start
LH: loop header
LB: loop body
LE: loop exit
PB: predicated region body
PF: predicated region fallthrough
CT: control target
= control target key end

     0   :  { %s2073_s15 = smov 0   ;;  %s2075_s16 = smov 0   ;;  %s2487_s0 = inlined_call_operand.vmem [shape: bf16[2,1024], index: 0, kind: input, shape index: {}]   ;;  %s2488_s1 = inlined_call_operand.vmem [shape: bf16[1024,256], index: 1, kind: input, shape index: {}]   ;;  %s2489_s2 = inlined_call_operand.vmem [shape: f32[1,256], index: 2, kind: input, shape index: {}]   ;;  %s2490_s3 = inlined_call_operand.vmem [shape: bf16[2,256], index: 3, kind: input, shape index: {}]   ;;  %s2491_s4 = inlined_call_operand.vmem [shape: bf16[2,256], index: 4, kind: output, shape index: {}]  }
   0x1   :  { %s2077_s17 = smov 0   ;;  %s2079_s18 = smov 0  }
   0x2   :  { %s2081_s19 = smov 0  }
   0x3 LB: > { %s29_s20 = sadd.s32 1, %s2040_s18  ;;  %p77_p1 = scmp.ne.s32.totalorder %s2032_s16, %s2028_s15  ;;  %s2044_s19 = sphi %s2081_s19, %s14_s19   ;;  %s2040_s18 = sphi %s2079_s18, %s2495_s18   ;;  %s2036_s17 = sphi %s2077_s17, %s2494_s17   ;;  %s2032_s16 = sphi %s2075_s16, %s2493_s16   ;;  %s2028_s15 = sphi %s2073_s15, %s2492_s15  }
   0x4   : > { %p31_p0 = scmp.ge.s32.totalorder %s29_s20, 2  ;;  %p78_p2 = scmp.eq.s32.totalorder %s2044_s19, 0 }
   0x5   : > { %s70_s22 = sadd.s32 1, %s2032_s16  ;;  %p1739_p5 = scmp.ge.s32.totalorder %s2044_s19, 2 }
   0x6   : > { %s2497_s20 = smov (%p31_p0, %s29_s20), 0  ;;  %p79_p3 = por %p78_p2, %p77_p1 }
   0x7   : > { %s66_s21 = ssub.s32 %s2040_s18, %s2497_s20  ;;  %197 = sbr.rel (%p1739_p5) target bundleno = 103 (0x67), region = 20 }
   0x8   : > { %p68_p4 = scmp.eq.s32.totalorder %s66_s21, 0 }
   0xa   : > { %s2108_s23 = scalar_select %p68_p4, %s2032_s16, %s70_s22  }
   0xe   : > { %200 = sbr.rel (!%p79_p3) target bundleno = 103 (0x67), region = 24  ;;  %s202_s24 = sand.u32 (%p79_p3), 1, %s2032_s16  }
   0xf   : > { %s1741_s25 = sshll.u32 (%p79_p3), %s2040_s18, 2  ;;  %s1740_s26 = sshll.u32 (%p79_p3), %s202_s24, 9 }
  0x10   : > { %s2116_s29 = scalar_lea.vmem (%p79_p3), %s2488_s1, %s1741_s25  ;;  %s2120_s30 = scalar_lea.vmem (%p79_p3), [#allocation3], %s1740_s26 }
  0x11   : > { %v225_v0 = vld [vmem:[%s2116_s29] sm:$0xf] (%p79_p3)  ;;  %v227_v1 = vld [vmem:[%s2116_s29 + $0x8] sm:$0xf] (%p79_p3)  ;;  %v229_v2 = vld [vmem:[%s2116_s29 + $0x10] sm:$0xf] (%p79_p3) }
  0x12   : > { %226 = vst [vmem:[%s2120_s30] sm:$0xf] (%p79_p3), %v225_v0  ;;  %228 = vst [vmem:[%s2120_s30 + $0x4] sm:$0xf] (%p79_p3), %v227_v1  ;;  %v231_v3 = vld [vmem:[%s2116_s29 + $0x18] sm:$0xf] (%p79_p3) }
  0x13   : > { %v233_v4 = vld [vmem:[%s2116_s29 + $0x20] sm:$0xf] (%p79_p3)  ;;  %230 = vst [vmem:[%s2120_s30 + $0x8] sm:$0xf] (%p79_p3), %v229_v2  ;;  %232 = vst [vmem:[%s2120_s30 + $0xc] sm:$0xf] (%p79_p3), %v231_v3 }
  0x14   : > { %234 = vst [vmem:[%s2120_s30 + $0x10] sm:$0xf] (%p79_p3), %v233_v4  ;;  %v235_v5 = vld [vmem:[%s2116_s29 + $0x28] sm:$0xf] (%p79_p3)  ;;  %v237_v6 = vld [vmem:[%s2116_s29 + $0x30] sm:$0xf] (%p79_p3) }
  0x15   : > { %v239_v7 = vld [vmem:[%s2116_s29 + $0x38] sm:$0xf]  ;;  %236 = vst [vmem:[%s2120_s30 + $0x14] sm:$0xf] %v235_v5  ;;  %238 = vst [vmem:[%s2120_s30 + $0x18] sm:$0xf] %v237_v6 }
  0x16   : > { %240 = vst [vmem:[%s2120_s30 + $0x1c] sm:$0xf] %v239_v7  ;;  %v241_v8 = vld [vmem:[%s2116_s29 + $0x40] sm:$0xf]  ;;  %v243_v9 = vld [vmem:[%s2116_s29 + $0x48] sm:$0xf] }
  0x17   : > { %v245_v10 = vld [vmem:[%s2116_s29 + $0x50] sm:$0xf]  ;;  %242 = vst [vmem:[%s2120_s30 + $0x20] sm:$0xf] %v241_v8  ;;  %244 = vst [vmem:[%s2120_s30 + $0x24] sm:$0xf] %v243_v9 }
  0x18   : > { %246 = vst [vmem:[%s2120_s30 + $0x28] sm:$0xf] %v245_v10  ;;  %v247_v11 = vld [vmem:[%s2116_s29 + $0x58] sm:$0xf]  ;;  %v249_v12 = vld [vmem:[%s2116_s29 + $0x60] sm:$0xf] }
  0x19   : > { %v251_v13 = vld [vmem:[%s2116_s29 + $0x68] sm:$0xf]  ;;  %248 = vst [vmem:[%s2120_s30 + $0x2c] sm:$0xf] %v247_v11  ;;  %250 = vst [vmem:[%s2120_s30 + $0x30] sm:$0xf] %v249_v12 }
  0x1a   : > { %252 = vst [vmem:[%s2120_s30 + $0x34] sm:$0xf] %v251_v13  ;;  %v253_v14 = vld [vmem:[%s2116_s29 + $0x70] sm:$0xf]  ;;  %v255_v15 = vld [vmem:[%s2116_s29 + $0x78] sm:$0xf] }
  0x1b   : > { %v257_v16 = vld [vmem:[%s2116_s29 + $0x80] sm:$0xf]  ;;  %254 = vst [vmem:[%s2120_s30 + $0x38] sm:$0xf] %v253_v14  ;;  %256 = vst [vmem:[%s2120_s30 + $0x3c] sm:$0xf] %v255_v15 }
  0x1c   : > { %258 = vst [vmem:[%s2120_s30 + $0x40] sm:$0xf] %v257_v16  ;;  %v259_v17 = vld [vmem:[%s2116_s29 + $0x88] sm:$0xf]  ;;  %v261_v18 = vld [vmem:[%s2116_s29 + $0x90] sm:$0xf] }
  0x1d   : > { %v263_v19 = vld [vmem:[%s2116_s29 + $0x98] sm:$0xf]  ;;  %260 = vst [vmem:[%s2120_s30 + $0x44] sm:$0xf] %v259_v17  ;;  %262 = vst [vmem:[%s2120_s30 + $0x48] sm:$0xf] %v261_v18 }
  0x1e   : > { %264 = vst [vmem:[%s2120_s30 + $0x4c] sm:$0xf] %v263_v19  ;;  %v265_v20 = vld [vmem:[%s2116_s29 + $0xa0] sm:$0xf]  ;;  %v267_v21 = vld [vmem:[%s2116_s29 + $0xa8] sm:$0xf] }
  0x1f   : > { %v269_v22 = vld [vmem:[%s2116_s29 + $0xb0] sm:$0xf]  ;;  %266 = vst [vmem:[%s2120_s30 + $0x50] sm:$0xf] %v265_v20  ;;  %268 = vst [vmem:[%s2120_s30 + $0x54] sm:$0xf] %v267_v21 }
  0x20   : > { %270 = vst [vmem:[%s2120_s30 + $0x58] sm:$0xf] %v269_v22  ;;  %v271_v23 = vld [vmem:[%s2116_s29 + $0xb8] sm:$0xf]  ;;  %v273_v24 = vld [vmem:[%s2116_s29 + $0xc0] sm:$0xf] }
  0x21   : > { %v275_v25 = vld [vmem:[%s2116_s29 + $0xc8] sm:$0xf]  ;;  %272 = vst [vmem:[%s2120_s30 + $0x5c] sm:$0xf] %v271_v23  ;;  %274 = vst [vmem:[%s2120_s30 + $0x60] sm:$0xf] %v273_v24 }
  0x22   : > { %276 = vst [vmem:[%s2120_s30 + $0x64] sm:$0xf] %v275_v25  ;;  %v277_v26 = vld [vmem:[%s2116_s29 + $0xd0] sm:$0xf]  ;;  %v279_v27 = vld [vmem:[%s2116_s29 + $0xd8] sm:$0xf] }
  0x23   : > { %v281_v28 = vld [vmem:[%s2116_s29 + $0xe0] sm:$0xf]  ;;  %278 = vst [vmem:[%s2120_s30 + $0x68] sm:$0xf] %v277_v26  ;;  %280 = vst [vmem:[%s2120_s30 + $0x6c] sm:$0xf] %v279_v27 }
  0x24   : > { %282 = vst [vmem:[%s2120_s30 + $0x70] sm:$0xf] %v281_v28  ;;  %v283_v29 = vld [vmem:[%s2116_s29 + $0xe8] sm:$0xf]  ;;  %v285_v30 = vld [vmem:[%s2116_s29 + $0xf0] sm:$0xf] }
  0x25   : > { %v287_v31 = vld [vmem:[%s2116_s29 + $0xf8] sm:$0xf]  ;;  %284 = vst [vmem:[%s2120_s30 + $0x74] sm:$0xf] %v283_v29  ;;  %286 = vst [vmem:[%s2120_s30 + $0x78] sm:$0xf] %v285_v30 }
  0x26   : > { %288 = vst [vmem:[%s2120_s30 + $0x7c] sm:$0xf] %v287_v31  ;;  %v289_v32 = vld [vmem:[%s2116_s29 + $0x100] sm:$0xf]  ;;  %v291_v33 = vld [vmem:[%s2116_s29 + $0x108] sm:$0xf] }
  0x27   : > { %v293_v34 = vld [vmem:[%s2116_s29 + $0x110] sm:$0xf]  ;;  %290 = vst [vmem:[%s2120_s30 + $0x80] sm:$0xf] %v289_v32  ;;  %292 = vst [vmem:[%s2120_s30 + $0x84] sm:$0xf] %v291_v33 }
  0x28   : > { %294 = vst [vmem:[%s2120_s30 + $0x88] sm:$0xf] %v293_v34  ;;  %v295_v35 = vld [vmem:[%s2116_s29 + $0x118] sm:$0xf]  ;;  %v297_v36 = vld [vmem:[%s2116_s29 + $0x120] sm:$0xf] }
  0x29   : > { %v299_v37 = vld [vmem:[%s2116_s29 + $0x128] sm:$0xf]  ;;  %296 = vst [vmem:[%s2120_s30 + $0x8c] sm:$0xf] %v295_v35  ;;  %298 = vst [vmem:[%s2120_s30 + $0x90] sm:$0xf] %v297_v36 }
  0x2a   : > { %300 = vst [vmem:[%s2120_s30 + $0x94] sm:$0xf] %v299_v37  ;;  %v301_v38 = vld [vmem:[%s2116_s29 + $0x130] sm:$0xf]  ;;  %v303_v39 = vld [vmem:[%s2116_s29 + $0x138] sm:$0xf] }
  0x2b   : > { %v305_v40 = vld [vmem:[%s2116_s29 + $0x140] sm:$0xf]  ;;  %302 = vst [vmem:[%s2120_s30 + $0x98] sm:$0xf] %v301_v38  ;;  %304 = vst [vmem:[%s2120_s30 + $0x9c] sm:$0xf] %v303_v39 }
  0x2c   : > { %306 = vst [vmem:[%s2120_s30 + $0xa0] sm:$0xf] %v305_v40  ;;  %v307_v41 = vld [vmem:[%s2116_s29 + $0x148] sm:$0xf]  ;;  %v309_v42 = vld [vmem:[%s2116_s29 + $0x150] sm:$0xf] }
  0x2d   : > { %v311_v43 = vld [vmem:[%s2116_s29 + $0x158] sm:$0xf]  ;;  %308 = vst [vmem:[%s2120_s30 + $0xa4] sm:$0xf] %v307_v41  ;;  %310 = vst [vmem:[%s2120_s30 + $0xa8] sm:$0xf] %v309_v42 }
  0x2e   : > { %312 = vst [vmem:[%s2120_s30 + $0xac] sm:$0xf] %v311_v43  ;;  %v313_v44 = vld [vmem:[%s2116_s29 + $0x160] sm:$0xf]  ;;  %v315_v45 = vld [vmem:[%s2116_s29 + $0x168] sm:$0xf] }
  0x2f   : > { %v317_v46 = vld [vmem:[%s2116_s29 + $0x170] sm:$0xf]  ;;  %314 = vst [vmem:[%s2120_s30 + $0xb0] sm:$0xf] %v313_v44  ;;  %316 = vst [vmem:[%s2120_s30 + $0xb4] sm:$0xf] %v315_v45 }
  0x30   : > { %318 = vst [vmem:[%s2120_s30 + $0xb8] sm:$0xf] %v317_v46  ;;  %v319_v47 = vld [vmem:[%s2116_s29 + $0x178] sm:$0xf]  ;;  %v321_v48 = vld [vmem:[%s2116_s29 + $0x180] sm:$0xf] }
  0x31   : > { %v323_v49 = vld [vmem:[%s2116_s29 + $0x188] sm:$0xf]  ;;  %320 = vst [vmem:[%s2120_s30 + $0xbc] sm:$0xf] %v319_v47  ;;  %322 = vst [vmem:[%s2120_s30 + $0xc0] sm:$0xf] %v321_v48 }
  0x32   : > { %324 = vst [vmem:[%s2120_s30 + $0xc4] sm:$0xf] %v323_v49  ;;  %v325_v50 = vld [vmem:[%s2116_s29 + $0x190] sm:$0xf]  ;;  %v327_v51 = vld [vmem:[%s2116_s29 + $0x198] sm:$0xf] }
  0x33   : > { %v329_v52 = vld [vmem:[%s2116_s29 + $0x1a0] sm:$0xf]  ;;  %326 = vst [vmem:[%s2120_s30 + $0xc8] sm:$0xf] %v325_v50  ;;  %328 = vst [vmem:[%s2120_s30 + $0xcc] sm:$0xf] %v327_v51 }
  0x34   : > { %330 = vst [vmem:[%s2120_s30 + $0xd0] sm:$0xf] %v329_v52  ;;  %v331_v53 = vld [vmem:[%s2116_s29 + $0x1a8] sm:$0xf]  ;;  %v333_v54 = vld [vmem:[%s2116_s29 + $0x1b0] sm:$0xf] }
  0x35   : > { %v335_v55 = vld [vmem:[%s2116_s29 + $0x1b8] sm:$0xf]  ;;  %332 = vst [vmem:[%s2120_s30 + $0xd4] sm:$0xf] %v331_v53  ;;  %334 = vst [vmem:[%s2120_s30 + $0xd8] sm:$0xf] %v333_v54 }
  0x36   : > { %336 = vst [vmem:[%s2120_s30 + $0xdc] sm:$0xf] %v335_v55  ;;  %v337_v56 = vld [vmem:[%s2116_s29 + $0x1c0] sm:$0xf]  ;;  %v339_v57 = vld [vmem:[%s2116_s29 + $0x1c8] sm:$0xf] }
  0x37   : > { %v341_v58 = vld [vmem:[%s2116_s29 + $0x1d0] sm:$0xf]  ;;  %338 = vst [vmem:[%s2120_s30 + $0xe0] sm:$0xf] %v337_v56  ;;  %340 = vst [vmem:[%s2120_s30 + $0xe4] sm:$0xf] %v339_v57 }
  0x38   : > { %342 = vst [vmem:[%s2120_s30 + $0xe8] sm:$0xf] %v341_v58  ;;  %v343_v59 = vld [vmem:[%s2116_s29 + $0x1d8] sm:$0xf]  ;;  %v345_v60 = vld [vmem:[%s2116_s29 + $0x1e0] sm:$0xf] }
  0x39   : > { %v347_v61 = vld [vmem:[%s2116_s29 + $0x1e8] sm:$0xf]  ;;  %344 = vst [vmem:[%s2120_s30 + $0xec] sm:$0xf] %v343_v59  ;;  %346 = vst [vmem:[%s2120_s30 + $0xf0] sm:$0xf] %v345_v60 }
  0x3a   : > { %348 = vst [vmem:[%s2120_s30 + $0xf4] sm:$0xf] %v347_v61  ;;  %v349_v62 = vld [vmem:[%s2116_s29 + $0x1f0] sm:$0xf]  ;;  %v351_v63 = vld [vmem:[%s2116_s29 + $0x1f8] sm:$0xf] }
  0x3b   : > { %v353_v0 = vld [vmem:[%s2116_s29 + $0x200] sm:$0xf]  ;;  %350 = vst [vmem:[%s2120_s30 + $0xf8] sm:$0xf] %v349_v62  ;;  %352 = vst [vmem:[%s2120_s30 + $0xfc] sm:$0xf] %v351_v63 }
  0x3c   : > { %354 = vst [vmem:[%s2120_s30 + $0x100] sm:$0xf] %v353_v0  ;;  %v355_v1 = vld [vmem:[%s2116_s29 + $0x208] sm:$0xf]  ;;  %v357_v2 = vld [vmem:[%s2116_s29 + $0x210] sm:$0xf] }
  0x3d   : > { %v359_v3 = vld [vmem:[%s2116_s29 + $0x218] sm:$0xf]  ;;  %356 = vst [vmem:[%s2120_s30 + $0x104] sm:$0xf] %v355_v1  ;;  %358 = vst [vmem:[%s2120_s30 + $0x108] sm:$0xf] %v357_v2 }
  0x3e   : > { %360 = vst [vmem:[%s2120_s30 + $0x10c] sm:$0xf] %v359_v3  ;;  %v361_v4 = vld [vmem:[%s2116_s29 + $0x220] sm:$0xf]  ;;  %v363_v5 = vld [vmem:[%s2116_s29 + $0x228] sm:$0xf] }
  0x3f   : > { %v365_v6 = vld [vmem:[%s2116_s29 + $0x230] sm:$0xf]  ;;  %362 = vst [vmem:[%s2120_s30 + $0x110] sm:$0xf] %v361_v4  ;;  %364 = vst [vmem:[%s2120_s30 + $0x114] sm:$0xf] %v363_v5 }
  0x40   : > { %366 = vst [vmem:[%s2120_s30 + $0x118] sm:$0xf] %v365_v6  ;;  %v367_v7 = vld [vmem:[%s2116_s29 + $0x238] sm:$0xf]  ;;  %v369_v8 = vld [vmem:[%s2116_s29 + $0x240] sm:$0xf] }
  0x41   : > { %v371_v9 = vld [vmem:[%s2116_s29 + $0x248] sm:$0xf]  ;;  %368 = vst [vmem:[%s2120_s30 + $0x11c] sm:$0xf] %v367_v7  ;;  %370 = vst [vmem:[%s2120_s30 + $0x120] sm:$0xf] %v369_v8 }
  0x42   : > { %372 = vst [vmem:[%s2120_s30 + $0x124] sm:$0xf] %v371_v9  ;;  %v373_v10 = vld [vmem:[%s2116_s29 + $0x250] sm:$0xf]  ;;  %v375_v11 = vld [vmem:[%s2116_s29 + $0x258] sm:$0xf] }
  0x43   : > { %v377_v12 = vld [vmem:[%s2116_s29 + $0x260] sm:$0xf]  ;;  %374 = vst [vmem:[%s2120_s30 + $0x128] sm:$0xf] %v373_v10  ;;  %376 = vst [vmem:[%s2120_s30 + $0x12c] sm:$0xf] %v375_v11 }
  0x44   : > { %378 = vst [vmem:[%s2120_s30 + $0x130] sm:$0xf] %v377_v12  ;;  %v379_v13 = vld [vmem:[%s2116_s29 + $0x268] sm:$0xf]  ;;  %v381_v14 = vld [vmem:[%s2116_s29 + $0x270] sm:$0xf] }
  0x45   : > { %v383_v15 = vld [vmem:[%s2116_s29 + $0x278] sm:$0xf]  ;;  %380 = vst [vmem:[%s2120_s30 + $0x134] sm:$0xf] %v379_v13  ;;  %382 = vst [vmem:[%s2120_s30 + $0x138] sm:$0xf] %v381_v14 }
  0x46   : > { %384 = vst [vmem:[%s2120_s30 + $0x13c] sm:$0xf] %v383_v15  ;;  %v385_v16 = vld [vmem:[%s2116_s29 + $0x280] sm:$0xf]  ;;  %v387_v17 = vld [vmem:[%s2116_s29 + $0x288] sm:$0xf] }
  0x47   : > { %v389_v18 = vld [vmem:[%s2116_s29 + $0x290] sm:$0xf]  ;;  %386 = vst [vmem:[%s2120_s30 + $0x140] sm:$0xf] %v385_v16  ;;  %388 = vst [vmem:[%s2120_s30 + $0x144] sm:$0xf] %v387_v17 }
  0x48   : > { %390 = vst [vmem:[%s2120_s30 + $0x148] sm:$0xf] %v389_v18  ;;  %v391_v19 = vld [vmem:[%s2116_s29 + $0x298] sm:$0xf]  ;;  %v393_v20 = vld [vmem:[%s2116_s29 + $0x2a0] sm:$0xf] }
  0x49   : > { %v395_v21 = vld [vmem:[%s2116_s29 + $0x2a8] sm:$0xf]  ;;  %392 = vst [vmem:[%s2120_s30 + $0x14c] sm:$0xf] %v391_v19  ;;  %394 = vst [vmem:[%s2120_s30 + $0x150] sm:$0xf] %v393_v20 }
  0x4a   : > { %396 = vst [vmem:[%s2120_s30 + $0x154] sm:$0xf] %v395_v21  ;;  %v397_v22 = vld [vmem:[%s2116_s29 + $0x2b0] sm:$0xf]  ;;  %v399_v23 = vld [vmem:[%s2116_s29 + $0x2b8] sm:$0xf] }
  0x4b   : > { %v401_v24 = vld [vmem:[%s2116_s29 + $0x2c0] sm:$0xf]  ;;  %398 = vst [vmem:[%s2120_s30 + $0x158] sm:$0xf] %v397_v22  ;;  %400 = vst [vmem:[%s2120_s30 + $0x15c] sm:$0xf] %v399_v23 }
  0x4c   : > { %402 = vst [vmem:[%s2120_s30 + $0x160] sm:$0xf] %v401_v24  ;;  %v403_v25 = vld [vmem:[%s2116_s29 + $0x2c8] sm:$0xf]  ;;  %v405_v26 = vld [vmem:[%s2116_s29 + $0x2d0] sm:$0xf] }
  0x4d   : > { %v407_v27 = vld [vmem:[%s2116_s29 + $0x2d8] sm:$0xf]  ;;  %404 = vst [vmem:[%s2120_s30 + $0x164] sm:$0xf] %v403_v25  ;;  %406 = vst [vmem:[%s2120_s30 + $0x168] sm:$0xf] %v405_v26 }
  0x4e   : > { %408 = vst [vmem:[%s2120_s30 + $0x16c] sm:$0xf] %v407_v27  ;;  %v409_v28 = vld [vmem:[%s2116_s29 + $0x2e0] sm:$0xf]  ;;  %v411_v29 = vld [vmem:[%s2116_s29 + $0x2e8] sm:$0xf] }
  0x4f   : > { %v413_v30 = vld [vmem:[%s2116_s29 + $0x2f0] sm:$0xf]  ;;  %410 = vst [vmem:[%s2120_s30 + $0x170] sm:$0xf] %v409_v28  ;;  %412 = vst [vmem:[%s2120_s30 + $0x174] sm:$0xf] %v411_v29 }
  0x50   : > { %414 = vst [vmem:[%s2120_s30 + $0x178] sm:$0xf] %v413_v30  ;;  %v415_v31 = vld [vmem:[%s2116_s29 + $0x2f8] sm:$0xf]  ;;  %v417_v32 = vld [vmem:[%s2116_s29 + $0x300] sm:$0xf] }
  0x51   : > { %v419_v33 = vld [vmem:[%s2116_s29 + $0x308] sm:$0xf]  ;;  %416 = vst [vmem:[%s2120_s30 + $0x17c] sm:$0xf] %v415_v31  ;;  %418 = vst [vmem:[%s2120_s30 + $0x180] sm:$0xf] %v417_v32 }
  0x52   : > { %420 = vst [vmem:[%s2120_s30 + $0x184] sm:$0xf] %v419_v33  ;;  %v421_v34 = vld [vmem:[%s2116_s29 + $0x310] sm:$0xf]  ;;  %v423_v35 = vld [vmem:[%s2116_s29 + $0x318] sm:$0xf] }
  0x53   : > { %v425_v36 = vld [vmem:[%s2116_s29 + $0x320] sm:$0xf]  ;;  %422 = vst [vmem:[%s2120_s30 + $0x188] sm:$0xf] %v421_v34  ;;  %424 = vst [vmem:[%s2120_s30 + $0x18c] sm:$0xf] %v423_v35 }
  0x54   : > { %426 = vst [vmem:[%s2120_s30 + $0x190] sm:$0xf] %v425_v36  ;;  %v427_v37 = vld [vmem:[%s2116_s29 + $0x328] sm:$0xf]  ;;  %v429_v38 = vld [vmem:[%s2116_s29 + $0x330] sm:$0xf] }
  0x55   : > { %v431_v39 = vld [vmem:[%s2116_s29 + $0x338] sm:$0xf]  ;;  %428 = vst [vmem:[%s2120_s30 + $0x194] sm:$0xf] %v427_v37  ;;  %430 = vst [vmem:[%s2120_s30 + $0x198] sm:$0xf] %v429_v38 }
  0x56   : > { %432 = vst [vmem:[%s2120_s30 + $0x19c] sm:$0xf] %v431_v39  ;;  %v433_v40 = vld [vmem:[%s2116_s29 + $0x340] sm:$0xf]  ;;  %v435_v41 = vld [vmem:[%s2116_s29 + $0x348] sm:$0xf] }
  0x57   : > { %v437_v42 = vld [vmem:[%s2116_s29 + $0x350] sm:$0xf]  ;;  %434 = vst [vmem:[%s2120_s30 + $0x1a0] sm:$0xf] %v433_v40  ;;  %436 = vst [vmem:[%s2120_s30 + $0x1a4] sm:$0xf] %v435_v41 }
  0x58   : > { %438 = vst [vmem:[%s2120_s30 + $0x1a8] sm:$0xf] %v437_v42  ;;  %v439_v43 = vld [vmem:[%s2116_s29 + $0x358] sm:$0xf]  ;;  %v441_v44 = vld [vmem:[%s2116_s29 + $0x360] sm:$0xf] }
  0x59   : > { %v443_v45 = vld [vmem:[%s2116_s29 + $0x368] sm:$0xf]  ;;  %440 = vst [vmem:[%s2120_s30 + $0x1ac] sm:$0xf] %v439_v43  ;;  %442 = vst [vmem:[%s2120_s30 + $0x1b0] sm:$0xf] %v441_v44 }
  0x5a   : > { %444 = vst [vmem:[%s2120_s30 + $0x1b4] sm:$0xf] %v443_v45  ;;  %v445_v46 = vld [vmem:[%s2116_s29 + $0x370] sm:$0xf]  ;;  %v447_v47 = vld [vmem:[%s2116_s29 + $0x378] sm:$0xf] }
  0x5b   : > { %v449_v48 = vld [vmem:[%s2116_s29 + $0x380] sm:$0xf]  ;;  %446 = vst [vmem:[%s2120_s30 + $0x1b8] sm:$0xf] %v445_v46  ;;  %448 = vst [vmem:[%s2120_s30 + $0x1bc] sm:$0xf] %v447_v47 }
  0x5c   : > { %450 = vst [vmem:[%s2120_s30 + $0x1c0] sm:$0xf] %v449_v48  ;;  %v451_v49 = vld [vmem:[%s2116_s29 + $0x388] sm:$0xf]  ;;  %v453_v50 = vld [vmem:[%s2116_s29 + $0x390] sm:$0xf] }
  0x5d   : > { %v455_v51 = vld [vmem:[%s2116_s29 + $0x398] sm:$0xf]  ;;  %452 = vst [vmem:[%s2120_s30 + $0x1c4] sm:$0xf] %v451_v49  ;;  %454 = vst [vmem:[%s2120_s30 + $0x1c8] sm:$0xf] %v453_v50 }
  0x5e   : > { %456 = vst [vmem:[%s2120_s30 + $0x1cc] sm:$0xf] %v455_v51  ;;  %v457_v52 = vld [vmem:[%s2116_s29 + $0x3a0] sm:$0xf]  ;;  %v459_v53 = vld [vmem:[%s2116_s29 + $0x3a8] sm:$0xf] }
  0x5f   : > { %v461_v54 = vld [vmem:[%s2116_s29 + $0x3b0] sm:$0xf]  ;;  %458 = vst [vmem:[%s2120_s30 + $0x1d0] sm:$0xf] %v457_v52  ;;  %460 = vst [vmem:[%s2120_s30 + $0x1d4] sm:$0xf] %v459_v53 }
  0x60   : > { %462 = vst [vmem:[%s2120_s30 + $0x1d8] sm:$0xf] %v461_v54  ;;  %v463_v55 = vld [vmem:[%s2116_s29 + $0x3b8] sm:$0xf]  ;;  %v465_v56 = vld [vmem:[%s2116_s29 + $0x3c0] sm:$0xf] }
  0x61   : > { %v467_v57 = vld [vmem:[%s2116_s29 + $0x3c8] sm:$0xf]  ;;  %464 = vst [vmem:[%s2120_s30 + $0x1dc] sm:$0xf] %v463_v55  ;;  %466 = vst [vmem:[%s2120_s30 + $0x1e0] sm:$0xf] %v465_v56 }
  0x62   : > { %468 = vst [vmem:[%s2120_s30 + $0x1e4] sm:$0xf] %v467_v57  ;;  %v469_v58 = vld [vmem:[%s2116_s29 + $0x3d0] sm:$0xf]  ;;  %v471_v59 = vld [vmem:[%s2116_s29 + $0x3d8] sm:$0xf] }
  0x63   : > { %v473_v60 = vld [vmem:[%s2116_s29 + $0x3e0] sm:$0xf]  ;;  %470 = vst [vmem:[%s2120_s30 + $0x1e8] sm:$0xf] %v469_v58  ;;  %472 = vst [vmem:[%s2120_s30 + $0x1ec] sm:$0xf] %v471_v59 }
  0x64   : > { %474 = vst [vmem:[%s2120_s30 + $0x1f0] sm:$0xf] %v473_v60  ;;  %v475_v61 = vld [vmem:[%s2116_s29 + $0x3e8] sm:$0xf]  ;;  %v477_v62 = vld [vmem:[%s2116_s29 + $0x3f0] sm:$0xf] }
  0x65   : > { %v479_v63 = vld [vmem:[%s2116_s29 + $0x3f8] sm:$0xf]  ;;  %476 = vst [vmem:[%s2120_s30 + $0x1f4] sm:$0xf] %v475_v61  ;;  %478 = vst [vmem:[%s2120_s30 + $0x1f8] sm:$0xf] %v477_v62 }
  0x66   : > { %480 = vst [vmem:[%s2120_s30 + $0x1fc] sm:$0xf] %v479_v63 }
  0x67 PF: > { %p1742_p6 = scmp.ge.s32.totalorder %s2044_s19, 1  ;;  %p774_p7 = scmp.lt.s32.totalorder %s2044_s19, 3 }
  0x69   : > { %p775_p8 = pnand %p1742_p6, %p774_p7 }
  0x6a   : > { %s781_s5 = sand.u32 (!%p775_p8), 1, %s2028_s15   ;;  %v994_v0 = vlaneseq (!%p775_p8)  ;;  %v2046_v1 = vmov (!%p775_p8), 1966171168   ;;  %v860_v3 = vld [vmem:[%s2487_s0] sm:$0xff] (!%p775_p8)  ;;  %p836_p9 = scmp.lt.s32.totalorder (!%p775_p8), %s2036_s17, 1 }
  0x6b   : > { %778 = sbr.rel (%p775_p8) target bundleno = 411 (0x19b), region = 73  ;;  %s1743_s6 = sshll.u32 (!%p775_p8), %s781_s5, 9  ;;  %v992_v2 = vunpack.c.l.s4 (!%p775_p8), %v2046_v1  ;;  %v990_v30 = vcombine.high (!%p775_p8), %v860_v3, %v860_v3 }
  0x6c   : > { %v995_v4 = vshrl.u32 (!%p775_p8), %v994_v0, 7  ;;  %s2382_s9 = scalar_lea.vmem (!%p775_p8), [#allocation3], %s1743_s6 }
  0x6d   : > { %v1941_v5 = vld [vmem:[%s2382_s9 + $0x40] sm:$0xff] (!%p775_p8)   ;;  %v993_v6 = vunpack.c.0.s8 (!%p775_p8), %v992_v2  ;;  %v1945_v11 = vld [vmem:[%s2382_s9 + $0x48] sm:$0xff] (!%p775_p8)   ;;  %v1949_v17 = vld [vmem:[%s2382_s9 + $0x50] sm:$0xff] (!%p775_p8)  }
  0x6e   : > { %v1942_v7 = vld [vmem:[%s2382_s9 + $0xc0] sm:$0xff] (!%p775_p8)   ;;  %1811 = vmatprep.subr.bf16.mxu0 (!%p775_p8), %v1941_v5  ;;  %v1946_v13 = vld [vmem:[%s2382_s9 + $0xc8] sm:$0xff] (!%p775_p8)   ;;  %v1950_v19 = vld [vmem:[%s2382_s9 + $0xd0] sm:$0xff] (!%p775_p8)  }
  0x6f   : > { %v1943_v8 = vld [vmem:[%s2382_s9] sm:$0xff] (!%p775_p8)   ;;  %v2387_v9 = vsub.s32 (!%p775_p8), %v993_v6, %v995_v4  ;;  %1833 = vmatprep.subr.bf16.mxu1 (!%p775_p8), %v1942_v7  ;;  %v1947_v14 = vld [vmem:[%s2382_s9 + $0x8] sm:$0xff] (!%p775_p8)   ;;  %v1951_v20 = vld [vmem:[%s2382_s9 + $0x10] sm:$0xff] (!%p775_p8)  }
  0x70   : > { %v1944_v10 = vld [vmem:[%s2382_s9 + $0x80] sm:$0xff] (!%p775_p8)   ;;  %1812 = vmatpush3.bf16.msra.mxu0 (!%p775_p8), %v1943_v8  ;;  %v1948_v16 = vld [vmem:[%s2382_s9 + $0x88] sm:$0xff] (!%p775_p8)   ;;  %v1952_v22 = vld [vmem:[%s2382_s9 + $0x90] sm:$0xff] (!%p775_p8)  }
  0x71   : > { %v997_v12 = vrot.slane (!%p775_p8), %v860_v3, %v2387_v9  ;;  %1834 = vmatpush3.bf16.msra.mxu1 (!%p775_p8), %v1944_v10  ;;  %1813 = vmatprep.subr.bf16.mxu0 (!%p775_p8), %v1945_v11  ;;  %v1953_v23 = vld [vmem:[%s2382_s9 + $0x58] sm:$0xff] (!%p775_p8)   ;;  %v1957_v27 = vld [vmem:[%s2382_s9 + $0x60] sm:$0xff] (!%p775_p8)   ;;  %v1961_v32 = vld [vmem:[%s2382_s9 + $0x68] sm:$0xff] (!%p775_p8)   ;;  %v2412_v35 = vrot.slane (!%p775_p8), %v990_v30, %v2387_v9 }
  0x72   : > { %1835 = vmatprep.subr.bf16.mxu1 %v1946_v13  ;;  %v1954_v24 = vld [vmem:[%s2382_s9 + $0xd8] sm:$0xff]   ;;  %v1958_v28 = vld [vmem:[%s2382_s9 + $0xe0] sm:$0xff]   ;;  %v1962_v33 = vld [vmem:[%s2382_s9 + $0xe8] sm:$0xff]   ;;  %s2499_s17 = smov (!%p836_p9, %s2036_s17), 1 }
  0x73   : > { %v1005_v15 = vcombine.high %v997_v12, %v997_v12  ;;  %v1955_v25 = vld [vmem:[%s2382_s9 + $0x18] sm:$0xff]   ;;  %v1959_v29 = vld [vmem:[%s2382_s9 + $0x20] sm:$0xff]   ;;  %v1963_v34 = vld [vmem:[%s2382_s9 + $0x28] sm:$0xff]   ;;  %v1006_v40 = vcombine.high %v2412_v35, %v2412_v35  ;;  %v1013_v43 = vrot.slane %v997_v12, %v2387_v9  ;;  %s845_s12 = scalar_lea.vmem %s2490_s3, %s2499_s17  ;;  %s838_s15 = scalar_lea.vmem %s2489_s2, %s2499_s17 }
  0x74   : > { %1814 = vmatpush3.bf16.msra.mxu0 %v1947_v14  ;;  %v1956_v26 = vld [vmem:[%s2382_s9 + $0x98] sm:$0xff]   ;;  %v1960_v31 = vld [vmem:[%s2382_s9 + $0xa0] sm:$0xff]   ;;  %v1964_v36 = vld [vmem:[%s2382_s9 + $0xa8] sm:$0xff]   ;;  %s852_s24 = scalar_lea.vmem %s2491_s4, %s2499_s17 }
  0x75   : > { %v1027_v18 = vrot.slane %v1005_v15, %v2387_v9  ;;  %1836 = vmatpush3.bf16.msra.mxu1 %v1948_v16  ;;  %1815 = vmatprep.subr.bf16.mxu0 %v1949_v17  ;;  %v1965_v37 = vld [vmem:[%s2382_s9 + $0x70] sm:$0xff]   ;;  %v1969_v42 = vld [vmem:[%s2382_s9 + $0x78] sm:$0xff]   ;;  %v1034_v46 = vrot.slane %v1006_v40, %v2387_v9  ;;  %v1035_v48 = vcombine.high %v1013_v43, %v1013_v43  ;;  %v1974_v49 = vld [vmem:[%s2382_s9 + $0x140] sm:$0xff]  }
  0x76   : > { %1837 = vmatprep.subr.bf16.mxu1 %v1950_v19  ;;  %v1966_v38 = vld [vmem:[%s2382_s9 + $0xf0] sm:$0xff]   ;;  %v1970_v44 = vld [vmem:[%s2382_s9 + $0xf8] sm:$0xff]   ;;  %v1975_v50 = vld [vmem:[%s2382_s9 + $0x1c0] sm:$0xff]   ;;  %v1020_v16 = vrot.slane %v2412_v35, %v2387_v9 }
  0x77   : > { %1463 = vmatprep.mubr.bf16.mxu0 %v1027_v18  ;;  %v1037_v21 = vcombine.high %v1027_v18, %v1027_v18  ;;  %v1967_v39 = vld [vmem:[%s2382_s9 + $0x30] sm:$0xff]   ;;  %v1971_v45 = vld [vmem:[%s2382_s9 + $0x38] sm:$0xff]   ;;  %v1976_v51 = vld [vmem:[%s2382_s9 + $0x100] sm:$0xff]   ;;  %v1038_v52 = vcombine.high %v1034_v46, %v1034_v46 }
  0x78   : > { %1816 = vmatpush3.bf16.msra.mxu0 %v1951_v20  ;;  %v1968_v41 = vld [vmem:[%s2382_s9 + $0xb0] sm:$0xff]   ;;  %v1972_v47 = vld [vmem:[%s2382_s9 + $0xb8] sm:$0xff]   ;;  %v1977_v53 = vld [vmem:[%s2382_s9 + $0x180] sm:$0xff]   ;;  %v1036_v20 = vcombine.high %v1020_v16, %v1020_v16 }
  0x79   : > { %1503 = vmatprep.mubr.bf16.mxu1 %v1037_v21  ;;  %1838 = vmatpush3.bf16.msra.mxu1 %v1952_v22  ;;  %v1978_v54 = vld [vmem:[%s2382_s9 + $0x148] sm:$0xff]   ;;  %v1982_v58 = vld [vmem:[%s2382_s9 + $0x150] sm:$0xff]   ;;  %v1986_v62 = vld [vmem:[%s2382_s9 + $0x158] sm:$0xff]   ;;  %v2047_v21 = vmov 0.0  }
  0x7a   : > { %1817 = vmatprep.subr.bf16.mxu0 %v1953_v23  ;;  %1839 = vmatprep.subr.bf16.mxu1 %v1954_v24  ;;  %v1979_v55 = vld [vmem:[%s2382_s9 + $0x1c8] sm:$0xff]   ;;  %v1983_v59 = vld [vmem:[%s2382_s9 + $0x1d0] sm:$0xff]   ;;  %v1987_v63 = vld [vmem:[%s2382_s9 + $0x1d8] sm:$0xff]   ;;  %858 = vst [vmem:[#allocation2] sm:$0x3] %v2047_v21 }
  0x7b   : > { %v1980_v56 = vld [vmem:[%s2382_s9 + $0x108] sm:$0xff]   ;;  %v1984_v60 = vld [vmem:[%s2382_s9 + $0x110] sm:$0xff]   ;;  %v1988_v0 = vld [vmem:[%s2382_s9 + $0x118] sm:$0xff]  }
  0x7c   : > { %1818 = vmatpush3.bf16.msra.mxu0 %v1955_v25  ;;  %v1981_v57 = vld [vmem:[%s2382_s9 + $0x188] sm:$0xff]   ;;  %v1985_v61 = vld [vmem:[%s2382_s9 + $0x190] sm:$0xff]   ;;  %v1989_v1 = vld [vmem:[%s2382_s9 + $0x198] sm:$0xff]  }
  0x7d   : > { %1840 = vmatpush3.bf16.msra.mxu1 %v1956_v26  ;;  %1819 = vmatprep.subr.bf16.mxu0 %v1957_v27  ;;  %v1990_v2 = vld [vmem:[%s2382_s9 + $0x160] sm:$0xff]   ;;  %v1994_v6 = vld [vmem:[%s2382_s9 + $0x168] sm:$0xff]   ;;  %v1998_v11 = vld [vmem:[%s2382_s9 + $0x170] sm:$0xff]  }
  0x7e   : > { %1841 = vmatprep.subr.bf16.mxu1 %v1958_v28  ;;  %v1991_v3 = vld [vmem:[%s2382_s9 + $0x1e0] sm:$0xff]   ;;  %v1995_v7 = vld [vmem:[%s2382_s9 + $0x1e8] sm:$0xff]   ;;  %v1999_v12 = vld [vmem:[%s2382_s9 + $0x1f0] sm:$0xff]  }
  0x7f   : > { %v1992_v4 = vld [vmem:[%s2382_s9 + $0x120] sm:$0xff]   ;;  %v1996_v8 = vld [vmem:[%s2382_s9 + $0x128] sm:$0xff]   ;;  %v2000_v13 = vld [vmem:[%s2382_s9 + $0x130] sm:$0xff]  }
  0x80   : > { %1820 = vmatpush3.bf16.msra.mxu0 %v1959_v29  ;;  %v1993_v5 = vld [vmem:[%s2382_s9 + $0x1a0] sm:$0xff]   ;;  %v1997_v10 = vld [vmem:[%s2382_s9 + $0x1a8] sm:$0xff]   ;;  %v2001_v14 = vld [vmem:[%s2382_s9 + $0x1b0] sm:$0xff]  }
  0x81   : > { %1842 = vmatpush3.bf16.msra.mxu1 %v1960_v31  ;;  %1821 = vmatprep.subr.bf16.mxu0 %v1961_v32  ;;  %v2002_v15 = vld [vmem:[%s2382_s9 + $0x178] sm:$0xff]  }
  0x82   : > { %1843 = vmatprep.subr.bf16.mxu1 %v1962_v33  ;;  %v2003_v17 = vld [vmem:[%s2382_s9 + $0x1f8] sm:$0xff]  }
  0x83   : > { %v2004_v18 = vld [vmem:[%s2382_s9 + $0x138] sm:$0xff]  }
  0x84   : > { %1822 = vmatpush3.bf16.msra.mxu0 %v1963_v34  ;;  %v2005_v19 = vld [vmem:[%s2382_s9 + $0x1b8] sm:$0xff]  }
  0x85   : > { %1844 = vmatpush3.bf16.msra.mxu1 %v1964_v36  ;;  %1823 = vmatprep.subr.bf16.mxu0 %v1965_v37 }
  0x86   : > { %1845 = vmatprep.subr.bf16.mxu1 %v1966_v38 }
  0x88   : > { %1824 = vmatpush3.bf16.msra.mxu0 %v1967_v39 }
  0x89   : > { %1846 = vmatpush3.bf16.msra.mxu1 %v1968_v41  ;;  %1825 = vmatprep.subr.bf16.mxu0 %v1969_v42 }
  0x8a   : > { %1847 = vmatprep.subr.bf16.mxu1 %v1970_v44 }
  0x8c   : > { %1826 = vmatpush3.bf16.msra.mxu0 %v1971_v45 }
  0x8d   : > { %1848 = vmatpush3.bf16.msra.mxu1 %v1972_v47  ;;  %1855 = vmatprep.subr.bf16.mxu0 %v1974_v49  ;;  %v1808_v47 = vld [vmem:[%s838_s15] ss:$0 sm:$0xff] }
  0x8e   : > { %1877 = vmatprep.subr.bf16.mxu1 %v1975_v50 }
  0x8f   : > { %1464 = vmatmul.mubr.bf16.vlgmr.msra.gmra.mrb[0].mxu0 %v1013_v43  ;;  %v859_v43 = vld [vmem:[#allocation2] sm:$0x3] }
  0x90   : > { %1504 = vmatmul.mubr.bf16.vlgmr.msra.gmra.mrb[0].mxu1 %v1035_v48  ;;  %1856 = vmatpush3.bf16.msra.mxu0 %v1976_v51 }
  0x91   : > { %1878 = vmatpush3.bf16.msra.mxu1 %v1977_v53  ;;  %1543 = vmatprep.mubr.bf16.mxu0 %v1034_v46  ;;  %v1605_v46 = vld [vmem:[%s845_s12] sm:$0x1] }
  0x92   : > { %1857 = vmatprep.subr.bf16.mxu0 %v1978_v54  ;;  %1583 = vmatprep.mubr.bf16.mxu1 %v1038_v52  ;;  %v1606_v48 = vunpack.c.l.bf16 %v1605_v46 }
  0x93   : > { %1879 = vmatprep.subr.bf16.mxu1 %v1979_v55 }
  0x94   : > { %1858 = vmatpush3.bf16.msra.mxu0 %v1980_v56 }
  0x95   : > { %1880 = vmatpush3.bf16.msra.mxu1 %v1981_v57  ;;  %1859 = vmatprep.subr.bf16.mxu0 %v1982_v58 }
  0x96   : > { %1881 = vmatprep.subr.bf16.mxu1 %v1983_v59 }
  0x98   : > { %1860 = vmatpush3.bf16.msra.mxu0 %v1984_v60 }
  0x99   : > { %1882 = vmatpush3.bf16.msra.mxu1 %v1985_v61  ;;  %1861 = vmatprep.subr.bf16.mxu0 %v1986_v62 }
  0x9a   : > { %1883 = vmatprep.subr.bf16.mxu1 %v1987_v63 }
  0x9c   : > { %1862 = vmatpush3.bf16.msra.mxu0 %v1988_v0 }
  0x9d   : > { %1884 = vmatpush3.bf16.msra.mxu1 %v1989_v1  ;;  %1863 = vmatprep.subr.bf16.mxu0 %v1990_v2 }
  0x9e   : > { %1885 = vmatprep.subr.bf16.mxu1 %v1991_v3 }
  0xa0   : > { %1864 = vmatpush3.bf16.msra.mxu0 %v1992_v4 }
  0xa1   : > { %1886 = vmatpush3.bf16.msra.mxu1 %v1993_v5  ;;  %1865 = vmatprep.subr.bf16.mxu0 %v1994_v6 }
  0xa2   : > { %1887 = vmatprep.subr.bf16.mxu1 %v1995_v7 }
  0xa4   : > { %1866 = vmatpush3.bf16.msra.mxu0 %v1996_v8 }
  0xa5   : > { %1888 = vmatpush3.bf16.msra.mxu1 %v1997_v10  ;;  %1867 = vmatprep.subr.bf16.mxu0 %v1998_v11 }
  0xa6   : > { %1889 = vmatprep.subr.bf16.mxu1 %v1999_v12 }
  0xa8   : > { %1868 = vmatpush3.bf16.msra.mxu0 %v2000_v13 }
  0xa9   : > { %1890 = vmatpush3.bf16.msra.mxu1 %v2001_v14  ;;  %1869 = vmatprep.subr.bf16.mxu0 %v2002_v15 }
  0xaa   : > { %1891 = vmatprep.subr.bf16.mxu1 %v2003_v17 }
  0xac   : > { %1870 = vmatpush3.bf16.msra.mxu0 %v2004_v18 }
  0xad   : > { %1892 = vmatpush3.bf16.msra.mxu1 %v2005_v19 }
  0xaf   : > { %1544 = vmatmul.mubr.bf16.vlgmr.msra.gmra.mrb[4].mxu0 %v1020_v16 }
  0xb0   : > { %1584 = vmatmul.mubr.bf16.vlgmr.msra.gmra.mrb[4].mxu1 %v1036_v20 }
 0x162   : > { %v1827_v22 = vpop.f32.mrb[0].mxu0 }
 0x163   : > { %v1849_v23 = vpop.f32.mrb[0].mxu1  ;;  %v1828_v24 = vpop.f32.mrb[1].mxu0 }
 0x164   : > { %v1829_v25 = vadd.f32 %v1828_v24, %v1827_v22  ;;  %v1850_v26 = vpop.f32.mrb[1].mxu1  ;;  %v1830_v9 = vpop.f32.mrb[2].mxu0 }
 0x165   : > { %v1851_v27 = vadd.f32 %v1850_v26, %v1849_v23  ;;  %v1852_v28 = vpop.f32.mrb[2].mxu1  ;;  %v1831_v29 = vpop.f32.mrb[3].mxu0 }
 0x166   : > { %v1853_v30 = vpop.f32.mrb[3].mxu1 }
 0x167   : > { %v1506_v31 = vadd.f32 %v1851_v27, %v1829_v25 }
 0x182   : > { %v1871_v32 = vpop.f32.mrb[4].mxu0 }
 0x183   : > { %v1893_v33 = vpop.f32.mrb[4].mxu1  ;;  %v1872_v34 = vpop.f32.mrb[5].mxu0 }
 0x184   : > { %v1873_v35 = vadd.f32 %v1872_v34, %v1871_v32  ;;  %v1894_v36 = vpop.f32.mrb[5].mxu1  ;;  %v1874_v37 = vpop.f32.mrb[6].mxu0 }
 0x185   : > { %v1895_v38 = vadd.f32 %v1894_v36, %v1893_v33  ;;  %v1896_v39 = vpop.f32.mrb[6].mxu1  ;;  %v1875_v40 = vpop.f32.mrb[7].mxu0 }
 0x186   : > { %v1546_v41 = vadd.f32 %v1873_v35, %v1506_v31  ;;  %v1897_v42 = vpop.f32.mrb[7].mxu1 }
 0x188   : > { %v1586_v44 = vadd.f32 %v1895_v38, %v1546_v41 }
 0x18a   : > { %v1591_v45 = vadd.f32 %v1586_v44, %v859_v43 }
 0x18c   : > { %1592 = vst [vmem:[#allocation2] sm:$0x3] %v1591_v45 }
 0x193   : > { %v1596_v49 = vld [vmem:[#allocation2] sm:$0x3] }
 0x194   : > { %v1604_v50 = vadd.f32 %v1808_v47, %v1596_v49 }
 0x196   : > { %v1607_v51 = vadd.f32 %v1606_v48, %v1604_v50 }
 0x198   : > { %v1608_v52 = vpack.c.bf16 %v1607_v51, %v1607_v51 }
 0x19a   : > { %1609 = vst [vmem:[%s852_s24] sm:$0x1] %v1608_v52 }
 0x19b PF: > { %s14_s19 = sadd.s32 1, %s2044_s19   ;;  %s2492_s15 = smov %s2032_s16 }
 0x19c   : > { %p11_p10 = scmp.ge.s32.totalorder %s14_s19, 4   ;;  %s2493_s16 = smov %s2108_s23 }
 0x19d   : > { %s2494_s17 = smov %s2040_s18  ;;  %s2495_s18 = smov %s2497_s20 }
 0x19e   :  { %13 = sbr.rel (!%p11_p10) target bundleno = 3 (0x3), region = 129 }

</bundles_post_ra>
